<compile_context>
chip_gen: v7x
topology: tpu7x:2x2x1
jax: 0.10.0
libtpu: 0.0.40
codegen_flags: <defaults>
</compile_context>

<pallas_src>
import jax
import jax.numpy as jnp
from jax import lax
from jax.experimental import pallas as pl
from jax.experimental.pallas import tpu as pltpu

LANE = 128          # lane width
SUBLANE_BF16 = 16   # bf16 rows per vreg (sublane packing)


def _round_up(x, m):
    return (x + m - 1) // m * m


def _pad_axis(a, axis, new_size):
    pads = [(0, 0)] * a.ndim
    pads[axis] = (0, new_size - a.shape[axis])
    return jnp.pad(a, pads)


def _pad_gates(w, h, h_pad):
    """(..., 4h) -> (..., 4*h_pad): each PyTorch gate [i,f,g,o] zero-padded to h_pad."""
    gates = [w[..., k * h:(k + 1) * h] for k in range(4)]
    return jnp.concatenate([_pad_axis(g, -1, h_pad) for g in gates], axis=-1)


def _sigmoid(x):
    # One EUP transcendental instead of exp + reciprocal.
    return 0.5 * jnp.tanh(0.5 * x) + 0.5


def _vmem_capacity_bytes():
    try:
        return int(pltpu.get_tpu_info().vmem_capacity_bytes)
    except Exception:
        return 64 * 1024 * 1024   # conservative fallback (v7x per-TensorCore)


def _lstm_kernel(tile_last_ref, len_ref, emb_ref, w_ih_ref, w_hh_ref, b_ref,
                 w_fc_ref, b_fc_ref, out_ref, gx_scr, h_scr, c_scr):
    TT, BB, Ep = emb_ref.shape
    Hp = h_scr.shape[1]
    bi = pl.program_id(0)
    ti = pl.program_id(1)

    # init_hidden(): zeros once per batch tile — unconditional, so even a batch
    # tile whose every time tile is dead produces a well-defined FC output.
    @pl.when(ti == 0)
    def _():
        h_scr[...] = jnp.zeros_like(h_scr)
        c_scr[...] = jnp.zeros_like(c_scr)

    # Skip time tiles entirely past the longest sequence in this batch tile.
    @pl.when(ti <= tile_last_ref[bi])
    def _():
        # Hoisted input projection for this time tile: ONE big MXU matmul,
        # bias folded in once, stored bf16 (halves gx VMEM + vst traffic).
        x2 = emb_ref[...].reshape(TT * BB, Ep)                           # bf16
        gx_scr[...] = (jnp.dot(x2, w_ih_ref[...],
                               preferred_element_type=jnp.float32)
                       + b_ref[...]).astype(jnp.bfloat16)                # (TT*BB, 4Hp)

        len_col = len_ref[...]                                           # (BB, 1) int32
        t_base = ti * TT

        def step(t, carry):
            h = h_scr[...]                                               # (BB, Hp) bf16
            c = c_scr[...]                                               # (BB, Hp) f32
            row = pl.multiple_of(t * BB, BB)
            gates = (jnp.dot(h, w_hh_ref[...],
                             preferred_element_type=jnp.float32)
                     + gx_scr[pl.ds(row, BB), :])                        # (BB, 4Hp) f32

            # PyTorch LSTM gate layout [i, f, g, o]; slices are 128-lane aligned.
            # Nonlinearities in bf16 (halves EUP pushes on v6e/v7x); the cell
            # state accumulation stays in f32.
            g16 = gates.astype(jnp.bfloat16)
            i_g = _sigmoid(g16[:, 0 * Hp:1 * Hp])
            f_g = _sigmoid(g16[:, 1 * Hp:2 * Hp])
            g_g = jnp.tanh(g16[:, 2 * Hp:3 * Hp])
            o_g = _sigmoid(g16[:, 3 * Hp:4 * Hp])

            c_new = f_g * c + i_g * g_g                                  # f32
            h_new = o_g * jnp.tanh(c_new.astype(jnp.bfloat16))           # bf16

            # pack_padded_sequence semantics: state frozen once t >= lengths[b],
            # so h_final[b] is the state at t = lengths[b] - 1.
            valid = (t_base + t) < len_col                               # (BB, 1) bool
            h_scr[...] = jnp.where(valid, h_new, h)
            c_scr[...] = jnp.where(valid, c_new, c)
            return carry

        lax.fori_loop(0, TT, step, 0, unroll=min(8, TT))

    # logits = fully_connected(h_final[-1]) — only at the last time tile
    # (unconditional w.r.t. the dead-tile gate: h_scr holds the frozen state).
    @pl.when(ti == pl.num_programs(1) - 1)
    def _():
        out_ref[...] = (jnp.dot(h_scr[...], w_fc_ref[...],
                                preferred_element_type=jnp.float32)
                        + b_fc_ref[...])


@jax.jit
def seq_lstm_forward(x, lengths, params):
    """x: (T, B) int32 token ids; lengths: (B,) int32. Returns logits (B, O) f32."""
    emb = params["embedding"]        # (V, E)
    w_ih = params["w_ih"]            # (E, 4H)  (transposed vs PyTorch weight_ih_l0)
    w_hh = params["w_hh"]            # (H, 4H)
    b = params["b"]                  # (1, 4H)  (b_ih + b_hh)
    w_fc = params["w_fc"]            # (H, O)
    b_fc = params["b_fc"]            # (1, O)

    T, B = x.shape
    V, E = emb.shape
    H = w_hh.shape[0]
    O = w_fc.shape[1]

    Ep = _round_up(E, LANE)
    Hp = _round_up(H, LANE)
    Op = _round_up(O, LANE)

    # --- batch tiling: >=2 tiles when possible (feeds both v7x TensorCores);
    #     Bp rounded up to a multiple of BB so every batch row is covered. -----
    Bp0 = _round_up(B, SUBLANE_BF16)
    if Bp0 >= 2 * SUBLANE_BF16:
        BB = min(128, _round_up((Bp0 + 1) // 2, SUBLANE_BF16))
    else:
        BB = Bp0
    Bp = _round_up(Bp0, BB)
    nbt = Bp // BB

    # --- time tiling: size TT from a VMEM budget (bf16 gx scratch + 2x buffered
    #     embedded tile), generation-aware; leave headroom for weights/states. --
    vmem_cap = _vmem_capacity_bytes()
    bytes_per_t = BB * (8 * Hp + 4 * Ep)          # gx (bf16) + 2 emb buffers (bf16)
    TT = max(1, min(T, (vmem_cap // 3) // max(bytes_per_t, 1), 256))
    Tp = _round_up(T, TT)
    vmem_limit = int(vmem_cap * 3 // 4)           # ~48 MiB on v7x, ~96 MiB on v5e/v6e

    # --- cheap glue: bf16 embedding gather + lane/sublane-friendly padding -----
    emb_p = _pad_axis(emb, 1, Ep).astype(jnp.bfloat16)
    embedded = emb_p[x]                                                  # (T, B, Ep) bf16
    embedded = _pad_axis(_pad_axis(embedded, 1, Bp), 0, Tp)

    w_ih_p = _pad_axis(_pad_gates(w_ih, H, Hp), 0, Ep).astype(jnp.bfloat16)
    w_hh_p = _pad_axis(_pad_gates(w_hh, H, Hp), 0, Hp).astype(jnp.bfloat16)
    b_p = _pad_gates(b, H, Hp).astype(jnp.float32)
    w_fc_p = _pad_axis(_pad_axis(w_fc, 0, Hp), 1, Op).astype(jnp.bfloat16)
    b_fc_p = _pad_axis(b_fc, 1, Op).astype(jnp.float32)

    len_pad = _pad_axis(lengths.astype(jnp.int32), 0, Bp)
    len_col = len_pad.reshape(Bp, 1)
    # Per-batch-tile index of the last time tile that still contains live steps.
    tile_max = len_pad.reshape(nbt, BB).max(axis=1)
    tile_last = jnp.maximum((tile_max + TT - 1) // TT - 1, 0).astype(jnp.int32)

    grid = (nbt, Tp // TT)           # (batch tiles: parallel, time tiles: arbitrary)

    out = pl.pallas_call(
        _lstm_kernel,
        out_shape=jax.ShapeDtypeStruct((Bp, Op), jnp.float32),
        grid_spec=pltpu.PrefetchScalarGridSpec(
            num_scalar_prefetch=1,   # tile_last -> SMEM, visible to index_maps + kernel
            grid=grid,
            in_specs=[
                pl.BlockSpec((BB, 1), lambda bi, ti, tl: (bi, 0)),        # lengths
                # embedded: clamp dead tiles to the last live block so their
                # HBM->VMEM DMA is skipped by the pipeliner (block idx unchanged).
                pl.BlockSpec((TT, BB, Ep),
                             lambda bi, ti, tl: (jnp.minimum(ti, tl[bi]), bi, 0)),
                pl.BlockSpec((Ep, 4 * Hp), lambda bi, ti, tl: (0, 0)),    # W_ih
                pl.BlockSpec((Hp, 4 * Hp), lambda bi, ti, tl: (0, 0)),    # W_hh
                pl.BlockSpec((1, 4 * Hp), lambda bi, ti, tl: (0, 0)),     # b
                pl.BlockSpec((Hp, Op), lambda bi, ti, tl: (0, 0)),        # W_fc
                pl.BlockSpec((1, Op), lambda bi, ti, tl: (0, 0)),         # b_fc
            ],
            out_specs=pl.BlockSpec((BB, Op), lambda bi, ti, tl: (bi, 0)),
            scratch_shapes=[
                pltpu.VMEM((TT * BB, 4 * Hp), jnp.bfloat16),  # hoisted input projection
                pltpu.VMEM((BB, Hp), jnp.bfloat16),           # h state (persists over T)
                pltpu.VMEM((BB, Hp), jnp.float32),            # c state
            ],
        ),
        compiler_params=pltpu.CompilerParams(
            dimension_semantics=("parallel", "arbitrary"),
            vmem_limit_bytes=vmem_limit,
        ),
    )(tile_last, len_col, embedded, w_ih_p, w_hh_p, b_p, w_fc_p, b_fc_p)

    return out[:B, :O]


def init_params(key, input_size, embedding_size, hidden_size, output_size):
    ks = jax.random.split(key, 7)
    s = 1.0 / jnp.sqrt(hidden_size)
    return {
        "embedding": jax.random.normal(ks[0], (input_size, embedding_size), jnp.float32),
        # stored transposed relative to PyTorch (kernel does x @ W): (E, 4H), (H, 4H)
        "w_ih": jax.random.uniform(ks[1], (embedding_size, 4 * hidden_size),
                                   jnp.float32, -s, s),
        "w_hh": jax.random.uniform(ks[2], (hidden_size, 4 * hidden_size),
                                   jnp.float32, -s, s),
        "b": (jax.random.uniform(ks[3], (1, 4 * hidden_size), jnp.float32, -s, s)
              + jax.random.uniform(ks[4], (1, 4 * hidden_size), jnp.float32, -s, s)),
        "w_fc": jax.random.uniform(ks[5], (hidden_size, output_size),
                                   jnp.float32, -s, s),
        "b_fc": jax.random.uniform(ks[6], (1, output_size), jnp.float32, -s, s),
    }


def seq_lstm_reference(x, lengths, params):
    """Pure-JAX f32 reference matching PyTorch SeqLSTM.forward (returns logits)."""
    emb, w_ih, w_hh, b = params["embedding"], params["w_ih"], params["w_hh"], params["b"]
    w_fc, b_fc = params["w_fc"], params["b_fc"]
    T, B = x.shape
    H = w_hh.shape[0]
    embedded = emb[x].astype(jnp.float32)
    h = jnp.zeros((B, H), jnp.float32)
    c = jnp.zeros((B, H), jnp.float32)
    for t in range(T):
        gates = embedded[t] @ w_ih + h @ w_hh + b
        i = jax.nn.sigmoid(gates[:, :H])
        f = jax.nn.sigmoid(gates[:, H:2 * H])
        g = jnp.tanh(gates[:, 2 * H:3 * H])
        o = jax.nn.sigmoid(gates[:, 3 * H:])
        c_new = f * c + i * g
        h_new = o * jnp.tanh(c_new)
        m = (t < lengths)[:, None]
        h = jnp.where(m, h_new, h)
        c = jnp.where(m, c_new, c)
    return h @ w_fc + b_fc


if __name__ == "__main__":
    # Small shapes consistent with the module: vocab=20, E=16, H=32, O=10, T=8, B=4.
    input_size, embedding_size, hidden_size, output_size = 20, 16, 32, 10
    T, B = 8, 4

    key = jax.random.PRNGKey(0)
    k_par, k_x = jax.random.split(key)
    params = init_params(k_par, input_size, embedding_size, hidden_size, output_size)

    x = jax.random.randint(k_x, (T, B), 0, input_size, dtype=jnp.int32)
    # pack_padded_sequence expects sorted-descending, nonzero lengths
    lengths = jnp.array([8, 7, 5, 3], dtype=jnp.int32)

    logits = seq_lstm_forward(x, lengths, params)
    jax.block_until_ready(logits)
    assert logits.shape == (B, output_size)

    ref = seq_lstm_reference(x, lengths, params)
    max_err = float(jnp.max(jnp.abs(logits - ref)))
    # bf16 matmuls / gate nonlinearities vs f32 reference.
    assert max_err < 3e-2, f"max abs error {max_err} vs f32 reference"
    print("KERNEL_OK")
</pallas_src>

<mosaic_0001>
module attributes {stable_mosaic.version = 11 : i64} {
  func.func @_lstm_kernel(%arg0: i32, %arg1: i32, %arg2: memref<1xi32, #tpu.memory_space<smem>>, %arg3: memref<16x1xi32, #tpu.memory_space<vmem>>, %arg4: memref<8x16x128xbf16, #tpu.memory_space<vmem>>, %arg5: memref<128x512xbf16, #tpu.memory_space<vmem>>, %arg6: memref<128x512xbf16, #tpu.memory_space<vmem>>, %arg7: memref<1x512xf32, #tpu.memory_space<vmem>>, %arg8: memref<128x128xbf16, #tpu.memory_space<vmem>>, %arg9: memref<1x128xf32, #tpu.memory_space<vmem>>, %arg10: memref<16x128xf32, #tpu.memory_space<vmem>>, %arg11: memref<128x512xbf16, #tpu.memory_space<vmem>>, %arg12: memref<16x128xbf16, #tpu.memory_space<vmem>>, %arg13: memref<16x128xf32, #tpu.memory_space<vmem>>) attributes {dimension_semantics = [#tpu.dimension_semantics<parallel>, #tpu.dimension_semantics<arbitrary>], iteration_bounds = array<i64: 1, 1>, scalar_prefetch = 1 : i64, scratch_operands = 3 : i64, tpu.core_type = #tpu.core_type<tc>, window_params = [{transform_indices = @transform_0, window_bounds = array<i64: 16, 1>}, {transform_indices = @transform_1, window_bounds = array<i64: 8, 16, 128>}, {pipeline_mode = #tpu.pipeline_mode<synchronous>, transform_indices = @transform_2, window_bounds = array<i64: 128, 512>}, {pipeline_mode = #tpu.pipeline_mode<synchronous>, transform_indices = @transform_3, window_bounds = array<i64: 128, 512>}, {pipeline_mode = #tpu.pipeline_mode<synchronous>, transform_indices = @transform_4, window_bounds = array<i64: 1, 512>}, {pipeline_mode = #tpu.pipeline_mode<synchronous>, transform_indices = @transform_5, window_bounds = array<i64: 128, 128>}, {pipeline_mode = #tpu.pipeline_mode<synchronous>, transform_indices = @transform_6, window_bounds = array<i64: 1, 128>}, {transform_indices = @transform_7, window_bounds = array<i64: 16, 128>}]} {
    %c0_i32 = arith.constant 0 : i32
    %0 = arith.cmpi eq, %arg1, %c0_i32 : i32
    %1 = arith.extui %0 : i1 to i32
    %c0_i32_0 = arith.constant 0 : i32
    %2 = arith.cmpi ne, %1, %c0_i32_0 : i32
    scf.if %2 {
      %cst = arith.constant 0.000000e+00 : bf16
      %11 = vector.broadcast %cst : bf16 to vector<16x128xbf16>
      %c0 = arith.constant 0 : index
      %c0_4 = arith.constant 0 : index
      %12 = vector.load %arg12[%c0, %c0_4] : memref<16x128xbf16, #tpu.memory_space<vmem>>, vector<16x128xbf16>
      tpu.vector_store %arg12[%c0, %c0_4], %11 {strides = array<i32>} : memref<16x128xbf16, #tpu.memory_space<vmem>>, vector<16x128xbf16>,
      %cst_5 = arith.constant 0.000000e+00 : f32
      %13 = vector.broadcast %cst_5 : f32 to vector<16x128xf32>
      %c0_6 = arith.constant 0 : index
      %c0_7 = arith.constant 0 : index
      %14 = vector.load %arg13[%c0_6, %c0_7] : memref<16x128xf32, #tpu.memory_space<vmem>>, vector<16x128xf32>
      tpu.vector_store %arg13[%c0_6, %c0_7], %13 {strides = array<i32>} : memref<16x128xf32, #tpu.memory_space<vmem>>, vector<16x128xf32>,
    } else {
    }
    %3 = arith.index_cast %arg0 : i32 to index
    %4 = memref.load %arg2[%3] : memref<1xi32, #tpu.memory_space<smem>>
    %5 = arith.cmpi sle, %arg1, %4 : i32
    %6 = arith.extui %5 : i1 to i32
    %c0_i32_1 = arith.constant 0 : i32
    %7 = arith.cmpi ne, %6, %c0_i32_1 : i32
    scf.if %7 {
      %c0 = arith.constant 0 : index
      %c0_4 = arith.constant 0 : index
      %c0_5 = arith.constant 0 : index
      %11 = vector.load %arg4[%c0, %c0_4, %c0_5] : memref<8x16x128xbf16, #tpu.memory_space<vmem>>, vector<8x16x128xbf16>
      %12 = vector.shape_cast %11 : vector<8x16x128xbf16> to vector<128x128xbf16>
      %c0_6 = arith.constant 0 : index
      %c0_7 = arith.constant 0 : index
      %13 = vector.load %arg5[%c0_6, %c0_7] : memref<128x512xbf16, #tpu.memory_space<vmem>>, vector<128x512xbf16>
      %cst = arith.constant dense<0.000000e+00> : vector<128x512xf32>
      %14 = tpu.matmul %12, %13, %cst {dimension_numbers = #tpu.dot_dimension_numbers<[1], [0], [0], [1], [0, 0, 1, 1], [], []>} : vector<128x128xbf16>, vector<128x512xbf16>, vector<128x512xf32> -> vector<128x512xf32>
      %c0_8 = arith.constant 0 : index
      %c0_9 = arith.constant 0 : index
      %15 = vector.load %arg7[%c0_8, %c0_9] : memref<1x512xf32, #tpu.memory_space<vmem>>, vector<1x512xf32>
      %16 = vector.broadcast %15 : vector<1x512xf32> to vector<128x512xf32>
      %17 = arith.addf %14, %16 : vector<128x512xf32>
      %18 = arith.truncf %17 : vector<128x512xf32> to vector<128x512xbf16>
      %c0_10 = arith.constant 0 : index
      %c0_11 = arith.constant 0 : index
      %19 = vector.load %arg11[%c0_10, %c0_11] : memref<128x512xbf16, #tpu.memory_space<vmem>>, vector<128x512xbf16>
      tpu.vector_store %arg11[%c0_10, %c0_11], %18 {strides = array<i32>} : memref<128x512xbf16, #tpu.memory_space<vmem>>, vector<128x512xbf16>,
      %c0_12 = arith.constant 0 : index
      %c0_13 = arith.constant 0 : index
      %20 = vector.load %arg3[%c0_12, %c0_13] : memref<16x1xi32, #tpu.memory_space<vmem>>, vector<16x1xi32>
      %c8_i32 = arith.constant 8 : i32
      %21 = arith.muli %arg1, %c8_i32 : i32
      %c0_i32_14 = arith.constant 0 : i32
      %c0_15 = arith.constant 0 : index
      %c0_16 = arith.constant 0 : index
      %22 = vector.load %arg12[%c0_15, %c0_16] : memref<16x128xbf16, #tpu.memory_space<vmem>>, vector<16x128xbf16>
      %c0_17 = arith.constant 0 : index
      %c0_18 = arith.constant 0 : index
      %23 = vector.load %arg13[%c0_17, %c0_18] : memref<16x128xf32, #tpu.memory_space<vmem>>, vector<16x128xf32>
      %c16_i32 = arith.constant 16 : i32
      %24 = arith.muli %c0_i32_14, %c16_i32 : i32
      %25 = tpu.assume_multiple %24, 16 : i32
      %c0_19 = arith.constant 0 : index
      %c0_20 = arith.constant 0 : index
      %26 = vector.load %arg6[%c0_19, %c0_20] : memref<128x512xbf16, #tpu.memory_space<vmem>>, vector<128x512xbf16>
      %cst_21 = arith.constant dense<0.000000e+00> : vector<16x512xf32>
      %27 = tpu.matmul %22, %26, %cst_21 {dimension_numbers = #tpu.dot_dimension_numbers<[1], [0], [0], [1], [0, 0, 1, 1], [], []>} : vector<16x128xbf16>, vector<128x512xbf16>, vector<16x512xf32> -> vector<16x512xf32>
      %28 = arith.index_cast %25 : i32 to index
      %c0_22 = arith.constant 0 : index
      %29 = vector.load %arg11[%28, %c0_22] : memref<128x512xbf16, #tpu.memory_space<vmem>>, vector<16x512xbf16>
      %30 = arith.extf %29 : vector<16x512xbf16> to vector<16x512xf32>
      %31 = arith.addf %27, %30 : vector<16x512xf32>
      %32 = arith.truncf %31 : vector<16x512xf32> to vector<16x512xbf16>
      %33 = vector.extract_strided_slice %32 {offsets = [0, 0], sizes = [16, 128], strides = [1, 1]} : vector<16x512xbf16> to vector<16x128xbf16>
      %cst_23 = arith.constant 5.000000e-01 : bf16
      %34 = vector.broadcast %cst_23 : bf16 to vector<16x128xbf16>
      %35 = arith.mulf %34, %33 : vector<16x128xbf16>
      %36 = math.tanh %35 : vector<16x128xbf16>
      %cst_24 = arith.constant 5.000000e-01 : bf16
      %37 = vector.broadcast %cst_24 : bf16 to vector<16x128xbf16>
      %38 = arith.mulf %37, %36 : vector<16x128xbf16>
      %cst_25 = arith.constant 5.000000e-01 : bf16
      %39 = vector.broadcast %cst_25 : bf16 to vector<16x128xbf16>
      %40 = arith.addf %38, %39 : vector<16x128xbf16>
      %41 = vector.extract_strided_slice %32 {offsets = [0, 128], sizes = [16, 128], strides = [1, 1]} : vector<16x512xbf16> to vector<16x128xbf16>
      %cst_26 = arith.constant 5.000000e-01 : bf16
      %42 = vector.broadcast %cst_26 : bf16 to vector<16x128xbf16>
      %43 = arith.mulf %42, %41 : vector<16x128xbf16>
      %44 = math.tanh %43 : vector<16x128xbf16>
      %cst_27 = arith.constant 5.000000e-01 : bf16
      %45 = vector.broadcast %cst_27 : bf16 to vector<16x128xbf16>
      %46 = arith.mulf %45, %44 : vector<16x128xbf16>
      %cst_28 = arith.constant 5.000000e-01 : bf16
      %47 = vector.broadcast %cst_28 : bf16 to vector<16x128xbf16>
      %48 = arith.addf %46, %47 : vector<16x128xbf16>
      %49 = vector.extract_strided_slice %32 {offsets = [0, 256], sizes = [16, 128], strides = [1, 1]} : vector<16x512xbf16> to vector<16x128xbf16>
      %50 = math.tanh %49 : vector<16x128xbf16>
      %51 = vector.extract_strided_slice %32 {offsets = [0, 384], sizes = [16, 128], strides = [1, 1]} : vector<16x512xbf16> to vector<16x128xbf16>
      %cst_29 = arith.constant 5.000000e-01 : bf16
      %52 = vector.broadcast %cst_29 : bf16 to vector<16x128xbf16>
      %53 = arith.mulf %52, %51 : vector<16x128xbf16>
      %54 = math.tanh %53 : vector<16x128xbf16>
      %cst_30 = arith.constant 5.000000e-01 : bf16
      %55 = vector.broadcast %cst_30 : bf16 to vector<16x128xbf16>
      %56 = arith.mulf %55, %54 : vector<16x128xbf16>
      %cst_31 = arith.constant 5.000000e-01 : bf16
      %57 = vector.broadcast %cst_31 : bf16 to vector<16x128xbf16>
      %58 = arith.addf %56, %57 : vector<16x128xbf16>
      %59 = arith.extf %48 : vector<16x128xbf16> to vector<16x128xf32>
      %60 = arith.mulf %59, %23 : vector<16x128xf32>
      %61 = arith.mulf %40, %50 : vector<16x128xbf16>
      %62 = arith.extf %61 : vector<16x128xbf16> to vector<16x128xf32>
      %63 = arith.addf %60, %62 : vector<16x128xf32>
      %64 = arith.truncf %63 : vector<16x128xf32> to vector<16x128xbf16>
      %65 = math.tanh %64 : vector<16x128xbf16>
      %66 = arith.mulf %58, %65 : vector<16x128xbf16>
      %67 = arith.addi %21, %c0_i32_14 : i32
      %68 = vector.broadcast %67 : i32 to vector<16x1xi32>
      %69 = arith.cmpi slt, %68, %20 : vector<16x1xi32>
      %70 = vector.shape_cast %69 : vector<16x1xi1> to vector<16x1xi1>
      %71 = vector.broadcast %70 : vector<16x1xi1> to vector<16x128xi1>
      %72 = arith.select %71, %66, %22 : vector<16x128xi1>, vector<16x128xbf16>
      %c0_32 = arith.constant 0 : index
      %c0_33 = arith.constant 0 : index
      %73 = vector.load %arg12[%c0_32, %c0_33] : memref<16x128xbf16, #tpu.memory_space<vmem>>, vector<16x128xbf16>
      tpu.vector_store %arg12[%c0_32, %c0_33], %72 {strides = array<i32>} : memref<16x128xbf16, #tpu.memory_space<vmem>>, vector<16x128xbf16>,
      %74 = vector.shape_cast %69 : vector<16x1xi1> to vector<16x1xi1>
      %75 = vector.broadcast %74 : vector<16x1xi1> to vector<16x128xi1>
      %76 = arith.select %75, %63, %23 : vector<16x128xi1>, vector<16x128xf32>
      %c0_34 = arith.constant 0 : index
      %c0_35 = arith.constant 0 : index
      %77 = vector.load %arg13[%c0_34, %c0_35] : memref<16x128xf32, #tpu.memory_space<vmem>>, vector<16x128xf32>
      tpu.vector_store %arg13[%c0_34, %c0_35], %76 {strides = array<i32>} : memref<16x128xf32, #tpu.memory_space<vmem>>, vector<16x128xf32>,
      %c1_i32 = arith.constant 1 : i32
      %c0_36 = arith.constant 0 : index
      %c0_37 = arith.constant 0 : index
      %78 = vector.load %arg12[%c0_36, %c0_37] : memref<16x128xbf16, #tpu.memory_space<vmem>>, vector<16x128xbf16>
      %c0_38 = arith.constant 0 : index
      %c0_39 = arith.constant 0 : index
      %79 = vector.load %arg13[%c0_38, %c0_39] : memref<16x128xf32, #tpu.memory_space<vmem>>, vector<16x128xf32>
      %c16_i32_40 = arith.constant 16 : i32
      %80 = arith.muli %c1_i32, %c16_i32_40 : i32
      %81 = tpu.assume_multiple %80, 16 : i32
      %c0_41 = arith.constant 0 : index
      %c0_42 = arith.constant 0 : index
      %82 = vector.load %arg6[%c0_41, %c0_42] : memref<128x512xbf16, #tpu.memory_space<vmem>>, vector<128x512xbf16>
      %cst_43 = arith.constant dense<0.000000e+00> : vector<16x512xf32>
      %83 = tpu.matmul %78, %82, %cst_43 {dimension_numbers = #tpu.dot_dimension_numbers<[1], [0], [0], [1], [0, 0, 1, 1], [], []>} : vector<16x128xbf16>, vector<128x512xbf16>, vector<16x512xf32> -> vector<16x512xf32>
      %84 = arith.index_cast %81 : i32 to index
      %c0_44 = arith.constant 0 : index
      %85 = vector.load %arg11[%84, %c0_44] : memref<128x512xbf16, #tpu.memory_space<vmem>>, vector<16x512xbf16>
      %86 = arith.extf %85 : vector<16x512xbf16> to vector<16x512xf32>
      %87 = arith.addf %83, %86 : vector<16x512xf32>
      %88 = arith.truncf %87 : vector<16x512xf32> to vector<16x512xbf16>
      %89 = vector.extract_strided_slice %88 {offsets = [0, 0], sizes = [16, 128], strides = [1, 1]} : vector<16x512xbf16> to vector<16x128xbf16>
      %cst_45 = arith.constant 5.000000e-01 : bf16
      %90 = vector.broadcast %cst_45 : bf16 to vector<16x128xbf16>
      %91 = arith.mulf %90, %89 : vector<16x128xbf16>
      %92 = math.tanh %91 : vector<16x128xbf16>
      %cst_46 = arith.constant 5.000000e-01 : bf16
      %93 = vector.broadcast %cst_46 : bf16 to vector<16x128xbf16>
      %94 = arith.mulf %93, %92 : vector<16x128xbf16>
      %cst_47 = arith.constant 5.000000e-01 : bf16
      %95 = vector.broadcast %cst_47 : bf16 to vector<16x128xbf16>
      %96 = arith.addf %94, %95 : vector<16x128xbf16>
      %97 = vector.extract_strided_slice %88 {offsets = [0, 128], sizes = [16, 128], strides = [1, 1]} : vector<16x512xbf16> to vector<16x128xbf16>
      %cst_48 = arith.constant 5.000000e-01 : bf16
      %98 = vector.broadcast %cst_48 : bf16 to vector<16x128xbf16>
      %99 = arith.mulf %98, %97 : vector<16x128xbf16>
      %100 = math.tanh %99 : vector<16x128xbf16>
      %cst_49 = arith.constant 5.000000e-01 : bf16
      %101 = vector.broadcast %cst_49 : bf16 to vector<16x128xbf16>
      %102 = arith.mulf %101, %100 : vector<16x128xbf16>
      %cst_50 = arith.constant 5.000000e-01 : bf16
      %103 = vector.broadcast %cst_50 : bf16 to vector<16x128xbf16>
      %104 = arith.addf %102, %103 : vector<16x128xbf16>
      %105 = vector.extract_strided_slice %88 {offsets = [0, 256], sizes = [16, 128], strides = [1, 1]} : vector<16x512xbf16> to vector<16x128xbf16>
      %106 = math.tanh %105 : vector<16x128xbf16>
      %107 = vector.extract_strided_slice %88 {offsets = [0, 384], sizes = [16, 128], strides = [1, 1]} : vector<16x512xbf16> to vector<16x128xbf16>
      %cst_51 = arith.constant 5.000000e-01 : bf16
      %108 = vector.broadcast %cst_51 : bf16 to vector<16x128xbf16>
      %109 = arith.mulf %108, %107 : vector<16x128xbf16>
      %110 = math.tanh %109 : vector<16x128xbf16>
      %cst_52 = arith.constant 5.000000e-01 : bf16
      %111 = vector.broadcast %cst_52 : bf16 to vector<16x128xbf16>
      %112 = arith.mulf %111, %110 : vector<16x128xbf16>
      %cst_53 = arith.constant 5.000000e-01 : bf16
      %113 = vector.broadcast %cst_53 : bf16 to vector<16x128xbf16>
      %114 = arith.addf %112, %113 : vector<16x128xbf16>
      %115 = arith.extf %104 : vector<16x128xbf16> to vector<16x128xf32>
      %116 = arith.mulf %115, %79 : vector<16x128xf32>
      %117 = arith.mulf %96, %106 : vector<16x128xbf16>
      %118 = arith.extf %117 : vector<16x128xbf16> to vector<16x128xf32>
      %119 = arith.addf %116, %118 : vector<16x128xf32>
      %120 = arith.truncf %119 : vector<16x128xf32> to vector<16x128xbf16>
      %121 = math.tanh %120 : vector<16x128xbf16>
      %122 = arith.mulf %114, %121 : vector<16x128xbf16>
      %123 = arith.addi %21, %c1_i32 : i32
      %124 = vector.broadcast %123 : i32 to vector<16x1xi32>
      %125 = arith.cmpi slt, %124, %20 : vector<16x1xi32>
      %126 = vector.shape_cast %125 : vector<16x1xi1> to vector<16x1xi1>
      %127 = vector.broadcast %126 : vector<16x1xi1> to vector<16x128xi1>
      %128 = arith.select %127, %122, %78 : vector<16x128xi1>, vector<16x128xbf16>
      %c0_54 = arith.constant 0 : index
      %c0_55 = arith.constant 0 : index
      %129 = vector.load %arg12[%c0_54, %c0_55] : memref<16x128xbf16, #tpu.memory_space<vmem>>, vector<16x128xbf16>
      tpu.vector_store %arg12[%c0_54, %c0_55], %128 {strides = array<i32>} : memref<16x128xbf16, #tpu.memory_space<vmem>>, vector<16x128xbf16>,
      %130 = vector.shape_cast %125 : vector<16x1xi1> to vector<16x1xi1>
      %131 = vector.broadcast %130 : vector<16x1xi1> to vector<16x128xi1>
      %132 = arith.select %131, %119, %79 : vector<16x128xi1>, vector<16x128xf32>
      %c0_56 = arith.constant 0 : index
      %c0_57 = arith.constant 0 : index
      %133 = vector.load %arg13[%c0_56, %c0_57] : memref<16x128xf32, #tpu.memory_space<vmem>>, vector<16x128xf32>
      tpu.vector_store %arg13[%c0_56, %c0_57], %132 {strides = array<i32>} : memref<16x128xf32, #tpu.memory_space<vmem>>, vector<16x128xf32>,
      %c2_i32 = arith.constant 2 : i32
      %c0_58 = arith.constant 0 : index
      %c0_59 = arith.constant 0 : index
      %134 = vector.load %arg12[%c0_58, %c0_59] : memref<16x128xbf16, #tpu.memory_space<vmem>>, vector<16x128xbf16>
      %c0_60 = arith.constant 0 : index
      %c0_61 = arith.constant 0 : index
      %135 = vector.load %arg13[%c0_60, %c0_61] : memref<16x128xf32, #tpu.memory_space<vmem>>, vector<16x128xf32>
      %c16_i32_62 = arith.constant 16 : i32
      %136 = arith.muli %c2_i32, %c16_i32_62 : i32
      %137 = tpu.assume_multiple %136, 16 : i32
      %c0_63 = arith.constant 0 : index
      %c0_64 = arith.constant 0 : index
      %138 = vector.load %arg6[%c0_63, %c0_64] : memref<128x512xbf16, #tpu.memory_space<vmem>>, vector<128x512xbf16>
      %cst_65 = arith.constant dense<0.000000e+00> : vector<16x512xf32>
      %139 = tpu.matmul %134, %138, %cst_65 {dimension_numbers = #tpu.dot_dimension_numbers<[1], [0], [0], [1], [0, 0, 1, 1], [], []>} : vector<16x128xbf16>, vector<128x512xbf16>, vector<16x512xf32> -> vector<16x512xf32>
      %140 = arith.index_cast %137 : i32 to index
      %c0_66 = arith.constant 0 : index
      %141 = vector.load %arg11[%140, %c0_66] : memref<128x512xbf16, #tpu.memory_space<vmem>>, vector<16x512xbf16>
      %142 = arith.extf %141 : vector<16x512xbf16> to vector<16x512xf32>
      %143 = arith.addf %139, %142 : vector<16x512xf32>
      %144 = arith.truncf %143 : vector<16x512xf32> to vector<16x512xbf16>
      %145 = vector.extract_strided_slice %144 {offsets = [0, 0], sizes = [16, 128], strides = [1, 1]} : vector<16x512xbf16> to vector<16x128xbf16>
      %cst_67 = arith.constant 5.000000e-01 : bf16
      %146 = vector.broadcast %cst_67 : bf16 to vector<16x128xbf16>
      %147 = arith.mulf %146, %145 : vector<16x128xbf16>
      %148 = math.tanh %147 : vector<16x128xbf16>
      %cst_68 = arith.constant 5.000000e-01 : bf16
      %149 = vector.broadcast %cst_68 : bf16 to vector<16x128xbf16>
      %150 = arith.mulf %149, %148 : vector<16x128xbf16>
      %cst_69 = arith.constant 5.000000e-01 : bf16
      %151 = vector.broadcast %cst_69 : bf16 to vector<16x128xbf16>
      %152 = arith.addf %150, %151 : vector<16x128xbf16>
      %153 = vector.extract_strided_slice %144 {offsets = [0, 128], sizes = [16, 128], strides = [1, 1]} : vector<16x512xbf16> to vector<16x128xbf16>
      %cst_70 = arith.constant 5.000000e-01 : bf16
      %154 = vector.broadcast %cst_70 : bf16 to vector<16x128xbf16>
      %155 = arith.mulf %154, %153 : vector<16x128xbf16>
      %156 = math.tanh %155 : vector<16x128xbf16>
      %cst_71 = arith.constant 5.000000e-01 : bf16
      %157 = vector.broadcast %cst_71 : bf16 to vector<16x128xbf16>
      %158 = arith.mulf %157, %156 : vector<16x128xbf16>
      %cst_72 = arith.constant 5.000000e-01 : bf16
      %159 = vector.broadcast %cst_72 : bf16 to vector<16x128xbf16>
      %160 = arith.addf %158, %159 : vector<16x128xbf16>
      %161 = vector.extract_strided_slice %144 {offsets = [0, 256], sizes = [16, 128], strides = [1, 1]} : vector<16x512xbf16> to vector<16x128xbf16>
      %162 = math.tanh %161 : vector<16x128xbf16>
      %163 = vector.extract_strided_slice %144 {offsets = [0, 384], sizes = [16, 128], strides = [1, 1]} : vector<16x512xbf16> to vector<16x128xbf16>
      %cst_73 = arith.constant 5.000000e-01 : bf16
      %164 = vector.broadcast %cst_73 : bf16 to vector<16x128xbf16>
      %165 = arith.mulf %164, %163 : vector<16x128xbf16>
      %166 = math.tanh %165 : vector<16x128xbf16>
      %cst_74 = arith.constant 5.000000e-01 : bf16
      %167 = vector.broadcast %cst_74 : bf16 to vector<16x128xbf16>
      %168 = arith.mulf %167, %166 : vector<16x128xbf16>
      %cst_75 = arith.constant 5.000000e-01 : bf16
      %169 = vector.broadcast %cst_75 : bf16 to vector<16x128xbf16>
      %170 = arith.addf %168, %169 : vector<16x128xbf16>
      %171 = arith.extf %160 : vector<16x128xbf16> to vector<16x128xf32>
      %172 = arith.mulf %171, %135 : vector<16x128xf32>
      %173 = arith.mulf %152, %162 : vector<16x128xbf16>
      %174 = arith.extf %173 : vector<16x128xbf16> to vector<16x128xf32>
      %175 = arith.addf %172, %174 : vector<16x128xf32>
      %176 = arith.truncf %175 : vector<16x128xf32> to vector<16x128xbf16>
      %177 = math.tanh %176 : vector<16x128xbf16>
      %178 = arith.mulf %170, %177 : vector<16x128xbf16>
      %179 = arith.addi %21, %c2_i32 : i32
      %180 = vector.broadcast %179 : i32 to vector<16x1xi32>
      %181 = arith.cmpi slt, %180, %20 : vector<16x1xi32>
      %182 = vector.shape_cast %181 : vector<16x1xi1> to vector<16x1xi1>
      %183 = vector.broadcast %182 : vector<16x1xi1> to vector<16x128xi1>
      %184 = arith.select %183, %178, %134 : vector<16x128xi1>, vector<16x128xbf16>
      %c0_76 = arith.constant 0 : index
      %c0_77 = arith.constant 0 : index
      %185 = vector.load %arg12[%c0_76, %c0_77] : memref<16x128xbf16, #tpu.memory_space<vmem>>, vector<16x128xbf16>
      tpu.vector_store %arg12[%c0_76, %c0_77], %184 {strides = array<i32>} : memref<16x128xbf16, #tpu.memory_space<vmem>>, vector<16x128xbf16>,
      %186 = vector.shape_cast %181 : vector<16x1xi1> to vector<16x1xi1>
      %187 = vector.broadcast %186 : vector<16x1xi1> to vector<16x128xi1>
      %188 = arith.select %187, %175, %135 : vector<16x128xi1>, vector<16x128xf32>
      %c0_78 = arith.constant 0 : index
      %c0_79 = arith.constant 0 : index
      %189 = vector.load %arg13[%c0_78, %c0_79] : memref<16x128xf32, #tpu.memory_space<vmem>>, vector<16x128xf32>
      tpu.vector_store %arg13[%c0_78, %c0_79], %188 {strides = array<i32>} : memref<16x128xf32, #tpu.memory_space<vmem>>, vector<16x128xf32>,
      %c3_i32 = arith.constant 3 : i32
      %c0_80 = arith.constant 0 : index
      %c0_81 = arith.constant 0 : index
      %190 = vector.load %arg12[%c0_80, %c0_81] : memref<16x128xbf16, #tpu.memory_space<vmem>>, vector<16x128xbf16>
      %c0_82 = arith.constant 0 : index
      %c0_83 = arith.constant 0 : index
      %191 = vector.load %arg13[%c0_82, %c0_83] : memref<16x128xf32, #tpu.memory_space<vmem>>, vector<16x128xf32>
      %c16_i32_84 = arith.constant 16 : i32
      %192 = arith.muli %c3_i32, %c16_i32_84 : i32
      %193 = tpu.assume_multiple %192, 16 : i32
      %c0_85 = arith.constant 0 : index
      %c0_86 = arith.constant 0 : index
      %194 = vector.load %arg6[%c0_85, %c0_86] : memref<128x512xbf16, #tpu.memory_space<vmem>>, vector<128x512xbf16>
      %cst_87 = arith.constant dense<0.000000e+00> : vector<16x512xf32>
      %195 = tpu.matmul %190, %194, %cst_87 {dimension_numbers = #tpu.dot_dimension_numbers<[1], [0], [0], [1], [0, 0, 1, 1], [], []>} : vector<16x128xbf16>, vector<128x512xbf16>, vector<16x512xf32> -> vector<16x512xf32>
      %196 = arith.index_cast %193 : i32 to index
      %c0_88 = arith.constant 0 : index
      %197 = vector.load %arg11[%196, %c0_88] : memref<128x512xbf16, #tpu.memory_space<vmem>>, vector<16x512xbf16>
      %198 = arith.extf %197 : vector<16x512xbf16> to vector<16x512xf32>
      %199 = arith.addf %195, %198 : vector<16x512xf32>
      %200 = arith.truncf %199 : vector<16x512xf32> to vector<16x512xbf16>
      %201 = vector.extract_strided_slice %200 {offsets = [0, 0], sizes = [16, 128], strides = [1, 1]} : vector<16x512xbf16> to vector<16x128xbf16>
      %cst_89 = arith.constant 5.000000e-01 : bf16
      %202 = vector.broadcast %cst_89 : bf16 to vector<16x128xbf16>
      %203 = arith.mulf %202, %201 : vector<16x128xbf16>
      %204 = math.tanh %203 : vector<16x128xbf16>
      %cst_90 = arith.constant 5.000000e-01 : bf16
      %205 = vector.broadcast %cst_90 : bf16 to vector<16x128xbf16>
      %206 = arith.mulf %205, %204 : vector<16x128xbf16>
      %cst_91 = arith.constant 5.000000e-01 : bf16
      %207 = vector.broadcast %cst_91 : bf16 to vector<16x128xbf16>
      %208 = arith.addf %206, %207 : vector<16x128xbf16>
      %209 = vector.extract_strided_slice %200 {offsets = [0, 128], sizes = [16, 128], strides = [1, 1]} : vector<16x512xbf16> to vector<16x128xbf16>
      %cst_92 = arith.constant 5.000000e-01 : bf16
      %210 = vector.broadcast %cst_92 : bf16 to vector<16x128xbf16>
      %211 = arith.mulf %210, %209 : vector<16x128xbf16>
      %212 = math.tanh %211 : vector<16x128xbf16>
      %cst_93 = arith.constant 5.000000e-01 : bf16
      %213 = vector.broadcast %cst_93 : bf16 to vector<16x128xbf16>
      %214 = arith.mulf %213, %212 : vector<16x128xbf16>
      %cst_94 = arith.constant 5.000000e-01 : bf16
      %215 = vector.broadcast %cst_94 : bf16 to vector<16x128xbf16>
      %216 = arith.addf %214, %215 : vector<16x128xbf16>
      %217 = vector.extract_strided_slice %200 {offsets = [0, 256], sizes = [16, 128], strides = [1, 1]} : vector<16x512xbf16> to vector<16x128xbf16>
      %218 = math.tanh %217 : vector<16x128xbf16>
      %219 = vector.extract_strided_slice %200 {offsets = [0, 384], sizes = [16, 128], strides = [1, 1]} : vector<16x512xbf16> to vector<16x128xbf16>
      %cst_95 = arith.constant 5.000000e-01 : bf16
      %220 = vector.broadcast %cst_95 : bf16 to vector<16x128xbf16>
      %221 = arith.mulf %220, %219 : vector<16x128xbf16>
      %222 = math.tanh %221 : vector<16x128xbf16>
      %cst_96 = arith.constant 5.000000e-01 : bf16
      %223 = vector.broadcast %cst_96 : bf16 to vector<16x128xbf16>
      %224 = arith.mulf %223, %222 : vector<16x128xbf16>
      %cst_97 = arith.constant 5.000000e-01 : bf16
      %225 = vector.broadcast %cst_97 : bf16 to vector<16x128xbf16>
      %226 = arith.addf %224, %225 : vector<16x128xbf16>
      %227 = arith.extf %216 : vector<16x128xbf16> to vector<16x128xf32>
      %228 = arith.mulf %227, %191 : vector<16x128xf32>
      %229 = arith.mulf %208, %218 : vector<16x128xbf16>
      %230 = arith.extf %229 : vector<16x128xbf16> to vector<16x128xf32>
      %231 = arith.addf %228, %230 : vector<16x128xf32>
      %232 = arith.truncf %231 : vector<16x128xf32> to vector<16x128xbf16>
      %233 = math.tanh %232 : vector<16x128xbf16>
      %234 = arith.mulf %226, %233 : vector<16x128xbf16>
      %235 = arith.addi %21, %c3_i32 : i32
      %236 = vector.broadcast %235 : i32 to vector<16x1xi32>
      %237 = arith.cmpi slt, %236, %20 : vector<16x1xi32>
      %238 = vector.shape_cast %237 : vector<16x1xi1> to vector<16x1xi1>
      %239 = vector.broadcast %238 : vector<16x1xi1> to vector<16x128xi1>
      %240 = arith.select %239, %234, %190 : vector<16x128xi1>, vector<16x128xbf16>
      %c0_98 = arith.constant 0 : index
      %c0_99 = arith.constant 0 : index
      %241 = vector.load %arg12[%c0_98, %c0_99] : memref<16x128xbf16, #tpu.memory_space<vmem>>, vector<16x128xbf16>
      tpu.vector_store %arg12[%c0_98, %c0_99], %240 {strides = array<i32>} : memref<16x128xbf16, #tpu.memory_space<vmem>>, vector<16x128xbf16>,
      %242 = vector.shape_cast %237 : vector<16x1xi1> to vector<16x1xi1>
      %243 = vector.broadcast %242 : vector<16x1xi1> to vector<16x128xi1>
      %244 = arith.select %243, %231, %191 : vector<16x128xi1>, vector<16x128xf32>
      %c0_100 = arith.constant 0 : index
      %c0_101 = arith.constant 0 : index
      %245 = vector.load %arg13[%c0_100, %c0_101] : memref<16x128xf32, #tpu.memory_space<vmem>>, vector<16x128xf32>
      tpu.vector_store %arg13[%c0_100, %c0_101], %244 {strides = array<i32>} : memref<16x128xf32, #tpu.memory_space<vmem>>, vector<16x128xf32>,
      %c4_i32 = arith.constant 4 : i32
      %c0_102 = arith.constant 0 : index
      %c0_103 = arith.constant 0 : index
      %246 = vector.load %arg12[%c0_102, %c0_103] : memref<16x128xbf16, #tpu.memory_space<vmem>>, vector<16x128xbf16>
      %c0_104 = arith.constant 0 : index
      %c0_105 = arith.constant 0 : index
      %247 = vector.load %arg13[%c0_104, %c0_105] : memref<16x128xf32, #tpu.memory_space<vmem>>, vector<16x128xf32>
      %c16_i32_106 = arith.constant 16 : i32
      %248 = arith.muli %c4_i32, %c16_i32_106 : i32
      %249 = tpu.assume_multiple %248, 16 : i32
      %c0_107 = arith.constant 0 : index
      %c0_108 = arith.constant 0 : index
      %250 = vector.load %arg6[%c0_107, %c0_108] : memref<128x512xbf16, #tpu.memory_space<vmem>>, vector<128x512xbf16>
      %cst_109 = arith.constant dense<0.000000e+00> : vector<16x512xf32>
      %251 = tpu.matmul %246, %250, %cst_109 {dimension_numbers = #tpu.dot_dimension_numbers<[1], [0], [0], [1], [0, 0, 1, 1], [], []>} : vector<16x128xbf16>, vector<128x512xbf16>, vector<16x512xf32> -> vector<16x512xf32>
      %252 = arith.index_cast %249 : i32 to index
      %c0_110 = arith.constant 0 : index
      %253 = vector.load %arg11[%252, %c0_110] : memref<128x512xbf16, #tpu.memory_space<vmem>>, vector<16x512xbf16>
      %254 = arith.extf %253 : vector<16x512xbf16> to vector<16x512xf32>
      %255 = arith.addf %251, %254 : vector<16x512xf32>
      %256 = arith.truncf %255 : vector<16x512xf32> to vector<16x512xbf16>
      %257 = vector.extract_strided_slice %256 {offsets = [0, 0], sizes = [16, 128], strides = [1, 1]} : vector<16x512xbf16> to vector<16x128xbf16>
      %cst_111 = arith.constant 5.000000e-01 : bf16
      %258 = vector.broadcast %cst_111 : bf16 to vector<16x128xbf16>
      %259 = arith.mulf %258, %257 : vector<16x128xbf16>
      %260 = math.tanh %259 : vector<16x128xbf16>
      %cst_112 = arith.constant 5.000000e-01 : bf16
      %261 = vector.broadcast %cst_112 : bf16 to vector<16x128xbf16>
      %262 = arith.mulf %261, %260 : vector<16x128xbf16>
      %cst_113 = arith.constant 5.000000e-01 : bf16
      %263 = vector.broadcast %cst_113 : bf16 to vector<16x128xbf16>
      %264 = arith.addf %262, %263 : vector<16x128xbf16>
      %265 = vector.extract_strided_slice %256 {offsets = [0, 128], sizes = [16, 128], strides = [1, 1]} : vector<16x512xbf16> to vector<16x128xbf16>
      %cst_114 = arith.constant 5.000000e-01 : bf16
      %266 = vector.broadcast %cst_114 : bf16 to vector<16x128xbf16>
      %267 = arith.mulf %266, %265 : vector<16x128xbf16>
      %268 = math.tanh %267 : vector<16x128xbf16>
      %cst_115 = arith.constant 5.000000e-01 : bf16
      %269 = vector.broadcast %cst_115 : bf16 to vector<16x128xbf16>
      %270 = arith.mulf %269, %268 : vector<16x128xbf16>
      %cst_116 = arith.constant 5.000000e-01 : bf16
      %271 = vector.broadcast %cst_116 : bf16 to vector<16x128xbf16>
      %272 = arith.addf %270, %271 : vector<16x128xbf16>
      %273 = vector.extract_strided_slice %256 {offsets = [0, 256], sizes = [16, 128], strides = [1, 1]} : vector<16x512xbf16> to vector<16x128xbf16>
      %274 = math.tanh %273 : vector<16x128xbf16>
      %275 = vector.extract_strided_slice %256 {offsets = [0, 384], sizes = [16, 128], strides = [1, 1]} : vector<16x512xbf16> to vector<16x128xbf16>
      %cst_117 = arith.constant 5.000000e-01 : bf16
      %276 = vector.broadcast %cst_117 : bf16 to vector<16x128xbf16>
      %277 = arith.mulf %276, %275 : vector<16x128xbf16>
      %278 = math.tanh %277 : vector<16x128xbf16>
      %cst_118 = arith.constant 5.000000e-01 : bf16
      %279 = vector.broadcast %cst_118 : bf16 to vector<16x128xbf16>
      %280 = arith.mulf %279, %278 : vector<16x128xbf16>
      %cst_119 = arith.constant 5.000000e-01 : bf16
      %281 = vector.broadcast %cst_119 : bf16 to vector<16x128xbf16>
      %282 = arith.addf %280, %281 : vector<16x128xbf16>
      %283 = arith.extf %272 : vector<16x128xbf16> to vector<16x128xf32>
      %284 = arith.mulf %283, %247 : vector<16x128xf32>
      %285 = arith.mulf %264, %274 : vector<16x128xbf16>
      %286 = arith.extf %285 : vector<16x128xbf16> to vector<16x128xf32>
      %287 = arith.addf %284, %286 : vector<16x128xf32>
      %288 = arith.truncf %287 : vector<16x128xf32> to vector<16x128xbf16>
      %289 = math.tanh %288 : vector<16x128xbf16>
      %290 = arith.mulf %282, %289 : vector<16x128xbf16>
      %291 = arith.addi %21, %c4_i32 : i32
      %292 = vector.broadcast %291 : i32 to vector<16x1xi32>
      %293 = arith.cmpi slt, %292, %20 : vector<16x1xi32>
      %294 = vector.shape_cast %293 : vector<16x1xi1> to vector<16x1xi1>
      %295 = vector.broadcast %294 : vector<16x1xi1> to vector<16x128xi1>
      %296 = arith.select %295, %290, %246 : vector<16x128xi1>, vector<16x128xbf16>
      %c0_120 = arith.constant 0 : index
      %c0_121 = arith.constant 0 : index
      %297 = vector.load %arg12[%c0_120, %c0_121] : memref<16x128xbf16, #tpu.memory_space<vmem>>, vector<16x128xbf16>
      tpu.vector_store %arg12[%c0_120, %c0_121], %296 {strides = array<i32>} : memref<16x128xbf16, #tpu.memory_space<vmem>>, vector<16x128xbf16>,
      %298 = vector.shape_cast %293 : vector<16x1xi1> to vector<16x1xi1>
      %299 = vector.broadcast %298 : vector<16x1xi1> to vector<16x128xi1>
      %300 = arith.select %299, %287, %247 : vector<16x128xi1>, vector<16x128xf32>
      %c0_122 = arith.constant 0 : index
      %c0_123 = arith.constant 0 : index
      %301 = vector.load %arg13[%c0_122, %c0_123] : memref<16x128xf32, #tpu.memory_space<vmem>>, vector<16x128xf32>
      tpu.vector_store %arg13[%c0_122, %c0_123], %300 {strides = array<i32>} : memref<16x128xf32, #tpu.memory_space<vmem>>, vector<16x128xf32>,
      %c5_i32 = arith.constant 5 : i32
      %c0_124 = arith.constant 0 : index
      %c0_125 = arith.constant 0 : index
      %302 = vector.load %arg12[%c0_124, %c0_125] : memref<16x128xbf16, #tpu.memory_space<vmem>>, vector<16x128xbf16>
      %c0_126 = arith.constant 0 : index
      %c0_127 = arith.constant 0 : index
      %303 = vector.load %arg13[%c0_126, %c0_127] : memref<16x128xf32, #tpu.memory_space<vmem>>, vector<16x128xf32>
      %c16_i32_128 = arith.constant 16 : i32
      %304 = arith.muli %c5_i32, %c16_i32_128 : i32
      %305 = tpu.assume_multiple %304, 16 : i32
      %c0_129 = arith.constant 0 : index
      %c0_130 = arith.constant 0 : index
      %306 = vector.load %arg6[%c0_129, %c0_130] : memref<128x512xbf16, #tpu.memory_space<vmem>>, vector<128x512xbf16>
      %cst_131 = arith.constant dense<0.000000e+00> : vector<16x512xf32>
      %307 = tpu.matmul %302, %306, %cst_131 {dimension_numbers = #tpu.dot_dimension_numbers<[1], [0], [0], [1], [0, 0, 1, 1], [], []>} : vector<16x128xbf16>, vector<128x512xbf16>, vector<16x512xf32> -> vector<16x512xf32>
      %308 = arith.index_cast %305 : i32 to index
      %c0_132 = arith.constant 0 : index
      %309 = vector.load %arg11[%308, %c0_132] : memref<128x512xbf16, #tpu.memory_space<vmem>>, vector<16x512xbf16>
      %310 = arith.extf %309 : vector<16x512xbf16> to vector<16x512xf32>
      %311 = arith.addf %307, %310 : vector<16x512xf32>
      %312 = arith.truncf %311 : vector<16x512xf32> to vector<16x512xbf16>
      %313 = vector.extract_strided_slice %312 {offsets = [0, 0], sizes = [16, 128], strides = [1, 1]} : vector<16x512xbf16> to vector<16x128xbf16>
      %cst_133 = arith.constant 5.000000e-01 : bf16
      %314 = vector.broadcast %cst_133 : bf16 to vector<16x128xbf16>
      %315 = arith.mulf %314, %313 : vector<16x128xbf16>
      %316 = math.tanh %315 : vector<16x128xbf16>
      %cst_134 = arith.constant 5.000000e-01 : bf16
      %317 = vector.broadcast %cst_134 : bf16 to vector<16x128xbf16>
      %318 = arith.mulf %317, %316 : vector<16x128xbf16>
      %cst_135 = arith.constant 5.000000e-01 : bf16
      %319 = vector.broadcast %cst_135 : bf16 to vector<16x128xbf16>
      %320 = arith.addf %318, %319 : vector<16x128xbf16>
      %321 = vector.extract_strided_slice %312 {offsets = [0, 128], sizes = [16, 128], strides = [1, 1]} : vector<16x512xbf16> to vector<16x128xbf16>
      %cst_136 = arith.constant 5.000000e-01 : bf16
      %322 = vector.broadcast %cst_136 : bf16 to vector<16x128xbf16>
      %323 = arith.mulf %322, %321 : vector<16x128xbf16>
      %324 = math.tanh %323 : vector<16x128xbf16>
      %cst_137 = arith.constant 5.000000e-01 : bf16
      %325 = vector.broadcast %cst_137 : bf16 to vector<16x128xbf16>
      %326 = arith.mulf %325, %324 : vector<16x128xbf16>
      %cst_138 = arith.constant 5.000000e-01 : bf16
      %327 = vector.broadcast %cst_138 : bf16 to vector<16x128xbf16>
      %328 = arith.addf %326, %327 : vector<16x128xbf16>
      %329 = vector.extract_strided_slice %312 {offsets = [0, 256], sizes = [16, 128], strides = [1, 1]} : vector<16x512xbf16> to vector<16x128xbf16>
      %330 = math.tanh %329 : vector<16x128xbf16>
      %331 = vector.extract_strided_slice %312 {offsets = [0, 384], sizes = [16, 128], strides = [1, 1]} : vector<16x512xbf16> to vector<16x128xbf16>
      %cst_139 = arith.constant 5.000000e-01 : bf16
      %332 = vector.broadcast %cst_139 : bf16 to vector<16x128xbf16>
      %333 = arith.mulf %332, %331 : vector<16x128xbf16>
      %334 = math.tanh %333 : vector<16x128xbf16>
      %cst_140 = arith.constant 5.000000e-01 : bf16
      %335 = vector.broadcast %cst_140 : bf16 to vector<16x128xbf16>
      %336 = arith.mulf %335, %334 : vector<16x128xbf16>
      %cst_141 = arith.constant 5.000000e-01 : bf16
      %337 = vector.broadcast %cst_141 : bf16 to vector<16x128xbf16>
      %338 = arith.addf %336, %337 : vector<16x128xbf16>
      %339 = arith.extf %328 : vector<16x128xbf16> to vector<16x128xf32>
      %340 = arith.mulf %339, %303 : vector<16x128xf32>
      %341 = arith.mulf %320, %330 : vector<16x128xbf16>
      %342 = arith.extf %341 : vector<16x128xbf16> to vector<16x128xf32>
      %343 = arith.addf %340, %342 : vector<16x128xf32>
      %344 = arith.truncf %343 : vector<16x128xf32> to vector<16x128xbf16>
      %345 = math.tanh %344 : vector<16x128xbf16>
      %346 = arith.mulf %338, %345 : vector<16x128xbf16>
      %347 = arith.addi %21, %c5_i32 : i32
      %348 = vector.broadcast %347 : i32 to vector<16x1xi32>
      %349 = arith.cmpi slt, %348, %20 : vector<16x1xi32>
      %350 = vector.shape_cast %349 : vector<16x1xi1> to vector<16x1xi1>
      %351 = vector.broadcast %350 : vector<16x1xi1> to vector<16x128xi1>
      %352 = arith.select %351, %346, %302 : vector<16x128xi1>, vector<16x128xbf16>
      %c0_142 = arith.constant 0 : index
      %c0_143 = arith.constant 0 : index
      %353 = vector.load %arg12[%c0_142, %c0_143] : memref<16x128xbf16, #tpu.memory_space<vmem>>, vector<16x128xbf16>
      tpu.vector_store %arg12[%c0_142, %c0_143], %352 {strides = array<i32>} : memref<16x128xbf16, #tpu.memory_space<vmem>>, vector<16x128xbf16>,
      %354 = vector.shape_cast %349 : vector<16x1xi1> to vector<16x1xi1>
      %355 = vector.broadcast %354 : vector<16x1xi1> to vector<16x128xi1>
      %356 = arith.select %355, %343, %303 : vector<16x128xi1>, vector<16x128xf32>
      %c0_144 = arith.constant 0 : index
      %c0_145 = arith.constant 0 : index
      %357 = vector.load %arg13[%c0_144, %c0_145] : memref<16x128xf32, #tpu.memory_space<vmem>>, vector<16x128xf32>
      tpu.vector_store %arg13[%c0_144, %c0_145], %356 {strides = array<i32>} : memref<16x128xf32, #tpu.memory_space<vmem>>, vector<16x128xf32>,
      %c6_i32 = arith.constant 6 : i32
      %c0_146 = arith.constant 0 : index
      %c0_147 = arith.constant 0 : index
      %358 = vector.load %arg12[%c0_146, %c0_147] : memref<16x128xbf16, #tpu.memory_space<vmem>>, vector<16x128xbf16>
      %c0_148 = arith.constant 0 : index
      %c0_149 = arith.constant 0 : index
      %359 = vector.load %arg13[%c0_148, %c0_149] : memref<16x128xf32, #tpu.memory_space<vmem>>, vector<16x128xf32>
      %c16_i32_150 = arith.constant 16 : i32
      %360 = arith.muli %c6_i32, %c16_i32_150 : i32
      %361 = tpu.assume_multiple %360, 16 : i32
      %c0_151 = arith.constant 0 : index
      %c0_152 = arith.constant 0 : index
      %362 = vector.load %arg6[%c0_151, %c0_152] : memref<128x512xbf16, #tpu.memory_space<vmem>>, vector<128x512xbf16>
      %cst_153 = arith.constant dense<0.000000e+00> : vector<16x512xf32>
      %363 = tpu.matmul %358, %362, %cst_153 {dimension_numbers = #tpu.dot_dimension_numbers<[1], [0], [0], [1], [0, 0, 1, 1], [], []>} : vector<16x128xbf16>, vector<128x512xbf16>, vector<16x512xf32> -> vector<16x512xf32>
      %364 = arith.index_cast %361 : i32 to index
      %c0_154 = arith.constant 0 : index
      %365 = vector.load %arg11[%364, %c0_154] : memref<128x512xbf16, #tpu.memory_space<vmem>>, vector<16x512xbf16>
      %366 = arith.extf %365 : vector<16x512xbf16> to vector<16x512xf32>
      %367 = arith.addf %363, %366 : vector<16x512xf32>
      %368 = arith.truncf %367 : vector<16x512xf32> to vector<16x512xbf16>
      %369 = vector.extract_strided_slice %368 {offsets = [0, 0], sizes = [16, 128], strides = [1, 1]} : vector<16x512xbf16> to vector<16x128xbf16>
      %cst_155 = arith.constant 5.000000e-01 : bf16
      %370 = vector.broadcast %cst_155 : bf16 to vector<16x128xbf16>
      %371 = arith.mulf %370, %369 : vector<16x128xbf16>
      %372 = math.tanh %371 : vector<16x128xbf16>
      %cst_156 = arith.constant 5.000000e-01 : bf16
      %373 = vector.broadcast %cst_156 : bf16 to vector<16x128xbf16>
      %374 = arith.mulf %373, %372 : vector<16x128xbf16>
      %cst_157 = arith.constant 5.000000e-01 : bf16
      %375 = vector.broadcast %cst_157 : bf16 to vector<16x128xbf16>
      %376 = arith.addf %374, %375 : vector<16x128xbf16>
      %377 = vector.extract_strided_slice %368 {offsets = [0, 128], sizes = [16, 128], strides = [1, 1]} : vector<16x512xbf16> to vector<16x128xbf16>
      %cst_158 = arith.constant 5.000000e-01 : bf16
      %378 = vector.broadcast %cst_158 : bf16 to vector<16x128xbf16>
      %379 = arith.mulf %378, %377 : vector<16x128xbf16>
      %380 = math.tanh %379 : vector<16x128xbf16>
      %cst_159 = arith.constant 5.000000e-01 : bf16
      %381 = vector.broadcast %cst_159 : bf16 to vector<16x128xbf16>
      %382 = arith.mulf %381, %380 : vector<16x128xbf16>
      %cst_160 = arith.constant 5.000000e-01 : bf16
      %383 = vector.broadcast %cst_160 : bf16 to vector<16x128xbf16>
      %384 = arith.addf %382, %383 : vector<16x128xbf16>
      %385 = vector.extract_strided_slice %368 {offsets = [0, 256], sizes = [16, 128], strides = [1, 1]} : vector<16x512xbf16> to vector<16x128xbf16>
      %386 = math.tanh %385 : vector<16x128xbf16>
      %387 = vector.extract_strided_slice %368 {offsets = [0, 384], sizes = [16, 128], strides = [1, 1]} : vector<16x512xbf16> to vector<16x128xbf16>
      %cst_161 = arith.constant 5.000000e-01 : bf16
      %388 = vector.broadcast %cst_161 : bf16 to vector<16x128xbf16>
      %389 = arith.mulf %388, %387 : vector<16x128xbf16>
      %390 = math.tanh %389 : vector<16x128xbf16>
      %cst_162 = arith.constant 5.000000e-01 : bf16
      %391 = vector.broadcast %cst_162 : bf16 to vector<16x128xbf16>
      %392 = arith.mulf %391, %390 : vector<16x128xbf16>
      %cst_163 = arith.constant 5.000000e-01 : bf16
      %393 = vector.broadcast %cst_163 : bf16 to vector<16x128xbf16>
      %394 = arith.addf %392, %393 : vector<16x128xbf16>
      %395 = arith.extf %384 : vector<16x128xbf16> to vector<16x128xf32>
      %396 = arith.mulf %395, %359 : vector<16x128xf32>
      %397 = arith.mulf %376, %386 : vector<16x128xbf16>
      %398 = arith.extf %397 : vector<16x128xbf16> to vector<16x128xf32>
      %399 = arith.addf %396, %398 : vector<16x128xf32>
      %400 = arith.truncf %399 : vector<16x128xf32> to vector<16x128xbf16>
      %401 = math.tanh %400 : vector<16x128xbf16>
      %402 = arith.mulf %394, %401 : vector<16x128xbf16>
      %403 = arith.addi %21, %c6_i32 : i32
      %404 = vector.broadcast %403 : i32 to vector<16x1xi32>
      %405 = arith.cmpi slt, %404, %20 : vector<16x1xi32>
      %406 = vector.shape_cast %405 : vector<16x1xi1> to vector<16x1xi1>
      %407 = vector.broadcast %406 : vector<16x1xi1> to vector<16x128xi1>
      %408 = arith.select %407, %402, %358 : vector<16x128xi1>, vector<16x128xbf16>
      %c0_164 = arith.constant 0 : index
      %c0_165 = arith.constant 0 : index
      %409 = vector.load %arg12[%c0_164, %c0_165] : memref<16x128xbf16, #tpu.memory_space<vmem>>, vector<16x128xbf16>
      tpu.vector_store %arg12[%c0_164, %c0_165], %408 {strides = array<i32>} : memref<16x128xbf16, #tpu.memory_space<vmem>>, vector<16x128xbf16>,
      %410 = vector.shape_cast %405 : vector<16x1xi1> to vector<16x1xi1>
      %411 = vector.broadcast %410 : vector<16x1xi1> to vector<16x128xi1>
      %412 = arith.select %411, %399, %359 : vector<16x128xi1>, vector<16x128xf32>
      %c0_166 = arith.constant 0 : index
      %c0_167 = arith.constant 0 : index
      %413 = vector.load %arg13[%c0_166, %c0_167] : memref<16x128xf32, #tpu.memory_space<vmem>>, vector<16x128xf32>
      tpu.vector_store %arg13[%c0_166, %c0_167], %412 {strides = array<i32>} : memref<16x128xf32, #tpu.memory_space<vmem>>, vector<16x128xf32>,
      %c7_i32 = arith.constant 7 : i32
      %c0_168 = arith.constant 0 : index
      %c0_169 = arith.constant 0 : index
      %414 = vector.load %arg12[%c0_168, %c0_169] : memref<16x128xbf16, #tpu.memory_space<vmem>>, vector<16x128xbf16>
      %c0_170 = arith.constant 0 : index
      %c0_171 = arith.constant 0 : index
      %415 = vector.load %arg13[%c0_170, %c0_171] : memref<16x128xf32, #tpu.memory_space<vmem>>, vector<16x128xf32>
      %c16_i32_172 = arith.constant 16 : i32
      %416 = arith.muli %c7_i32, %c16_i32_172 : i32
      %417 = tpu.assume_multiple %416, 16 : i32
      %c0_173 = arith.constant 0 : index
      %c0_174 = arith.constant 0 : index
      %418 = vector.load %arg6[%c0_173, %c0_174] : memref<128x512xbf16, #tpu.memory_space<vmem>>, vector<128x512xbf16>
      %cst_175 = arith.constant dense<0.000000e+00> : vector<16x512xf32>
      %419 = tpu.matmul %414, %418, %cst_175 {dimension_numbers = #tpu.dot_dimension_numbers<[1], [0], [0], [1], [0, 0, 1, 1], [], []>} : vector<16x128xbf16>, vector<128x512xbf16>, vector<16x512xf32> -> vector<16x512xf32>
      %420 = arith.index_cast %417 : i32 to index
      %c0_176 = arith.constant 0 : index
      %421 = vector.load %arg11[%420, %c0_176] : memref<128x512xbf16, #tpu.memory_space<vmem>>, vector<16x512xbf16>
      %422 = arith.extf %421 : vector<16x512xbf16> to vector<16x512xf32>
      %423 = arith.addf %419, %422 : vector<16x512xf32>
      %424 = arith.truncf %423 : vector<16x512xf32> to vector<16x512xbf16>
      %425 = vector.extract_strided_slice %424 {offsets = [0, 0], sizes = [16, 128], strides = [1, 1]} : vector<16x512xbf16> to vector<16x128xbf16>
      %cst_177 = arith.constant 5.000000e-01 : bf16
      %426 = vector.broadcast %cst_177 : bf16 to vector<16x128xbf16>
      %427 = arith.mulf %426, %425 : vector<16x128xbf16>
      %428 = math.tanh %427 : vector<16x128xbf16>
      %cst_178 = arith.constant 5.000000e-01 : bf16
      %429 = vector.broadcast %cst_178 : bf16 to vector<16x128xbf16>
      %430 = arith.mulf %429, %428 : vector<16x128xbf16>
      %cst_179 = arith.constant 5.000000e-01 : bf16
      %431 = vector.broadcast %cst_179 : bf16 to vector<16x128xbf16>
      %432 = arith.addf %430, %431 : vector<16x128xbf16>
      %433 = vector.extract_strided_slice %424 {offsets = [0, 128], sizes = [16, 128], strides = [1, 1]} : vector<16x512xbf16> to vector<16x128xbf16>
      %cst_180 = arith.constant 5.000000e-01 : bf16
      %434 = vector.broadcast %cst_180 : bf16 to vector<16x128xbf16>
      %435 = arith.mulf %434, %433 : vector<16x128xbf16>
      %436 = math.tanh %435 : vector<16x128xbf16>
      %cst_181 = arith.constant 5.000000e-01 : bf16
      %437 = vector.broadcast %cst_181 : bf16 to vector<16x128xbf16>
      %438 = arith.mulf %437, %436 : vector<16x128xbf16>
      %cst_182 = arith.constant 5.000000e-01 : bf16
      %439 = vector.broadcast %cst_182 : bf16 to vector<16x128xbf16>
      %440 = arith.addf %438, %439 : vector<16x128xbf16>
      %441 = vector.extract_strided_slice %424 {offsets = [0, 256], sizes = [16, 128], strides = [1, 1]} : vector<16x512xbf16> to vector<16x128xbf16>
      %442 = math.tanh %441 : vector<16x128xbf16>
      %443 = vector.extract_strided_slice %424 {offsets = [0, 384], sizes = [16, 128], strides = [1, 1]} : vector<16x512xbf16> to vector<16x128xbf16>
      %cst_183 = arith.constant 5.000000e-01 : bf16
      %444 = vector.broadcast %cst_183 : bf16 to vector<16x128xbf16>
      %445 = arith.mulf %444, %443 : vector<16x128xbf16>
      %446 = math.tanh %445 : vector<16x128xbf16>
      %cst_184 = arith.constant 5.000000e-01 : bf16
      %447 = vector.broadcast %cst_184 : bf16 to vector<16x128xbf16>
      %448 = arith.mulf %447, %446 : vector<16x128xbf16>
      %cst_185 = arith.constant 5.000000e-01 : bf16
      %449 = vector.broadcast %cst_185 : bf16 to vector<16x128xbf16>
      %450 = arith.addf %448, %449 : vector<16x128xbf16>
      %451 = arith.extf %440 : vector<16x128xbf16> to vector<16x128xf32>
      %452 = arith.mulf %451, %415 : vector<16x128xf32>
      %453 = arith.mulf %432, %442 : vector<16x128xbf16>
      %454 = arith.extf %453 : vector<16x128xbf16> to vector<16x128xf32>
      %455 = arith.addf %452, %454 : vector<16x128xf32>
      %456 = arith.truncf %455 : vector<16x128xf32> to vector<16x128xbf16>
      %457 = math.tanh %456 : vector<16x128xbf16>
      %458 = arith.mulf %450, %457 : vector<16x128xbf16>
      %459 = arith.addi %21, %c7_i32 : i32
      %460 = vector.broadcast %459 : i32 to vector<16x1xi32>
      %461 = arith.cmpi slt, %460, %20 : vector<16x1xi32>
      %462 = vector.shape_cast %461 : vector<16x1xi1> to vector<16x1xi1>
      %463 = vector.broadcast %462 : vector<16x1xi1> to vector<16x128xi1>
      %464 = arith.select %463, %458, %414 : vector<16x128xi1>, vector<16x128xbf16>
      %c0_186 = arith.constant 0 : index
      %c0_187 = arith.constant 0 : index
      %465 = vector.load %arg12[%c0_186, %c0_187] : memref<16x128xbf16, #tpu.memory_space<vmem>>, vector<16x128xbf16>
      tpu.vector_store %arg12[%c0_186, %c0_187], %464 {strides = array<i32>} : memref<16x128xbf16, #tpu.memory_space<vmem>>, vector<16x128xbf16>,
      %466 = vector.shape_cast %461 : vector<16x1xi1> to vector<16x1xi1>
      %467 = vector.broadcast %466 : vector<16x1xi1> to vector<16x128xi1>
      %468 = arith.select %467, %455, %415 : vector<16x128xi1>, vector<16x128xf32>
      %c0_188 = arith.constant 0 : index
      %c0_189 = arith.constant 0 : index
      %469 = vector.load %arg13[%c0_188, %c0_189] : memref<16x128xf32, #tpu.memory_space<vmem>>, vector<16x128xf32>
      tpu.vector_store %arg13[%c0_188, %c0_189], %468 {strides = array<i32>} : memref<16x128xf32, #tpu.memory_space<vmem>>, vector<16x128xf32>,
      %c8_i32_190 = arith.constant 8 : i32
    } else {
    }
    %c0_i32_2 = arith.constant 0 : i32
    %8 = arith.cmpi eq, %arg1, %c0_i32_2 : i32
    %9 = arith.extui %8 : i1 to i32
    %c0_i32_3 = arith.constant 0 : i32
    %10 = arith.cmpi ne, %9, %c0_i32_3 : i32
    scf.if %10 {
      %c0 = arith.constant 0 : index
      %c0_4 = arith.constant 0 : index
      %11 = vector.load %arg12[%c0, %c0_4] : memref<16x128xbf16, #tpu.memory_space<vmem>>, vector<16x128xbf16>
      %c0_5 = arith.constant 0 : index
      %c0_6 = arith.constant 0 : index
      %12 = vector.load %arg8[%c0_5, %c0_6] : memref<128x128xbf16, #tpu.memory_space<vmem>>, vector<128x128xbf16>
      %cst = arith.constant dense<0.000000e+00> : vector<16x128xf32>
      %13 = tpu.matmul %11, %12, %cst {dimension_numbers = #tpu.dot_dimension_numbers<[1], [0], [0], [1], [0, 0, 1, 1], [], []>} : vector<16x128xbf16>, vector<128x128xbf16>, vector<16x128xf32> -> vector<16x128xf32>
      %c0_7 = arith.constant 0 : index
      %c0_8 = arith.constant 0 : index
      %14 = vector.load %arg9[%c0_7, %c0_8] : memref<1x128xf32, #tpu.memory_space<vmem>>, vector<1x128xf32>
      %15 = vector.broadcast %14 : vector<1x128xf32> to vector<16x128xf32>
      %16 = arith.addf %13, %15 : vector<16x128xf32>
      %c0_9 = arith.constant 0 : index
      %c0_10 = arith.constant 0 : index
      %17 = vector.load %arg10[%c0_9, %c0_10] : memref<16x128xf32, #tpu.memory_space<vmem>>, vector<16x128xf32>
      tpu.vector_store %arg10[%c0_9, %c0_10], %16 {strides = array<i32>} : memref<16x128xf32, #tpu.memory_space<vmem>>, vector<16x128xf32>,
    } else {
    }
    return
  }
  func.func @transform_0(%arg0: i32, %arg1: i32, %arg2: memref<1xi32, #tpu.memory_space<smem>>) -> (i32, i32) {
    %c0_i32 = arith.constant 0 : i32
    %c0_i32_0 = arith.constant 0 : i32
    return %arg0, %c0_i32 : i32, i32
  }
  func.func @transform_1(%arg0: i32, %arg1: i32, %arg2: memref<1xi32, #tpu.memory_space<smem>>) -> (i32, i32, i32) {
    %0 = arith.index_cast %arg0 : i32 to index
    %1 = memref.load %arg2[%0] : memref<1xi32, #tpu.memory_space<smem>>
    %2 = arith.minsi %arg1, %1 : i32
    %c0_i32 = arith.constant 0 : i32
    %c0_i32_0 = arith.constant 0 : i32
    return %2, %arg0, %c0_i32 : i32, i32, i32
  }
  func.func @transform_2(%arg0: i32, %arg1: i32, %arg2: memref<1xi32, #tpu.memory_space<smem>>) -> (i32, i32) {
    %c0_i32 = arith.constant 0 : i32
    %c0_i32_0 = arith.constant 0 : i32
    %c0_i32_1 = arith.constant 0 : i32
    return %c0_i32, %c0_i32_0 : i32, i32
  }
  func.func @transform_3(%arg0: i32, %arg1: i32, %arg2: memref<1xi32, #tpu.memory_space<smem>>) -> (i32, i32) {
    %c0_i32 = arith.constant 0 : i32
    %c0_i32_0 = arith.constant 0 : i32
    %c0_i32_1 = arith.constant 0 : i32
    return %c0_i32, %c0_i32_0 : i32, i32
  }
  func.func @transform_4(%arg0: i32, %arg1: i32, %arg2: memref<1xi32, #tpu.memory_space<smem>>) -> (i32, i32) {
    %c0_i32 = arith.constant 0 : i32
    %c0_i32_0 = arith.constant 0 : i32
    %c0_i32_1 = arith.constant 0 : i32
    return %c0_i32, %c0_i32_0 : i32, i32
  }
  func.func @transform_5(%arg0: i32, %arg1: i32, %arg2: memref<1xi32, #tpu.memory_space<smem>>) -> (i32, i32) {
    %c0_i32 = arith.constant 0 : i32
    %c0_i32_0 = arith.constant 0 : i32
    %c0_i32_1 = arith.constant 0 : i32
    return %c0_i32, %c0_i32_0 : i32, i32
  }
  func.func @transform_6(%arg0: i32, %arg1: i32, %arg2: memref<1xi32, #tpu.memory_space<smem>>) -> (i32, i32) {
    %c0_i32 = arith.constant 0 : i32
    %c0_i32_0 = arith.constant 0 : i32
    %c0_i32_1 = arith.constant 0 : i32
    return %c0_i32, %c0_i32_0 : i32, i32
  }
  func.func @transform_7(%arg0: i32, %arg1: i32, %arg2: memref<1xi32, #tpu.memory_space<smem>>) -> (i32, i32) {
    %c0_i32 = arith.constant 0 : i32
    %c0_i32_0 = arith.constant 0 : i32
    return %arg0, %c0_i32 : i32, i32
  }
}

</mosaic_0001>

<bundles_post_ra>
// kernel: seq_lstm_forward.1
= control target key start
LH: loop header
LB: loop body
LE: loop exit
PB: predicated region body
PF: predicated region fallthrough
CT: control target
= control target key end

     0   :  { %v4267_v0 = vmov 0   ;;  %v5638_v1 = vmov 0.0   ;;  %s5629_s0 = inlined_call_operand.<no memory space> [shape: s32[1], index: 0, kind: input, shape index: {}]   ;;  %s5630_s1 = inlined_call_operand.vmem [shape: s32[16,1], index: 1, kind: input, shape index: {}]   ;;  %s5631_s3 = inlined_call_operand.vmem [shape: bf16[128,512], index: 3, kind: input, shape index: {}]   ;;  %s5632_s4 = inlined_call_operand.vmem [shape: bf16[128,512], index: 4, kind: input, shape index: {}]   ;;  %s5633_s5 = inlined_call_operand.vmem [shape: f32[1,512], index: 5, kind: input, shape index: {}]   ;;  %s5634_s6 = inlined_call_operand.vmem [shape: bf16[128,128], index: 6, kind: input, shape index: {}]   ;;  %s5635_s7 = inlined_call_operand.vmem [shape: f32[1,128], index: 7, kind: input, shape index: {}]   ;;  %s5636_s8 = inlined_call_operand.vmem [shape: f32[16,128], index: 8, kind: output, shape index: {}]   ;;  %s5637_s2 = inlined_call_operand.vmem [shape: bf16[8,16,128], index: 2, kind: input, shape index: {}]  }
   0x1   :  { %p3608_p0 = scmp.gt.s32.totalorder %s5629_s0, 0  ;;  %71 = vst [vmem:[#allocation3] sm:$0xff] %v4267_v0  ;;  %72 = vst [vmem:[#allocation4] sm:$0xff] %v5638_v1  ;;  %p3613_p2 = scmp.lt.s32.totalorder %s5629_s0, 0 }
   0x2   :  { %73 = vst [vmem:[#allocation4 + $0x8] sm:$0xff] %v5638_v1 }
   0x3   :  { %s52_s9 = scalar_select %p3608_p0, 0, %s5629_s0 }
   0x4   :  { %78 = sbr.rel (%p3613_p2) target bundleno = 2191 (0x88f), region = 37 }
   0x5   :  { %s3609_s10 = sshll.u32 %s52_s9, 3 }
   0x6   :  { %p54_p1 = scmp.lt.s32.totalorder %s3609_s10, 7 }
   0x8   :  { %s5729_s10 = smov (!%p54_p1, %s3609_s10), 7 }
   0x9   :  { %s3943_s11 = sshll.u32 %s5729_s10, 3 }
   0xa   :  { %s4327_s14 = scalar_lea.vmem %s5637_s2, %s3943_s11 }
   0xb   :  { %v3979_v2 = vld [vmem:[%s5631_s3 + $0x4] ss:$16 sps:$4 sm:$0xff]   ;;  %v3981_v3 = vld [vmem:[%s5631_s3 + $0xc] ss:$16 sps:$4 sm:$0xff]   ;;  %v5640_v4 = vmov 0  }
   0xc   :  { %389 = vmatprep.mubr.bf16.mxu0 %v5640_v4  ;;  %502 = vmatprep.mubr.bf16.mxu1 %v5640_v4  ;;  %v3983_v5 = vld [vmem:[%s5631_s3] ss:$16 sps:$4 sm:$0xff]   ;;  %v3984_v6 = vld [vmem:[%s5631_s3 + $0x8] ss:$16 sps:$4 sm:$0xff]   ;;  %v3985_v7 = vld [vmem:[%s5631_s3 + $0x24] ss:$16 sps:$4 sm:$0xff]  }
   0xd   :  { %357 = vmatprep.subr.bf16.mxu0 %v3979_v2  ;;  %3978 = vset.pattern.permute.xlu1 %v5640_v4  ;;  %v3987_v8 = vld [vmem:[%s5631_s3 + $0x2c] ss:$16 sps:$4 sm:$0xff]   ;;  %v3989_v9 = vld [vmem:[%s5631_s3 + $0x20] ss:$16 sps:$4 sm:$0xff]   ;;  %v3990_v10 = vld [vmem:[%s5631_s3 + $0x28] ss:$16 sps:$4 sm:$0xff]  }
   0xe   :  { %470 = vmatprep.subr.bf16.mxu1 %v3981_v3  ;;  %3977 = vset.pattern.permute.xlu0 %v5640_v4  ;;  %v3991_v11 = vld [vmem:[%s5631_s3 + $0x44] ss:$16 sps:$4 sm:$0xff]   ;;  %v3993_v12 = vld [vmem:[%s5631_s3 + $0x4c] ss:$16 sps:$4 sm:$0xff]   ;;  %v3995_v13 = vld [vmem:[%s5631_s3 + $0x40] ss:$16 sps:$4 sm:$0xff]  }
   0xf   :  { %358 = vmatpush1.bf16.msra.mxu0 %v3983_v5  ;;  %471 = vmatpush1.bf16.msra.mxu1 %v3984_v6  ;;  %v3996_v14 = vld [vmem:[%s5631_s3 + $0x48] ss:$16 sps:$4 sm:$0xff]   ;;  %v3997_v15 = vld [vmem:[%s5631_s3 + $0x64] ss:$16 sps:$4 sm:$0xff]   ;;  %v3999_v16 = vld [vmem:[%s5631_s3 + $0x6c] ss:$16 sps:$4 sm:$0xff]  }
  0x10   :  { %359 = vmatprep.subr.bf16.mxu0 %v3985_v7  ;;  %472 = vmatprep.subr.bf16.mxu1 %v3987_v8  ;;  %v4001_v17 = vld [vmem:[%s5631_s3 + $0x60] ss:$16 sps:$4 sm:$0xff]   ;;  %v4002_v18 = vld [vmem:[%s5631_s3 + $0x68] ss:$16 sps:$4 sm:$0xff]   ;;  %v4003_v19 = vld [vmem:[%s5631_s3 + $0x84] ss:$16 sps:$4 sm:$0xff]  }
  0x11   :  { %v4005_v20 = vld [vmem:[%s5631_s3 + $0x8c] ss:$16 sps:$4 sm:$0xff]   ;;  %v4007_v21 = vld [vmem:[%s5631_s3 + $0x80] ss:$16 sps:$4 sm:$0xff]   ;;  %v4008_v22 = vld [vmem:[%s5631_s3 + $0x88] ss:$16 sps:$4 sm:$0xff]  }
  0x12   :  { %v4009_v23 = vld [vmem:[%s5631_s3 + $0xa4] ss:$16 sps:$4 sm:$0xff]   ;;  %v4011_v24 = vld [vmem:[%s5631_s3 + $0xac] ss:$16 sps:$4 sm:$0xff]   ;;  %v4013_v25 = vld [vmem:[%s5631_s3 + $0xa0] ss:$16 sps:$4 sm:$0xff]  }
  0x13   :  { %360 = vmatpush1.bf16.msra.mxu0 %v3989_v9  ;;  %473 = vmatpush1.bf16.msra.mxu1 %v3990_v10  ;;  %v4014_v26 = vld [vmem:[%s5631_s3 + $0xa8] ss:$16 sps:$4 sm:$0xff]   ;;  %v4015_v27 = vld [vmem:[%s5631_s3 + $0xc4] ss:$16 sps:$4 sm:$0xff]   ;;  %v4017_v28 = vld [vmem:[%s5631_s3 + $0xcc] ss:$16 sps:$4 sm:$0xff]  }
  0x14   :  { %361 = vmatprep.subr.bf16.mxu0 %v3991_v11  ;;  %474 = vmatprep.subr.bf16.mxu1 %v3993_v12  ;;  %v4019_v29 = vld [vmem:[%s5631_s3 + $0xc0] ss:$16 sps:$4 sm:$0xff]   ;;  %v4020_v30 = vld [vmem:[%s5631_s3 + $0xc8] ss:$16 sps:$4 sm:$0xff]   ;;  %v4021_v31 = vld [vmem:[%s5631_s3 + $0xe4] ss:$16 sps:$4 sm:$0xff]  }
  0x15   :  { %v4023_v32 = vld [vmem:[%s5631_s3 + $0xec] ss:$16 sps:$4 sm:$0xff]   ;;  %v4025_v33 = vld [vmem:[%s5631_s3 + $0xe0] ss:$16 sps:$4 sm:$0xff]   ;;  %v4026_v34 = vld [vmem:[%s5631_s3 + $0xe8] ss:$16 sps:$4 sm:$0xff]  }
  0x16   :  { %v4435_v35 = vld [vmem:[%s5632_s4 + $0x4] ss:$16 sps:$4 sm:$0xff]   ;;  %v4440_v36 = vld [vmem:[%s5632_s4 + $0xc] ss:$16 sps:$4 sm:$0xff]   ;;  %v4446_v38 = vld [vmem:[%s5632_s4] ss:$16 sps:$4 sm:$0xff]  }
  0x17   :  { %362 = vmatpush1.bf16.msra.mxu0 %v3995_v13  ;;  %475 = vmatpush1.bf16.msra.mxu1 %v3996_v14  ;;  %v4027_v37 = vld [vmem:[%s4327_s14] sm:$0xff]   ;;  %v4458_v40 = vld [vmem:[%s5632_s4 + $0x8] ss:$16 sps:$4 sm:$0xff]   ;;  %v4463_v41 = vld [vmem:[%s5632_s4 + $0x2c] ss:$16 sps:$4 sm:$0xff]  }
  0x18   :  { %363 = vmatprep.subr.bf16.mxu0 %v3997_v15  ;;  %476 = vmatprep.subr.bf16.mxu1 %v3999_v16  ;;  %v4453_v39 = vld [vmem:[%s5632_s4 + $0x24] ss:$16 sps:$4 sm:$0xff]   ;;  %v4470_v42 = vld [vmem:[%s5632_s4 + $0x20] ss:$16 sps:$4 sm:$0xff]   ;;  %v4483_v44 = vld [vmem:[%s5632_s4 + $0x28] ss:$16 sps:$4 sm:$0xff]  }
  0x19   :  { %v4477_v43 = vld [vmem:[%s5632_s4 + $0x44] ss:$16 sps:$4 sm:$0xff]   ;;  %v4034_v45 = vld [vmem:[%s4327_s14 + $0x8] sm:$0xff]   ;;  %v4491_v46 = vld [vmem:[%s5632_s4 + $0x40] ss:$16 sps:$4 sm:$0xff]  }
  0x1a   :  { %v4497_v47 = vld [vmem:[%s5632_s4 + $0x48] ss:$16 sps:$4 sm:$0xff]   ;;  %v4502_v48 = vld [vmem:[%s5632_s4 + $0x4c] ss:$16 sps:$4 sm:$0xff]   ;;  %v4508_v49 = vld [vmem:[%s5632_s4 + $0x64] ss:$16 sps:$4 sm:$0xff]  }
  0x1b   :  { %364 = vmatpush1.bf16.msra.mxu0 %v4001_v17  ;;  %477 = vmatpush1.bf16.msra.mxu1 %v4002_v18  ;;  %v4513_v50 = vld [vmem:[%s5632_s4 + $0x6c] ss:$16 sps:$4 sm:$0xff]   ;;  %v4522_v51 = vld [vmem:[%s5632_s4 + $0x60] ss:$16 sps:$4 sm:$0xff]   ;;  %v4529_v52 = vld [vmem:[%s5632_s4 + $0x68] ss:$16 sps:$4 sm:$0xff]  }
  0x1c   :  { %365 = vmatprep.subr.bf16.mxu0 %v4003_v19  ;;  %478 = vmatprep.subr.bf16.mxu1 %v4005_v20  ;;  %v4534_v53 = vld [vmem:[%s5632_s4 + $0x84] ss:$16 sps:$4 sm:$0xff]   ;;  %v4541_v55 = vld [vmem:[%s5632_s4 + $0x80] ss:$16 sps:$4 sm:$0xff]   ;;  %v4547_v56 = vld [vmem:[%s5632_s4 + $0x8c] ss:$16 sps:$4 sm:$0xff]  }
  0x1d   :  { %v4041_v54 = vld [vmem:[%s4327_s14 + $0x10] sm:$0xff]   ;;  %v4554_v57 = vld [vmem:[%s5632_s4 + $0x88] ss:$16 sps:$4 sm:$0xff]   ;;  %v4569_v60 = vld [vmem:[%s5632_s4 + $0xac] ss:$16 sps:$4 sm:$0xff]  }
  0x1e   :  { %v4559_v58 = vld [vmem:[%s5632_s4 + $0xa4] ss:$16 sps:$4 sm:$0xff]   ;;  %v4564_v59 = vld [vmem:[%s5632_s4 + $0xa0] ss:$16 sps:$4 sm:$0xff]   ;;  %v4581_v62 = vld [vmem:[%s5632_s4 + $0xa8] ss:$16 sps:$4 sm:$0xff]  }
  0x1f   :  { %366 = vmatpush1.bf16.msra.mxu0 %v4007_v21  ;;  %479 = vmatpush1.bf16.msra.mxu1 %v4008_v22  ;;  %v4574_v61 = vld [vmem:[%s5630_s1] sm:$0xff]  ;;  %v4048_v63 = vld [vmem:[%s4327_s14 + $0x18] sm:$0xff]   ;;  %v4600_v5 = vld [vmem:[%s5630_s1 + $0x8] sm:$0xff] }
  0x20   :  { %367 = vmatprep.subr.bf16.mxu0 %v4009_v23  ;;  %480 = vmatprep.subr.bf16.mxu1 %v4011_v24  ;;  %vm3721_vm0 = vcmp.gt.s32.totalorder %v4574_v61, 1  ;;  %vm3686_vm1 = vcmp.gt.s32.totalorder %v4574_v61, 0  ;;  %v4591_v0 = vld [vmem:[%s5632_s4 + $0xc4] ss:$16 sps:$4 sm:$0xff]   ;;  %v4606_v6 = vld [vmem:[%s5632_s4 + $0xc0] ss:$16 sps:$4 sm:$0xff]  }
  0x21   :  { %v1331_v2 = vsel %vm3721_vm0, 1, %v5640_v4  ;;  %v978_v3 = vsel %vm3686_vm1, 1, %v5640_v4  ;;  %v4611_v7 = vld [vmem:[%s5632_s4 + $0xc8] ss:$16 sps:$4 sm:$0xff]   ;;  %v4617_v8 = vld [vmem:[%s5632_s4 + $0xcc] ss:$16 sps:$4 sm:$0xff]  }
  0x22   :  { %1334 = vperm.xlu1 %3978, %v1331_v2   ;;  %981 = vperm.xlu0 %3977, %v978_v3   ;;  %vm3722_vm2 = vcmp.gt.s32.totalorder %v4600_v5, 1  ;;  %v4625_v9 = vld [vmem:[%s5632_s4 + $0xe4] ss:$16 sps:$4 sm:$0xff]   ;;  %vm3687_vm3 = vcmp.gt.s32.totalorder %v4600_v5, 0  ;;  %v4631_v10 = vld [vmem:[%s5632_s4 + $0xe0] ss:$16 sps:$4 sm:$0xff]  }
  0x23   :  { %368 = vmatpush1.bf16.msra.mxu0 %v4013_v25  ;;  %481 = vmatpush1.bf16.msra.mxu1 %v4014_v26  ;;  %v4636_v11 = vld [vmem:[%s5632_s4 + $0xec] ss:$16 sps:$4 sm:$0xff]   ;;  %v4643_v12 = vld [vmem:[%s5632_s4 + $0xe8] ss:$16 sps:$4 sm:$0xff]   ;;  %v1332_v13 = vsel %vm3722_vm2, 1, %v5640_v4  ;;  %v4055_v14 = vld [vmem:[%s4327_s14 + $0x20] sm:$0xff]  }
  0x24   :  { %369 = vmatprep.subr.bf16.mxu0 %v4015_v27  ;;  %482 = vmatprep.subr.bf16.mxu1 %v4017_v28  ;;  %v979_v15 = vsel %vm3687_vm3, 1, %v5640_v4  ;;  %vm3757_vm4 = vcmp.gt.s32.totalorder %v4600_v5, 2  ;;  %vm3756_vm5 = vcmp.gt.s32.totalorder %v4574_v61, 2  ;;  %vm3792_vm6 = vcmp.gt.s32.totalorder %v4600_v5, 3  ;;  %v4062_v18 = vld [vmem:[%s4327_s14 + $0x28] sm:$0xff]   ;;  %v4069_v25 = vld [vmem:[%s4327_s14 + $0x30] sm:$0xff]  }
  0x25   :  { %v1685_v16 = vsel %vm3757_vm4, 1, %v5640_v4  ;;  %v1684_v17 = vsel %vm3756_vm5, 1, %v5640_v4  ;;  %vm3791_vm7 = vcmp.gt.s32.totalorder %v4574_v61, 3  ;;  %v2038_v19 = vsel %vm3792_vm6, 1, %v5640_v4  ;;  %v5070_v1 = vld [vmem:[%s5632_s4 + $0xc8] ss:$16 sps:$4 sm:$0xff]  }
  0x26   :  { %1337 = vperm.xlu1 %3978, %v1332_v13   ;;  %984 = vperm.xlu0 %3977, %v979_v15   ;;  %v2037_v20 = vsel %vm3791_vm7, 1, %v5640_v4  ;;  %vm3827_vm8 = vcmp.gt.s32.totalorder %v4600_v5, 4  ;;  %vm3826_vm9 = vcmp.gt.s32.totalorder %v4574_v61, 4  ;;  %vm3862_vm10 = vcmp.gt.s32.totalorder %v4600_v5, 5 }
  0x27   :  { %370 = vmatpush1.bf16.msra.mxu0 %v4019_v29  ;;  %483 = vmatpush1.bf16.msra.mxu1 %v4020_v30  ;;  %v2391_v21 = vsel %vm3827_vm8, 1, %v5640_v4  ;;  %v2390_v22 = vsel %vm3826_vm9, 1, %v5640_v4  ;;  %vm3861_vm11 = vcmp.gt.s32.totalorder %v4574_v61, 5  ;;  %v2744_v23 = vsel %vm3862_vm10, 1, %v5640_v4  ;;  %v4076_v30 = vld [vmem:[%s4327_s14 + $0x38] sm:$0xff]  }
  0x28   :  { %371 = vmatprep.subr.bf16.mxu0 %v4021_v31  ;;  %484 = vmatprep.subr.bf16.mxu1 %v4023_v32  ;;  %v2743_v24 = vsel %vm3861_vm11, 1, %v5640_v4  ;;  %vm3897_vm12 = vcmp.gt.s32.totalorder %v4600_v5, 6  ;;  %vm3896_vm13 = vcmp.gt.s32.totalorder %v4574_v61, 6  ;;  %vm3932_vm14 = vcmp.gt.s32.totalorder %v4600_v5, 7  ;;  %v4692_v31 = vld [vmem:[#allocation3] sm:$0xff] }
  0x29   :  { %v3097_v26 = vsel %vm3897_vm12, 1, %v5640_v4  ;;  %v3096_v27 = vsel %vm3896_vm13, 1, %v5640_v4  ;;  %vm3931_vm15 = vcmp.gt.s32.totalorder %v4574_v61, 7  ;;  %v3450_v28 = vsel %vm3932_vm14, 1, %v5640_v4 }
  0x2a   :  { %1690 = vperm.xlu1 %3978, %v1685_v16   ;;  %1687 = vperm.xlu0 %3977, %v1684_v17   ;;  %v3449_v29 = vsel %vm3931_vm15, 1, %v5640_v4  ;;  %v129_v32 = vlaneseq }
  0x2b   :  { %372 = vmatpush1.bf16.msra.mxu0 %v4025_v33  ;;  %485 = vmatpush1.bf16.msra.mxu1 %v4026_v34 }
  0x2c   :  { %860 = vmatprep.subr.bf16.mxu0 %v4435_v35  ;;  %903 = vmatprep.subr.bf16.mxu1 %v4440_v36  ;;  %v130_v33 = vshrl.u32 %v129_v32, 7 }
  0x2e   :  { %390 = vmatmul.mubr.bf16.vlgmr.msra.gmra.mrb[0].mxu0 %v4027_v37  ;;  %503 = vmatmul.mubr.bf16.vlgmr.msra.gmra.mrb[0].mxu1 %v4027_v37  ;;  %v139_v34 = vsub.s32 2, %v130_v33  ;;  %v127_v37 = vld [vmem:[%s5633_s5] sm:$0xf] }
  0x2f   :  { %861 = vmatpush1.bf16.msra.mxu0 %v4446_v38  ;;  %399 = vmatprep.mubr.bf16.mxu0 %v5640_v4 }
  0x30   :  { %512 = vmatprep.mubr.bf16.mxu1 %v5640_v4  ;;  %862 = vmatprep.subr.bf16.mxu0 %v4453_v39 }
  0x31   :  { %904 = vmatpush1.bf16.msra.mxu1 %v4458_v40  ;;  %2043 = vperm.xlu1 %3978, %v2038_v19  }
  0x32   :  { %905 = vmatprep.subr.bf16.mxu1 %v4463_v41  ;;  %2040 = vperm.xlu0 %3977, %v2037_v20  }
  0x33   :  { %863 = vmatpush1.bf16.msra.mxu0 %v4470_v42 }
  0x34   :  { %864 = vmatprep.subr.bf16.mxu0 %v4477_v43 }
  0x35   :  { %906 = vmatpush1.bf16.msra.mxu1 %v4483_v44  ;;  %2396 = vperm.xlu1 %3978, %v2391_v21  }
  0x36   :  { %400 = vmatmul.mubr.bf16.gmra.mrb[4].mxu0 %v4034_v45  ;;  %513 = vmatmul.mubr.bf16.gmra.mrb[4].mxu1 %v4034_v45 }
  0x37   :  { %409 = vmatprep.mubr.bf16.mxu0 %v5640_v4  ;;  %522 = vmatprep.mubr.bf16.mxu1 %v5640_v4 }
  0x38   :  { %865 = vmatpush1.bf16.msra.mxu0 %v4491_v46  ;;  %907 = vmatprep.subr.bf16.mxu1 %v4502_v48 }
  0x39   :  { %866 = vmatprep.subr.bf16.mxu0 %v4508_v49  ;;  %908 = vmatpush1.bf16.msra.mxu1 %v4497_v47 }
  0x3a   :  { %909 = vmatprep.subr.bf16.mxu1 %v4513_v50  ;;  %2393 = vperm.xlu0 %3977, %v2390_v22  }
  0x3b   :  { %2749 = vperm.xlu1 %3978, %v2744_v23  }
  0x3c   :  { %867 = vmatpush1.bf16.msra.mxu0 %v4522_v51 }
  0x3d   :  { %868 = vmatprep.subr.bf16.mxu0 %v4534_v53  ;;  %910 = vmatpush1.bf16.msra.mxu1 %v4529_v52 }
  0x3e   :  { %410 = vmatmul.mubr.bf16.gmra.mrb[8].mxu0 %v4041_v54  ;;  %523 = vmatmul.mubr.bf16.gmra.mrb[8].mxu1 %v4041_v54 }
  0x3f   :  { %419 = vmatprep.mubr.bf16.mxu0 %v5640_v4  ;;  %532 = vmatprep.mubr.bf16.mxu1 %v5640_v4 }
  0x40   :  { %869 = vmatpush1.bf16.msra.mxu0 %v4541_v55  ;;  %911 = vmatprep.subr.bf16.mxu1 %v4547_v56 }
  0x41   :  { %870 = vmatprep.subr.bf16.mxu0 %v4559_v58  ;;  %912 = vmatpush1.bf16.msra.mxu1 %v4554_v57 }
  0x42   :  { %913 = vmatprep.subr.bf16.mxu1 %v4569_v60  ;;  %2746 = vperm.xlu0 %3977, %v2743_v24  }
  0x43   :  { %3102 = vperm.xlu1 %3978, %v3097_v26  }
  0x44   :  { %871 = vmatpush1.bf16.msra.mxu0 %v4564_v59 }
  0x45   :  { %872 = vmatprep.subr.bf16.mxu0 %v4591_v0  ;;  %914 = vmatpush1.bf16.msra.mxu1 %v4581_v62 }
  0x46   :  { %420 = vmatmul.mubr.bf16.gmra.mrb[12].mxu0 %v4048_v63  ;;  %533 = vmatmul.mubr.bf16.gmra.mrb[12].mxu1 %v4048_v63 }
  0x47   :  { %429 = vmatprep.mubr.bf16.mxu0 %v5640_v4  ;;  %542 = vmatprep.mubr.bf16.mxu1 %v5640_v4 }
  0x48   :  { %873 = vmatpush1.bf16.msra.mxu0 %v4606_v6  ;;  %915 = vmatprep.subr.bf16.mxu1 %v4617_v8 }
  0x49   :  { %874 = vmatprep.subr.bf16.mxu0 %v4625_v9  ;;  %916 = vmatpush1.bf16.msra.mxu1 %v4611_v7 }
  0x4a   :  { %917 = vmatprep.subr.bf16.mxu1 %v4636_v11  ;;  %3099 = vperm.xlu0 %3977, %v3096_v27  }
  0x4b   :  { %3455 = vperm.xlu1 %3978, %v3450_v28  }
  0x4c   :  { %875 = vmatpush1.bf16.msra.mxu0 %v4631_v10 }
  0x4d   :  { %918 = vmatpush1.bf16.msra.mxu1 %v4643_v12  ;;  %1212 = vmatprep.subr.bf16.mxu0 %v4435_v35  ;;  %v143_v35 = vsub.s32 3, %v130_v33 }
  0x4e   :  { %430 = vmatmul.mubr.bf16.gmra.mrb[16].mxu0 %v4055_v14  ;;  %543 = vmatmul.mubr.bf16.gmra.mrb[16].mxu1 %v4055_v14 }
  0x4f   :  { %439 = vmatprep.mubr.bf16.mxu0 %v5640_v4  ;;  %552 = vmatprep.mubr.bf16.mxu1 %v5640_v4 }
  0x50   :  { %1255 = vmatprep.subr.bf16.mxu1 %v4440_v36  ;;  %3452 = vperm.xlu0 %3977, %v3449_v29   ;;  %v131_v36 = vsub.s32 0, %v130_v33 }
  0x56   :  { %440 = vmatmul.mubr.bf16.gmra.mrb[20].mxu0 %v4062_v18  ;;  %553 = vmatmul.mubr.bf16.gmra.mrb[20].mxu1 %v4062_v18 }
  0x57   :  { %449 = vmatprep.mubr.bf16.mxu0 %v5640_v4  ;;  %562 = vmatprep.mubr.bf16.mxu1 %v5640_v4 }
  0x5e   :  { %450 = vmatmul.mubr.bf16.gmra.mrb[24].mxu0 %v4069_v25  ;;  %563 = vmatmul.mubr.bf16.gmra.mrb[24].mxu1 %v4069_v25 }
  0x5f   :  { %459 = vmatprep.mubr.bf16.mxu0 %v5640_v4  ;;  %572 = vmatprep.mubr.bf16.mxu1 %v5640_v4 }
  0x66   :  { %460 = vmatmul.mubr.bf16.gmra.mrb[28].mxu0 %v4076_v30  ;;  %573 = vmatmul.mubr.bf16.gmra.mrb[28].mxu1 %v4076_v30 }
  0x67   :  { %892 = vmatprep.mubr.bf16.mxu0 %v5640_v4  ;;  %935 = vmatprep.mubr.bf16.mxu1 %v5640_v4 }
  0x6e   :  { %893 = vmatmul.mubr.bf16.vlgmr.msra.gmra.mrb[32].mxu0 %v4692_v31  ;;  %936 = vmatmul.mubr.bf16.vlgmr.msra.gmra.mrb[32].mxu1 %v4692_v31 }
  0x6f   :  { %1213 = vmatpush1.bf16.msra.mxu0 %v4446_v38  ;;  %1256 = vmatpush1.bf16.msra.mxu1 %v4458_v40  ;;  %v135_v38 = vsub.s32 1, %v130_v33  ;;  %v4733_v40 = vrot.slane %v127_v37, %v143_v35 }
  0x70   :  { %1214 = vmatprep.subr.bf16.mxu0 %v4453_v39  ;;  %1257 = vmatprep.subr.bf16.mxu1 %v4463_v41  ;;  %v4731_v39 = vrot.slane %v127_v37, %v139_v34  ;;  %v4735_v41 = vrot.slane %v127_v37, %v131_v36 }
  0x71   :  { %1244 = vmatprep.mubr.bf16.mxu0 %v5640_v4  ;;  %1287 = vmatprep.mubr.bf16.mxu1 %v5640_v4 }
  0x73   :  { %1215 = vmatpush1.bf16.msra.mxu0 %v4470_v42  ;;  %1258 = vmatpush1.bf16.msra.mxu1 %v4483_v44 }
  0x74   :  { %1216 = vmatprep.subr.bf16.mxu0 %v4477_v43  ;;  %1259 = vmatprep.subr.bf16.mxu1 %v4502_v48  ;;  %v4737_v43 = vrot.slane %v127_v37, %v135_v38 }
  0x77   :  { %1217 = vmatpush1.bf16.msra.mxu0 %v4491_v46  ;;  %1260 = vmatpush1.bf16.msra.mxu1 %v4497_v47 }
  0x78   :  { %1218 = vmatprep.subr.bf16.mxu0 %v4508_v49  ;;  %1261 = vmatprep.subr.bf16.mxu1 %v4513_v50 }
  0x7b   :  { %1219 = vmatpush1.bf16.msra.mxu0 %v4522_v51  ;;  %1262 = vmatpush1.bf16.msra.mxu1 %v4529_v52 }
  0x7c   :  { %1220 = vmatprep.subr.bf16.mxu0 %v4534_v53  ;;  %1263 = vmatprep.subr.bf16.mxu1 %v4547_v56 }
  0x7f   :  { %1221 = vmatpush1.bf16.msra.mxu0 %v4541_v55  ;;  %1264 = vmatpush1.bf16.msra.mxu1 %v4554_v57 }
  0x80   :  { %1222 = vmatprep.subr.bf16.mxu0 %v4559_v58  ;;  %1265 = vmatprep.subr.bf16.mxu1 %v4569_v60 }
  0x83   :  { %1223 = vmatpush1.bf16.msra.mxu0 %v4564_v59  ;;  %1266 = vmatpush1.bf16.msra.mxu1 %v4581_v62 }
  0x84   :  { %1224 = vmatprep.subr.bf16.mxu0 %v4591_v0  ;;  %1267 = vmatprep.subr.bf16.mxu1 %v4617_v8 }
  0x87   :  { %1225 = vmatpush1.bf16.msra.mxu0 %v4606_v6  ;;  %1268 = vmatpush1.bf16.msra.mxu1 %v4611_v7 }
  0x88   :  { %1226 = vmatprep.subr.bf16.mxu0 %v4625_v9  ;;  %1269 = vmatprep.subr.bf16.mxu1 %v4636_v11 }
  0x8b   :  { %1227 = vmatpush1.bf16.msra.mxu0 %v4631_v10  ;;  %1270 = vmatpush1.bf16.msra.mxu1 %v4643_v12 }
 0x101   :  { %v391_v42 = vpop.f32.mrb[0].mxu0  ;;  %v504_v44 = vpop.f32.mrb[0].mxu1 }
 0x102   :  { %v393_v45 = vpop.f32.mrb[1].mxu0  ;;  %v505_v46 = vadd.f32 %v504_v44, %v4731_v39  ;;  %v506_v47 = vpop.f32.mrb[1].mxu1  ;;  %v392_v51 = vadd.f32 %v391_v42, %v4735_v41 }
 0x103   :  { %v395_v48 = vpop.f32.mrb[2].mxu0  ;;  %v507_v49 = vadd.f32 %v506_v47, %v4733_v40  ;;  %v508_v50 = vpop.f32.mrb[2].mxu1  ;;  %v394_v56 = vadd.f32 %v393_v45, %v4737_v43 }
 0x104   :  { %v396_v52 = vadd.f32 %v395_v48, %v4735_v41  ;;  %v397_v53 = vpop.f32.mrb[3].mxu0  ;;  %v509_v54 = vadd.f32 %v508_v50, %v4731_v39  ;;  %v510_v55 = vpop.f32.mrb[3].mxu1 }
 0x105   :  { %v398_v57 = vadd.f32 %v397_v53, %v4737_v43  ;;  %v511_v58 = vadd.f32 %v510_v55, %v4733_v40 }
 0x106   :  { %v4747_v59 = vpack.c.bf16 %v396_v52, %v392_v51  ;;  %v4749_v60 = vpack.c.bf16 %v509_v54, %v505_v46 }
 0x107   :  { %v4751_v61 = vpack.c.bf16 %v398_v57, %v394_v56  ;;  %v4753_v62 = vpack.c.bf16 %v511_v58, %v507_v49 }
 0x109   :  { %v401_v63 = vpop.f32.mrb[4].mxu0  ;;  %v514_v0 = vpop.f32.mrb[4].mxu1 }
 0x10a   :  { %v402_v2 = vadd.f32 %v401_v63, %v4735_v41  ;;  %v403_v3 = vpop.f32.mrb[5].mxu0  ;;  %v515_v5 = vadd.f32 %v514_v0, %v4731_v39  ;;  %v516_v6 = vpop.f32.mrb[5].mxu1 }
 0x10b   :  { %v404_v7 = vadd.f32 %v403_v3, %v4737_v43  ;;  %v405_v8 = vpop.f32.mrb[6].mxu0  ;;  %v517_v9 = vadd.f32 %v516_v6, %v4733_v40  ;;  %v518_v10 = vpop.f32.mrb[6].mxu1 }
 0x10c   :  { %v406_v11 = vadd.f32 %v405_v8, %v4735_v41  ;;  %v407_v12 = vpop.f32.mrb[7].mxu0  ;;  %v519_v13 = vadd.f32 %v518_v10, %v4731_v39  ;;  %v520_v14 = vpop.f32.mrb[7].mxu1 }
 0x10d   :  { %v408_v15 = vadd.f32 %v407_v12, %v4737_v43  ;;  %v521_v16 = vadd.f32 %v520_v14, %v4733_v40 }
 0x10e   :  { %v4763_v17 = vpack.c.bf16 %v406_v11, %v402_v2  ;;  %v4765_v18 = vpack.c.bf16 %v519_v13, %v515_v5 }
 0x10f   :  { %v4767_v19 = vpack.c.bf16 %v408_v15, %v404_v7  ;;  %v4769_v20 = vpack.c.bf16 %v521_v16, %v517_v9 }
 0x111   :  { %v411_v21 = vpop.f32.mrb[8].mxu0  ;;  %v524_v22 = vpop.f32.mrb[8].mxu1 }
 0x112   :  { %v412_v23 = vadd.f32 %v411_v21, %v4735_v41  ;;  %v413_v24 = vpop.f32.mrb[9].mxu0  ;;  %v525_v25 = vadd.f32 %v524_v22, %v4731_v39  ;;  %v526_v26 = vpop.f32.mrb[9].mxu1 }
 0x113   :  { %v414_v27 = vadd.f32 %v413_v24, %v4737_v43  ;;  %v415_v28 = vpop.f32.mrb[10].mxu0  ;;  %v527_v29 = vadd.f32 %v526_v26, %v4733_v40  ;;  %v528_v30 = vpop.f32.mrb[10].mxu1 }
 0x114   :  { %v416_v32 = vadd.f32 %v415_v28, %v4735_v41  ;;  %v417_v33 = vpop.f32.mrb[11].mxu0  ;;  %v529_v34 = vadd.f32 %v528_v30, %v4731_v39  ;;  %v530_v35 = vpop.f32.mrb[11].mxu1 }
 0x115   :  { %v418_v36 = vadd.f32 %v417_v33, %v4737_v43  ;;  %v531_v37 = vadd.f32 %v530_v35, %v4733_v40 }
 0x116   :  { %v4779_v38 = vpack.c.bf16 %v416_v32, %v412_v23  ;;  %v4781_v42 = vpack.c.bf16 %v529_v34, %v525_v25 }
 0x117   :  { %v4783_v44 = vpack.c.bf16 %v418_v36, %v414_v27  ;;  %v4785_v45 = vpack.c.bf16 %v531_v37, %v527_v29 }
 0x118   :  { %5672 = vst [vmem:[#allocation7_spill] sm:$0xff] %v4779_v38  ;;  %5673 = vst [vmem:[#allocation8_spill] sm:$0xff] %v4781_v42 }
 0x119   :  { %5674 = vst [vmem:[#allocation9_spill] sm:$0xff] %v4783_v44  ;;  %5675 = vst [vmem:[#allocation10_spill] sm:$0xff] %v4785_v45  ;;  %v421_v46 = vpop.f32.mrb[12].mxu0  ;;  %v534_v47 = vpop.f32.mrb[12].mxu1  ;;  %v1051_v45 = vunpack.c.h.bf16 %v4769_v20 }
 0x11a   :  { %v422_v48 = vadd.f32 %v421_v46, %v4735_v41  ;;  %v423_v49 = vpop.f32.mrb[13].mxu0  ;;  %v535_v50 = vadd.f32 %v534_v47, %v4731_v39  ;;  %v536_v51 = vpop.f32.mrb[13].mxu1 }
 0x11b   :  { %v424_v52 = vadd.f32 %v423_v49, %v4737_v43  ;;  %v425_v53 = vpop.f32.mrb[14].mxu0  ;;  %v537_v54 = vadd.f32 %v536_v51, %v4733_v40  ;;  %v538_v55 = vpop.f32.mrb[14].mxu1 }
 0x11c   :  { %v426_v56 = vadd.f32 %v425_v53, %v4735_v41  ;;  %v427_v57 = vpop.f32.mrb[15].mxu0  ;;  %v539_v58 = vadd.f32 %v538_v55, %v4731_v39  ;;  %v540_v63 = vpop.f32.mrb[15].mxu1 }
 0x11d   :  { %v428_v0 = vadd.f32 %v427_v57, %v4737_v43  ;;  %v541_v2 = vadd.f32 %v540_v63, %v4733_v40 }
 0x11e   :  { %v4795_v3 = vpack.c.bf16 %v426_v56, %v422_v48  ;;  %v4797_v5 = vpack.c.bf16 %v539_v58, %v535_v50 }
 0x11f   :  { %v4799_v6 = vpack.c.bf16 %v428_v0, %v424_v52  ;;  %v4801_v7 = vpack.c.bf16 %v541_v2, %v537_v54 }
 0x120   :  { %5676 = vst [vmem:[#allocation11_spill] sm:$0xff] %v4795_v3  ;;  %5677 = vst [vmem:[#allocation12_spill] sm:$0xff] %v4797_v5  ;;  %v1049_v3 = vunpack.c.h.bf16 %v4767_v19 }
 0x121   :  { %5678 = vst [vmem:[#allocation13_spill] sm:$0xff] %v4799_v6  ;;  %5679 = vst [vmem:[#allocation14_spill] sm:$0xff] %v4801_v7  ;;  %v431_v8 = vpop.f32.mrb[16].mxu0  ;;  %v544_v9 = vpop.f32.mrb[16].mxu1 }
 0x122   :  { %v432_v10 = vadd.f32 %v431_v8, %v4735_v41  ;;  %v433_v11 = vpop.f32.mrb[17].mxu0  ;;  %v545_v12 = vadd.f32 %v544_v9, %v4731_v39  ;;  %v546_v13 = vpop.f32.mrb[17].mxu1 }
 0x123   :  { %v434_v14 = vadd.f32 %v433_v11, %v4737_v43  ;;  %v435_v15 = vpop.f32.mrb[18].mxu0  ;;  %v547_v16 = vadd.f32 %v546_v13, %v4733_v40  ;;  %v548_v21 = vpop.f32.mrb[18].mxu1 }
 0x124   :  { %v436_v22 = vadd.f32 %v435_v15, %v4735_v41  ;;  %v437_v23 = vpop.f32.mrb[19].mxu0  ;;  %v549_v24 = vadd.f32 %v548_v21, %v4731_v39  ;;  %v550_v25 = vpop.f32.mrb[19].mxu1 }
 0x125   :  { %v438_v26 = vadd.f32 %v437_v23, %v4737_v43  ;;  %v551_v27 = vadd.f32 %v550_v25, %v4733_v40 }
 0x126   :  { %v4811_v28 = vpack.c.bf16 %v436_v22, %v432_v10  ;;  %v4813_v29 = vpack.c.bf16 %v549_v24, %v545_v12 }
 0x127   :  { %v4815_v30 = vpack.c.bf16 %v438_v26, %v434_v14  ;;  %v4817_v32 = vpack.c.bf16 %v551_v27, %v547_v16 }
 0x128   :  { %5680 = vst [vmem:[#allocation15_spill] sm:$0xff] %v4811_v28  ;;  %5681 = vst [vmem:[#allocation16_spill] sm:$0xff] %v4813_v29  ;;  %v1050_v29 = vunpack.c.h.bf16 %v4765_v18 }
 0x129   :  { %5682 = vst [vmem:[#allocation17_spill] sm:$0xff] %v4815_v30  ;;  %5683 = vst [vmem:[#allocation18_spill] sm:$0xff] %v4817_v32  ;;  %v441_v33 = vpop.f32.mrb[20].mxu0  ;;  %v554_v34 = vpop.f32.mrb[20].mxu1  ;;  %v1048_v30 = vunpack.c.h.bf16 %v4763_v17 }
 0x12a   :  { %v442_v35 = vadd.f32 %v441_v33, %v4735_v41  ;;  %v443_v36 = vpop.f32.mrb[21].mxu0  ;;  %v555_v37 = vadd.f32 %v554_v34, %v4731_v39  ;;  %v556_v46 = vpop.f32.mrb[21].mxu1 }
 0x12b   :  { %v444_v47 = vadd.f32 %v443_v36, %v4737_v43  ;;  %v445_v48 = vpop.f32.mrb[22].mxu0  ;;  %v557_v49 = vadd.f32 %v556_v46, %v4733_v40  ;;  %v558_v50 = vpop.f32.mrb[22].mxu1 }
 0x12c   :  { %v446_v51 = vadd.f32 %v445_v48, %v4735_v41  ;;  %v447_v52 = vpop.f32.mrb[23].mxu0  ;;  %v559_v53 = vadd.f32 %v558_v50, %v4731_v39  ;;  %v560_v54 = vpop.f32.mrb[23].mxu1 }
 0x12d   :  { %v448_v55 = vadd.f32 %v447_v52, %v4737_v43  ;;  %v561_v56 = vadd.f32 %v560_v54, %v4733_v40 }
 0x12e   :  { %v4827_v57 = vpack.c.bf16 %v446_v51, %v442_v35  ;;  %v4829_v58 = vpack.c.bf16 %v559_v53, %v555_v37 }
 0x12f   :  { %v4831_v63 = vpack.c.bf16 %v448_v55, %v444_v47  ;;  %v4833_v0 = vpack.c.bf16 %v561_v56, %v557_v49 }
 0x130   :  { %5684 = vst [vmem:[#allocation19_spill] sm:$0xff] %v4827_v57  ;;  %5685 = vst [vmem:[#allocation20_spill] sm:$0xff] %v4829_v58 }
 0x131   :  { %5686 = vst [vmem:[#allocation21_spill] sm:$0xff] %v4831_v63  ;;  %5687 = vst [vmem:[#allocation22_spill] sm:$0xff] %v4833_v0  ;;  %v451_v2 = vpop.f32.mrb[24].mxu0  ;;  %v564_v8 = vpop.f32.mrb[24].mxu1  ;;  %v1047_v0 = vunpack.c.l.bf16 %v4769_v20 }
 0x132   :  { %v452_v9 = vadd.f32 %v451_v2, %v4735_v41  ;;  %v453_v10 = vpop.f32.mrb[25].mxu0  ;;  %v565_v11 = vadd.f32 %v564_v8, %v4731_v39  ;;  %v566_v12 = vpop.f32.mrb[25].mxu1 }
 0x133   :  { %v454_v13 = vadd.f32 %v453_v10, %v4737_v43  ;;  %v455_v14 = vpop.f32.mrb[26].mxu0  ;;  %v567_v15 = vadd.f32 %v566_v12, %v4733_v40  ;;  %v568_v16 = vpop.f32.mrb[26].mxu1 }
 0x134   :  { %v456_v21 = vadd.f32 %v455_v14, %v4735_v41  ;;  %v457_v22 = vpop.f32.mrb[27].mxu0  ;;  %v569_v23 = vadd.f32 %v568_v16, %v4731_v39  ;;  %v570_v24 = vpop.f32.mrb[27].mxu1  ;;  %v692_v14 = vunpack.c.l.bf16 %v4747_v59 }
 0x135   :  { %v458_v25 = vadd.f32 %v457_v22, %v4737_v43  ;;  %v571_v26 = vadd.f32 %v570_v24, %v4733_v40  ;;  %v696_v24 = vunpack.c.h.bf16 %v4747_v59 }
 0x136   :  { %v4843_v27 = vpack.c.bf16 %v456_v21, %v452_v9  ;;  %v4845_v33 = vpack.c.bf16 %v569_v23, %v565_v11 }
 0x137   :  { %v4847_v34 = vpack.c.bf16 %v458_v25, %v454_v13  ;;  %v4849_v35 = vpack.c.bf16 %v571_v26, %v567_v15  ;;  %v698_v25 = vunpack.c.h.bf16 %v4749_v60 }
 0x138   :  { %5688 = vst [vmem:[#allocation23_spill] sm:$0xff] %v4843_v27  ;;  %5689 = vst [vmem:[#allocation24_spill] sm:$0xff] %v4845_v33  ;;  %v1045_v27 = vunpack.c.l.bf16 %v4767_v19 }
 0x139   :  { %5690 = vst [vmem:[#allocation25_spill] sm:$0xff] %v4847_v34  ;;  %5691 = vst [vmem:[#allocation26_spill] sm:$0xff] %v4849_v35  ;;  %v461_v36 = vpop.f32.mrb[28].mxu0  ;;  %v574_v37 = vpop.f32.mrb[28].mxu1  ;;  %v1046_v35 = vunpack.c.l.bf16 %v4765_v18 }
 0x13a   :  { %v462_v46 = vadd.f32 %v461_v36, %v4735_v41  ;;  %v463_v47 = vpop.f32.mrb[29].mxu0  ;;  %v575_v48 = vadd.f32 %v574_v37, %v4731_v39  ;;  %v576_v49 = vpop.f32.mrb[29].mxu1 }
 0x13b   :  { %v464_v50 = vadd.f32 %v463_v47, %v4737_v43  ;;  %v465_v51 = vpop.f32.mrb[30].mxu0  ;;  %v577_v52 = vadd.f32 %v576_v49, %v4733_v40  ;;  %v578_v53 = vpop.f32.mrb[30].mxu1  ;;  %v697_v47 = vunpack.c.h.bf16 %v4751_v61 }
 0x13c   :  { %v466_v54 = vadd.f32 %v465_v51, %v4735_v41  ;;  %v467_v55 = vpop.f32.mrb[31].mxu0  ;;  %v579_v56 = vadd.f32 %v578_v53, %v4731_v39  ;;  %v580_v2 = vpop.f32.mrb[31].mxu1  ;;  %v694_v41 = vunpack.c.l.bf16 %v4749_v60  ;;  %v693_v39 = vunpack.c.l.bf16 %v4751_v61 }
 0x13d   :  { %v468_v8 = vadd.f32 %v467_v55, %v4737_v43  ;;  %v581_v9 = vadd.f32 %v580_v2, %v4733_v40  ;;  %v695_v43 = vunpack.c.l.bf16 %v4753_v62 }
 0x13e   :  { %v4859_v10 = vpack.c.bf16 %v466_v54, %v462_v46  ;;  %v4861_v11 = vpack.c.bf16 %v579_v56, %v575_v48  ;;  %v699_v48 = vunpack.c.h.bf16 %v4753_v62 }
 0x13f   :  { %v4863_v12 = vpack.c.bf16 %v468_v8, %v464_v50  ;;  %v4865_v13 = vpack.c.bf16 %v581_v9, %v577_v52 }
 0x140   :  { %5692 = vst [vmem:[#allocation27_spill] sm:$0xff] %v4859_v10  ;;  %5693 = vst [vmem:[#allocation28_spill] sm:$0xff] %v4861_v11  ;;  %v5094_v11 = vld [vmem:[%s5632_s4 + $0xe8] ss:$16 sps:$4 sm:$0xff]   ;;  %v1044_v10 = vunpack.c.l.bf16 %v4763_v17 }
 0x141   :  { %5694 = vst [vmem:[#allocation29_spill] sm:$0xff] %v4863_v12  ;;  %5695 = vst [vmem:[#allocation30_spill] sm:$0xff] %v4865_v13  ;;  %v894_v15 = vpop.f32.mrb[32].mxu0  ;;  %v937_v16 = vpop.f32.mrb[32].mxu1  ;;  %v5084_v13 = vld [vmem:[%s5632_s4 + $0xec] ss:$16 sps:$4 sm:$0xff]  }
 0x142   :  { %v895_v21 = vadd.f32 %v894_v15, %v692_v14  ;;  %v938_v40 = vadd.f32 %v937_v16, %v694_v41  ;;  %v896_v22 = vpop.f32.mrb[33].mxu0  ;;  %v939_v23 = vpop.f32.mrb[33].mxu1  ;;  %v5089_v12 = vld [vmem:[%s5632_s4 + $0xe0] ss:$16 sps:$4 sm:$0xff]   ;;  %5698 = vst [vmem:[#allocation33_spill] sm:$0xff] %v5094_v11 }
 0x143   :  { %v897_v26 = vadd.f32 %v896_v22, %v693_v39  ;;  %v940_v36 = vadd.f32 %v939_v23, %v695_v43  ;;  %v898_v37 = vpop.f32.mrb[34].mxu0  ;;  %v941_v46 = vpop.f32.mrb[34].mxu1  ;;  %v4875_v43 = vld [vmem:[#allocation4] sm:$0xff] }
 0x144   :  { %v899_v49 = vadd.f32 %v898_v37, %v696_v24  ;;  %v942_v50 = vadd.f32 %v941_v46, %v698_v25  ;;  %v900_v51 = vpop.f32.mrb[35].mxu0  ;;  %v943_v52 = vpop.f32.mrb[35].mxu1 }
 0x145   :  { %v901_v53 = vadd.f32 %v900_v51, %v697_v47  ;;  %v944_v54 = vadd.f32 %v943_v52, %v699_v48  ;;  %v4881_v37 = vpop.permute.xlu0 %981 }
 0x146   :  { %v946_v55 = vpack.c.bf16 %v899_v49, %v895_v21  ;;  %v948_v56 = vpack.c.bf16 %v942_v50, %v938_v40  ;;  %v4877_v21 = vld [vmem:[#allocation4 + $0x8] sm:$0xff]  ;;  %vm986_vm0 = vcmp.eq.s32.totalorder %v4881_v37, 1  ;;  %v5699_v37 = vmov 0  }
 0x147   :  { %v947_v2 = vpack.c.bf16 %v901_v53, %v897_v26  ;;  %v949_v59 = vpack.c.bf16 %v944_v54, %v940_v36  ;;  %vm988_vm1 = vmpackc.low %vm986_vm0, %vm986_vm0 }
 0x148   :  { %v950_v8 = vmul.bf16 1056980736, %v946_v55  ;;  %v990_v52 = vsel %vm988_vm1, 65537, %v5640_v4 }
 0x149   :  { %v954_v60 = vmul.bf16 1056980736, %v947_v2  ;;  %v959_v62 = vmul.bf16 1056980736, %v949_v59  ;;  %v4890_v49 = vpop.permute.xlu0 %984 }
 0x14a   :  { %4179 = vtanh.bf16 %v950_v8  ;;  %vm987_vm2 = vcmp.eq.s32.totalorder %v4890_v49, 1  ;;  %v4911_v8 = vld [vmem:[%s5632_s4 + $0x4] ss:$16 sps:$4 sm:$0xff]  }
 0x14b   :  { %4181 = vtanh.bf16 %v954_v60  ;;  %vm989_vm3 = vmpackc.low %vm987_vm2, %vm987_vm2  ;;  %5696 = vst [vmem:[#allocation31_spill] sm:$0xff] %v4911_v8  ;;  %v4916_v60 = vld [vmem:[%s5632_s4 + $0xc] ss:$16 sps:$4 sm:$0xff]   ;;  %1565 = vmatprep.subr.bf16.mxu0 %v4911_v8 }
 0x14c   :  { %4183 = vtanh.bf16 %v948_v56  ;;  %v991_v53 = vsel %vm989_vm3, 65537, %v5640_v4  ;;  %5697 = vst [vmem:[#allocation32_spill] sm:$0xff] %v4916_v60  ;;  %1608 = vmatprep.subr.bf16.mxu1 %v4916_v60 }
 0x14d   :  { %4185 = vtanh.bf16 %v959_v62  ;;  %v3688_v54 = vcombine.low %v990_v52, %v991_v53  ;;  %v4950_v62 = vld [vmem:[%s5632_s4 + $0x28] ss:$16 sps:$4 sm:$0xff]   ;;  %v5036_v52 = vld [vmem:[%s5632_s4 + $0xac] ss:$16 sps:$4 sm:$0xff]   ;;  %v5041_v53 = vld [vmem:[%s5632_s4 + $0xa0] ss:$16 sps:$4 sm:$0xff]  }
 0x14f   :  { %vm995_vm4 = vcmp.ne.s16.totalorder %v3688_v54, 0  ;;  %v5046_v54 = vld [vmem:[%s5632_s4 + $0xa8] ss:$16 sps:$4 sm:$0xff]  }
 0x155   :  { %v4180_v9 = vpop.eup %4179 }
 0x156   :  { %v4182_v14 = vpop.eup %4181  ;;  %v952_v61 = vmul.bf16 1056980736, %v4180_v9  ;;  %v4926_v9 = vld [vmem:[%s5632_s4 + $0x8] ss:$16 sps:$4 sm:$0xff]  }
 0x157   :  { %v956_v41 = vmul.bf16 1056980736, %v4182_v14  ;;  %v4184_v16 = vpop.eup %4183  ;;  %v4935_v14 = vld [vmem:[%s5632_s4 + $0x24] ss:$16 sps:$4 sm:$0xff]  }
 0x158   :  { %v953_v15 = vadd.bf16 1056980736, %v952_v61  ;;  %v4186_v50 = vpop.eup %4185  ;;  %v4940_v61 = vld [vmem:[%s5632_s4 + $0x2c] ss:$16 sps:$4 sm:$0xff]  }
 0x159   :  { %v957_v39 = vadd.bf16 1056980736, %v956_v41  ;;  %v961_v51 = vmul.bf16 1056980736, %v4186_v50  ;;  %v4945_v41 = vld [vmem:[%s5632_s4 + $0x20] ss:$16 sps:$4 sm:$0xff]  }
 0x15a   :  { %v967_v22 = vmul.bf16 %v4184_v16, %v953_v15  ;;  %v4959_v15 = vld [vmem:[%s5632_s4 + $0x44] ss:$16 sps:$4 sm:$0xff]   ;;  %v4964_v16 = vld [vmem:[%s5632_s4 + $0x4c] ss:$16 sps:$4 sm:$0xff]   ;;  %v5022_v50 = vld [vmem:[%s5632_s4 + $0x88] ss:$16 sps:$4 sm:$0xff]  }
 0x15b   :  { %v963_v40 = vunpack.c.l.bf16 %v957_v39  ;;  %v964_v23 = vunpack.c.h.bf16 %v957_v39  ;;  %v962_v55 = vadd.bf16 1056980736, %v961_v51  ;;  %v4969_v39 = vld [vmem:[%s5632_s4 + $0x40] ss:$16 sps:$4 sm:$0xff]   ;;  %v5031_v51 = vld [vmem:[%s5632_s4 + $0xa4] ss:$16 sps:$4 sm:$0xff]  }
 0x15c   :  { %v968_v24 = vunpack.c.l.bf16 %v967_v22  ;;  %v969_v25 = vunpack.c.h.bf16 %v967_v22  ;;  %v4974_v22 = vld [vmem:[%s5632_s4 + $0x48] ss:$16 sps:$4 sm:$0xff]  }
 0x15d   :  { %v965_v26 = vmul.f32 %v963_v40, %v4875_v43  ;;  %v966_v36 = vmul.f32 %v964_v23, %v4877_v21  ;;  %v4983_v40 = vld [vmem:[%s5632_s4 + $0x64] ss:$16 sps:$4 sm:$0xff]   ;;  %v4988_v23 = vld [vmem:[%s5632_s4 + $0x6c] ss:$16 sps:$4 sm:$0xff]  }
 0x15f   :  { %v4883_v46 = vadd.f32 %v968_v24, %v965_v26  ;;  %v4885_v47 = vadd.f32 %v969_v25, %v966_v36  ;;  %v4993_v24 = vld [vmem:[%s5632_s4 + $0x60] ss:$16 sps:$4 sm:$0xff]   ;;  %v4998_v25 = vld [vmem:[%s5632_s4 + $0x68] ss:$16 sps:$4 sm:$0xff]   ;;  %v5007_v26 = vld [vmem:[%s5632_s4 + $0x84] ss:$16 sps:$4 sm:$0xff]  }
 0x160   :  { %v5012_v36 = vld [vmem:[%s5632_s4 + $0x8c] ss:$16 sps:$4 sm:$0xff]  }
 0x161   :  { %v972_v48 = vpack.c.bf16 %v4885_v47, %v4883_v46 }
 0x163   :  { %4187 = vtanh.bf16 %v972_v48  ;;  %v5017_v48 = vld [vmem:[%s5632_s4 + $0x80] ss:$16 sps:$4 sm:$0xff]  }
 0x16e   :  { %v4188_v56 = vpop.eup %4187 }
 0x16f   :  { %v974_v2 = vmul.bf16 %v4188_v56, %v962_v55  ;;  %v5055_v55 = vld [vmem:[%s5632_s4 + $0xc4] ss:$16 sps:$4 sm:$0xff]   ;;  %v5060_v56 = vld [vmem:[%s5632_s4 + $0xcc] ss:$16 sps:$4 sm:$0xff]  }
 0x171   :  { %v4902_v59 = vsel %vm995_vm4, %v974_v2, %v4692_v31  ;;  %v4921_v31 = vld [vmem:[%s5632_s4] ss:$16 sps:$4 sm:$0xff]  }
 0x172   :  { %1245 = vmatmul.mubr.bf16.vlgmr.msra.gmra.mrb[36].mxu0 %v4902_v59  ;;  %1288 = vmatmul.mubr.bf16.vlgmr.msra.gmra.mrb[36].mxu1 %v4902_v59  ;;  %v5065_v2 = vld [vmem:[%s5632_s4 + $0xc0] ss:$16 sps:$4 sm:$0xff]  }
 0x173   :  { %1597 = vmatprep.mubr.bf16.mxu0 %v5640_v4  ;;  %1640 = vmatprep.mubr.bf16.mxu1 %v5640_v4  ;;  %v5079_v4 = vld [vmem:[%s5632_s4 + $0xe4] ss:$16 sps:$4 sm:$0xff]  }
 0x174   :  { %1566 = vmatpush1.bf16.msra.mxu0 %v4921_v31  ;;  %1609 = vmatpush1.bf16.msra.mxu1 %v4926_v9 }
 0x175   :  { %1567 = vmatprep.subr.bf16.mxu0 %v4935_v14  ;;  %1610 = vmatprep.subr.bf16.mxu1 %v4940_v61 }
 0x178   :  { %1568 = vmatpush1.bf16.msra.mxu0 %v4945_v41  ;;  %1611 = vmatpush1.bf16.msra.mxu1 %v4950_v62 }
 0x179   :  { %1569 = vmatprep.subr.bf16.mxu0 %v4959_v15  ;;  %1612 = vmatprep.subr.bf16.mxu1 %v4964_v16 }
 0x17c   :  { %1570 = vmatpush1.bf16.msra.mxu0 %v4969_v39  ;;  %1613 = vmatpush1.bf16.msra.mxu1 %v4974_v22 }
 0x17d   :  { %1571 = vmatprep.subr.bf16.mxu0 %v4983_v40  ;;  %1614 = vmatprep.subr.bf16.mxu1 %v4988_v23 }
 0x180   :  { %1572 = vmatpush1.bf16.msra.mxu0 %v4993_v24  ;;  %1615 = vmatpush1.bf16.msra.mxu1 %v4998_v25 }
 0x181   :  { %1573 = vmatprep.subr.bf16.mxu0 %v5007_v26  ;;  %1616 = vmatprep.subr.bf16.mxu1 %v5012_v36 }
 0x184   :  { %1574 = vmatpush1.bf16.msra.mxu0 %v5017_v48  ;;  %1617 = vmatpush1.bf16.msra.mxu1 %v5022_v50 }
 0x185   :  { %1575 = vmatprep.subr.bf16.mxu0 %v5031_v51  ;;  %1618 = vmatprep.subr.bf16.mxu1 %v5036_v52 }
 0x188   :  { %1576 = vmatpush1.bf16.msra.mxu0 %v5041_v53  ;;  %1619 = vmatpush1.bf16.msra.mxu1 %v5046_v54 }
 0x189   :  { %1577 = vmatprep.subr.bf16.mxu0 %v5055_v55  ;;  %1620 = vmatprep.subr.bf16.mxu1 %v5060_v56 }
 0x18c   :  { %1578 = vmatpush1.bf16.msra.mxu0 %v5065_v2  ;;  %1621 = vmatpush1.bf16.msra.mxu1 %v5070_v1 }
 0x18d   :  { %1579 = vmatprep.subr.bf16.mxu0 %v5079_v4  ;;  %1622 = vmatprep.subr.bf16.mxu1 %v5084_v13 }
 0x190   :  { %1580 = vmatpush1.bf16.msra.mxu0 %v5089_v12  ;;  %1623 = vmatpush1.bf16.msra.mxu1 %v5094_v11 }
 0x191   :  { %1918 = vmatprep.subr.bf16.mxu0 %v4911_v8  ;;  %1961 = vmatprep.subr.bf16.mxu1 %v4916_v60 }
 0x245   :  { %v1246_v34 = vpop.f32.mrb[36].mxu0  ;;  %v1289_v33 = vpop.f32.mrb[36].mxu1 }
 0x246   :  { %v1247_v63 = vadd.f32 %v1246_v34, %v1044_v10  ;;  %v1290_v58 = vadd.f32 %v1289_v33, %v1046_v35  ;;  %v1248_v57 = vpop.f32.mrb[37].mxu0  ;;  %v1291_v32 = vpop.f32.mrb[37].mxu1 }
 0x247   :  { %v1249_v28 = vadd.f32 %v1248_v57, %v1045_v27  ;;  %v1292_v7 = vadd.f32 %v1291_v32, %v1047_v0  ;;  %v1250_v6 = vpop.f32.mrb[38].mxu0  ;;  %v1293_v5 = vpop.f32.mrb[38].mxu1 }
 0x248   :  { %v1251_v44 = vadd.f32 %v1250_v6, %v1048_v30  ;;  %v1294_v42 = vadd.f32 %v1293_v5, %v1050_v29  ;;  %v1252_v38 = vpop.f32.mrb[39].mxu0  ;;  %v1295_v60 = vpop.f32.mrb[39].mxu1 }
 0x249   :  { %v1253_v34 = vadd.f32 %v1252_v38, %v1049_v3  ;;  %v1296_v33 = vadd.f32 %v1295_v60, %v1051_v45  ;;  %v1335_v0 = vpop.permute.xlu1 %1334  ;;  %v999_v3 = vsel %vm987_vm2, %v4885_v47, %v4877_v21 }
 0x24a   :  { %v1298_v35 = vpack.c.bf16 %v1251_v44, %v1247_v63  ;;  %v1300_v10 = vpack.c.bf16 %v1294_v42, %v1290_v58  ;;  %v998_v42 = vsel %vm986_vm0, %v4883_v46, %v4875_v43  ;;  %vm1339_vm5 = vcmp.eq.s32.totalorder %v1335_v0, 1 }
 0x24b   :  { %v1299_v8 = vpack.c.bf16 %v1253_v34, %v1249_v28  ;;  %v1301_v17 = vpack.c.bf16 %v1296_v33, %v1292_v7  ;;  %vm1341_vm7 = vmpackc.low %vm1339_vm5, %vm1339_vm5 }
 0x24c   :  { %v1302_v11 = vmul.bf16 1056980736, %v1298_v35  ;;  %v1343_v21 = vsel %vm1341_vm7, 65537, %v5699_v37 }
 0x24d   :  { %v1306_v18 = vmul.bf16 1056980736, %v1299_v8  ;;  %v1311_v6 = vmul.bf16 1056980736, %v1301_v17  ;;  %v1338_v58 = vpop.permute.xlu1 %1337 }
 0x24e   :  { %4189 = vtanh.bf16 %v1302_v11  ;;  %vm1340_vm6 = vcmp.eq.s32.totalorder %v1338_v58, 1 }
 0x24f   :  { %4191 = vtanh.bf16 %v1306_v18  ;;  %vm1342_vm8 = vmpackc.low %vm1340_vm6, %vm1340_vm6 }
 0x250   :  { %4193 = vtanh.bf16 %v1300_v10  ;;  %v1344_v46 = vsel %vm1342_vm8, 65537, %v5699_v37 }
 0x251   :  { %4195 = vtanh.bf16 %v1311_v6  ;;  %v3723_v49 = vcombine.low %v1343_v21, %v1344_v46 }
 0x253   :  { %vm1348_vm9 = vcmp.ne.s16.totalorder %v3723_v49, 0 }
 0x259   :  { %v4190_v32 = vpop.eup %4189 }
 0x25a   :  { %v4192_v57 = vpop.eup %4191  ;;  %v1304_v19 = vmul.bf16 1056980736, %v4190_v32  ;;  %v5701_v32 = vld [vmem:[#allocation31_spill] sm:$0xff] }
 0x25b   :  { %v1308_v20 = vmul.bf16 1056980736, %v4192_v57  ;;  %v4194_v29 = vpop.eup %4193  ;;  %v5702_v57 = vld [vmem:[#allocation32_spill] sm:$0xff] }
 0x25c   :  { %v1305_v5 = vadd.bf16 1056980736, %v1304_v19  ;;  %v4196_v43 = vpop.eup %4195  ;;  %v5703_v19 = vld [vmem:[#allocation7_spill] sm:$0xff] }
 0x25d   :  { %v1309_v30 = vadd.bf16 1056980736, %v1308_v20  ;;  %v1313_v47 = vmul.bf16 1056980736, %v4196_v43  ;;  %v1397_v0 = vunpack.c.l.bf16 %v5703_v19  ;;  %v5704_v20 = vld [vmem:[#allocation8_spill] sm:$0xff]  ;;  %v1401_v58 = vunpack.c.h.bf16 %v5703_v19 }
 0x25e   :  { %v1319_v38 = vmul.bf16 %v4194_v29, %v1305_v5  ;;  %v1399_v6 = vunpack.c.l.bf16 %v5704_v20 }
 0x25f   :  { %v1315_v45 = vunpack.c.l.bf16 %v1309_v30  ;;  %v1316_v44 = vunpack.c.h.bf16 %v1309_v30  ;;  %v1314_v35 = vadd.bf16 1056980736, %v1313_v47  ;;  %v5705_v30 = vld [vmem:[#allocation9_spill] sm:$0xff] }
 0x260   :  { %v1320_v7 = vunpack.c.l.bf16 %v1319_v38  ;;  %v1321_v28 = vunpack.c.h.bf16 %v1319_v38  ;;  %v1398_v38 = vunpack.c.l.bf16 %v5705_v30  ;;  %v1402_v43 = vunpack.c.h.bf16 %v5705_v30 }
 0x261   :  { %v1317_v63 = vmul.f32 %v1315_v45, %v998_v42  ;;  %v1318_v27 = vmul.f32 %v1316_v44, %v999_v3  ;;  %v5706_v45 = vld [vmem:[#allocation10_spill] sm:$0xff] }
 0x262   :  { %v1400_v44 = vunpack.c.l.bf16 %v5706_v45  ;;  %v1404_v21 = vunpack.c.h.bf16 %v5706_v45 }
 0x263   :  { %v1322_v11 = vadd.f32 %v1320_v7, %v1317_v63  ;;  %v1323_v8 = vadd.f32 %v1321_v28, %v1318_v27  ;;  %v1403_v63 = vunpack.c.h.bf16 %v5704_v20 }
 0x265   :  { %v1324_v60 = vpack.c.bf16 %v1323_v8, %v1322_v11  ;;  %v5118_v34 = vsel %vm1339_vm5, %v1322_v11, %v998_v42  ;;  %v5120_v33 = vsel %vm1340_vm6, %v1323_v8, %v999_v3 }
 0x267   :  { %4197 = vtanh.bf16 %v1324_v60 }
 0x272   :  { %v4198_v10 = vpop.eup %4197 }
 0x273   :  { %v1326_v17 = vmul.bf16 %v4198_v10, %v1314_v35 }
 0x275   :  { %v5125_v18 = vsel %vm1348_vm9, %v1326_v17, %v4902_v59  ;;  %v5700_v59 = vld [vmem:[#allocation33_spill] sm:$0xff] }
 0x276   :  { %1598 = vmatmul.mubr.bf16.vlgmr.msra.gmra.mrb[40].mxu0 %v5125_v18  ;;  %1641 = vmatmul.mubr.bf16.vlgmr.msra.gmra.mrb[40].mxu1 %v5125_v18 }
 0x277   :  { %1919 = vmatpush1.bf16.msra.mxu0 %v4921_v31  ;;  %1962 = vmatpush1.bf16.msra.mxu1 %v4926_v9 }
 0x278   :  { %1920 = vmatprep.subr.bf16.mxu0 %v4935_v14  ;;  %1963 = vmatprep.subr.bf16.mxu1 %v4940_v61 }
 0x279   :  { %1950 = vmatprep.mubr.bf16.mxu0 %v5699_v37  ;;  %1993 = vmatprep.mubr.bf16.mxu1 %v5699_v37 }
 0x27b   :  { %1921 = vmatpush1.bf16.msra.mxu0 %v4945_v41  ;;  %1964 = vmatpush1.bf16.msra.mxu1 %v4950_v62 }
 0x27c   :  { %1922 = vmatprep.subr.bf16.mxu0 %v4959_v15  ;;  %1965 = vmatprep.subr.bf16.mxu1 %v4964_v16 }
 0x27f   :  { %1923 = vmatpush1.bf16.msra.mxu0 %v4969_v39  ;;  %1966 = vmatpush1.bf16.msra.mxu1 %v4974_v22 }
 0x280   :  { %1924 = vmatprep.subr.bf16.mxu0 %v4983_v40  ;;  %1967 = vmatprep.subr.bf16.mxu1 %v4988_v23 }
 0x283   :  { %1925 = vmatpush1.bf16.msra.mxu0 %v4993_v24  ;;  %1968 = vmatpush1.bf16.msra.mxu1 %v4998_v25 }
 0x284   :  { %1926 = vmatprep.subr.bf16.mxu0 %v5007_v26  ;;  %1969 = vmatprep.subr.bf16.mxu1 %v5012_v36 }
 0x287   :  { %1927 = vmatpush1.bf16.msra.mxu0 %v5017_v48  ;;  %1970 = vmatpush1.bf16.msra.mxu1 %v5022_v50 }
 0x288   :  { %1928 = vmatprep.subr.bf16.mxu0 %v5031_v51  ;;  %1971 = vmatprep.subr.bf16.mxu1 %v5036_v52 }
 0x28b   :  { %1929 = vmatpush1.bf16.msra.mxu0 %v5041_v53  ;;  %1972 = vmatpush1.bf16.msra.mxu1 %v5046_v54 }
 0x28c   :  { %1930 = vmatprep.subr.bf16.mxu0 %v5055_v55  ;;  %1973 = vmatprep.subr.bf16.mxu1 %v5060_v56 }
 0x28f   :  { %1931 = vmatpush1.bf16.msra.mxu0 %v5065_v2  ;;  %1974 = vmatpush1.bf16.msra.mxu1 %v5070_v1 }
 0x290   :  { %1932 = vmatprep.subr.bf16.mxu0 %v5079_v4  ;;  %1975 = vmatprep.subr.bf16.mxu1 %v5084_v13 }
 0x293   :  { %1933 = vmatpush1.bf16.msra.mxu0 %v5089_v12  ;;  %1976 = vmatpush1.bf16.msra.mxu1 %v5700_v59 }
 0x294   :  { %2271 = vmatprep.subr.bf16.mxu0 %v5701_v32  ;;  %2314 = vmatprep.subr.bf16.mxu1 %v5702_v57 }
 0x349   :  { %v1599_v5 = vpop.f32.mrb[40].mxu0  ;;  %v1642_v29 = vpop.f32.mrb[40].mxu1 }
 0x34a   :  { %v1600_v42 = vadd.f32 %v1599_v5, %v1397_v0  ;;  %v1643_v3 = vadd.f32 %v1642_v29, %v1399_v6  ;;  %v1601_v7 = vpop.f32.mrb[41].mxu0  ;;  %v1644_v28 = vpop.f32.mrb[41].mxu1 }
 0x34b   :  { %v1602_v27 = vadd.f32 %v1601_v7, %v1398_v38  ;;  %v1645_v11 = vadd.f32 %v1644_v28, %v1400_v44  ;;  %v1603_v8 = vpop.f32.mrb[42].mxu0  ;;  %v1646_v60 = vpop.f32.mrb[42].mxu1 }
 0x34c   :  { %v1604_v46 = vadd.f32 %v1603_v8, %v1401_v58  ;;  %v1647_v47 = vadd.f32 %v1646_v60, %v1403_v63  ;;  %v1605_v49 = vpop.f32.mrb[43].mxu0  ;;  %v1648_v35 = vpop.f32.mrb[43].mxu1 }
 0x34d   :  { %v1606_v10 = vadd.f32 %v1605_v49, %v1402_v43  ;;  %v1649_v17 = vadd.f32 %v1648_v35, %v1404_v21  ;;  %v1691_v21 = vpop.permute.xlu1 %1690 }
 0x34e   :  { %v1651_v0 = vpack.c.bf16 %v1604_v46, %v1600_v42  ;;  %v1653_v6 = vpack.c.bf16 %v1647_v47, %v1643_v3  ;;  %v1688_v46 = vpop.permute.xlu0 %1687  ;;  %vm1693_vm10 = vcmp.eq.s32.totalorder %v1691_v21, 1 }
 0x34f   :  { %v1652_v5 = vpack.c.bf16 %v1606_v10, %v1602_v27  ;;  %v1654_v19 = vpack.c.bf16 %v1649_v17, %v1645_v11  ;;  %vm1692_vm11 = vcmp.eq.s32.totalorder %v1688_v46, 1  ;;  %vm1695_vm12 = vmpackc.low %vm1693_vm10, %vm1693_vm10 }
 0x350   :  { %v1655_v29 = vmul.bf16 1056980736, %v1651_v0  ;;  %vm1694_vm13 = vmpackc.low %vm1692_vm11, %vm1692_vm11 }
 0x351   :  { %v1659_v20 = vmul.bf16 1056980736, %v1652_v5  ;;  %v1664_v45 = vmul.bf16 1056980736, %v1654_v19  ;;  %v1696_v5 = vsel %vm1694_vm13, 65537, %v5699_v37 }
 0x352   :  { %4199 = vtanh.bf16 %v1655_v29 }
 0x353   :  { %4201 = vtanh.bf16 %v1659_v20 }
 0x354   :  { %4203 = vtanh.bf16 %v1653_v6  ;;  %v1697_v6 = vsel %vm1695_vm12, 65537, %v5699_v37 }
 0x355   :  { %4205 = vtanh.bf16 %v1664_v45  ;;  %v3758_v29 = vcombine.low %v1696_v5, %v1697_v6 }
 0x357   :  { %vm1701_vm14 = vcmp.ne.s16.totalorder %v3758_v29, 0 }
 0x35d   :  { %v4200_v38 = vpop.eup %4199 }
 0x35e   :  { %v4202_v44 = vpop.eup %4201  ;;  %v1657_v30 = vmul.bf16 1056980736, %v4200_v38 }
 0x35f   :  { %v1661_v7 = vmul.bf16 1056980736, %v4202_v44  ;;  %v4204_v58 = vpop.eup %4203 }
 0x360   :  { %v1658_v28 = vadd.bf16 1056980736, %v1657_v30  ;;  %v4206_v0 = vpop.eup %4205  ;;  %v5708_v30 = vld [vmem:[#allocation12_spill] sm:$0xff] }
 0x361   :  { %v1662_v63 = vadd.bf16 1056980736, %v1661_v7  ;;  %v1666_v19 = vmul.bf16 1056980736, %v4206_v0  ;;  %v1752_v7 = vunpack.c.l.bf16 %v5708_v30 }
 0x362   :  { %v1672_v8 = vmul.bf16 %v4204_v58, %v1658_v28  ;;  %v5709_v58 = vld [vmem:[#allocation13_spill] sm:$0xff] }
 0x363   :  { %v1668_v60 = vunpack.c.l.bf16 %v1662_v63  ;;  %v1669_v43 = vunpack.c.h.bf16 %v1662_v63  ;;  %v1667_v20 = vadd.bf16 1056980736, %v1666_v19  ;;  %v1751_v63 = vunpack.c.l.bf16 %v5709_v58 }
 0x364   :  { %v1673_v42 = vunpack.c.l.bf16 %v1672_v8  ;;  %v1674_v3 = vunpack.c.h.bf16 %v1672_v8  ;;  %v5710_v8 = vld [vmem:[#allocation14_spill] sm:$0xff] }
 0x365   :  { %v1670_v27 = vmul.f32 %v1668_v60, %v5118_v34  ;;  %v1671_v11 = vmul.f32 %v1669_v43, %v5120_v33  ;;  %v1753_v60 = vunpack.c.l.bf16 %v5710_v8 }
 0x367   :  { %v1675_v47 = vadd.f32 %v1673_v42, %v1670_v27  ;;  %v1676_v49 = vadd.f32 %v1674_v3, %v1671_v11 }
 0x369   :  { %v1677_v35 = vpack.c.bf16 %v1676_v49, %v1675_v47  ;;  %v5174_v10 = vsel %vm1692_vm11, %v1675_v47, %v5118_v34  ;;  %v5177_v17 = vsel %vm1693_vm10, %v1676_v49, %v5120_v33  ;;  %v5707_v33 = vld [vmem:[#allocation11_spill] sm:$0xff]  ;;  %v1755_v49 = vunpack.c.h.bf16 %v5709_v58 }
 0x36a   :  { %v1754_v11 = vunpack.c.h.bf16 %v5707_v33 }
 0x36b   :  { %4207 = vtanh.bf16 %v1677_v35  ;;  %v1757_v35 = vunpack.c.h.bf16 %v5710_v8 }
 0x376   :  { %v4208_v38 = vpop.eup %4207 }
 0x377   :  { %v1679_v44 = vmul.bf16 %v4208_v38, %v1667_v20 }
 0x379   :  { %v5182_v34 = vsel %vm1701_vm14, %v1679_v44, %v5125_v18  ;;  %v1750_v18 = vunpack.c.l.bf16 %v5707_v33 }
 0x37a   :  { %1951 = vmatmul.mubr.bf16.vlgmr.msra.gmra.mrb[44].mxu0 %v5182_v34  ;;  %1994 = vmatmul.mubr.bf16.vlgmr.msra.gmra.mrb[44].mxu1 %v5182_v34 }
 0x37b   :  { %2272 = vmatpush1.bf16.msra.mxu0 %v4921_v31  ;;  %2315 = vmatpush1.bf16.msra.mxu1 %v4926_v9 }
 0x37c   :  { %2273 = vmatprep.subr.bf16.mxu0 %v4935_v14  ;;  %2316 = vmatprep.subr.bf16.mxu1 %v4940_v61 }
 0x37d   :  { %2303 = vmatprep.mubr.bf16.mxu0 %v5699_v37  ;;  %2346 = vmatprep.mubr.bf16.mxu1 %v5699_v37 }
 0x37f   :  { %2274 = vmatpush1.bf16.msra.mxu0 %v4945_v41  ;;  %2317 = vmatpush1.bf16.msra.mxu1 %v4950_v62 }
 0x380   :  { %2275 = vmatprep.subr.bf16.mxu0 %v4959_v15  ;;  %2318 = vmatprep.subr.bf16.mxu1 %v4964_v16 }
 0x383   :  { %2276 = vmatpush1.bf16.msra.mxu0 %v4969_v39  ;;  %2319 = vmatpush1.bf16.msra.mxu1 %v4974_v22 }
 0x384   :  { %2277 = vmatprep.subr.bf16.mxu0 %v4983_v40  ;;  %2320 = vmatprep.subr.bf16.mxu1 %v4988_v23 }
 0x387   :  { %2278 = vmatpush1.bf16.msra.mxu0 %v4993_v24  ;;  %2321 = vmatpush1.bf16.msra.mxu1 %v4998_v25 }
 0x388   :  { %2279 = vmatprep.subr.bf16.mxu0 %v5007_v26  ;;  %2322 = vmatprep.subr.bf16.mxu1 %v5012_v36 }
 0x38b   :  { %2280 = vmatpush1.bf16.msra.mxu0 %v5017_v48  ;;  %2323 = vmatpush1.bf16.msra.mxu1 %v5022_v50 }
 0x38c   :  { %2281 = vmatprep.subr.bf16.mxu0 %v5031_v51  ;;  %2324 = vmatprep.subr.bf16.mxu1 %v5036_v52 }
 0x38f   :  { %2282 = vmatpush1.bf16.msra.mxu0 %v5041_v53  ;;  %2325 = vmatpush1.bf16.msra.mxu1 %v5046_v54 }
 0x390   :  { %2283 = vmatprep.subr.bf16.mxu0 %v5055_v55  ;;  %2326 = vmatprep.subr.bf16.mxu1 %v5060_v56 }
 0x393   :  { %2284 = vmatpush1.bf16.msra.mxu0 %v5065_v2  ;;  %2327 = vmatpush1.bf16.msra.mxu1 %v5070_v1 }
 0x394   :  { %2285 = vmatprep.subr.bf16.mxu0 %v5079_v4  ;;  %2328 = vmatprep.subr.bf16.mxu1 %v5084_v13 }
 0x397   :  { %2286 = vmatpush1.bf16.msra.mxu0 %v5089_v12  ;;  %2329 = vmatpush1.bf16.msra.mxu1 %v5700_v59 }
 0x398   :  { %2624 = vmatprep.subr.bf16.mxu0 %v5701_v32  ;;  %2667 = vmatprep.subr.bf16.mxu1 %v5702_v57  ;;  %v1756_v32 = vunpack.c.h.bf16 %v5708_v30 }
 0x44d   :  { %v1952_v45 = vpop.f32.mrb[44].mxu0  ;;  %v1995_v28 = vpop.f32.mrb[44].mxu1 }
 0x44e   :  { %v1953_v43 = vadd.f32 %v1952_v45, %v1750_v18  ;;  %v1996_v42 = vadd.f32 %v1995_v28, %v1752_v7  ;;  %v1954_v3 = vpop.f32.mrb[45].mxu0  ;;  %v1997_v27 = vpop.f32.mrb[45].mxu1 }
 0x44f   :  { %v1955_v21 = vadd.f32 %v1954_v3, %v1751_v63  ;;  %v1998_v57 = vadd.f32 %v1997_v27, %v1753_v60  ;;  %v1956_v46 = vpop.f32.mrb[46].mxu0  ;;  %v1999_v47 = vpop.f32.mrb[46].mxu1 }
 0x450   :  { %v1957_v0 = vadd.f32 %v1956_v46, %v1754_v11  ;;  %v2000_v6 = vadd.f32 %v1999_v47, %v1756_v32  ;;  %v1958_v5 = vpop.f32.mrb[47].mxu0  ;;  %v2001_v19 = vpop.f32.mrb[47].mxu1 }
 0x451   :  { %v1959_v29 = vadd.f32 %v1958_v5, %v1755_v49  ;;  %v2002_v20 = vadd.f32 %v2001_v19, %v1757_v35  ;;  %v2044_v47 = vpop.permute.xlu1 %2043  ;;  %v2041_v49 = vpop.permute.xlu0 %2040 }
 0x452   :  { %v2004_v38 = vpack.c.bf16 %v1957_v0, %v1953_v43  ;;  %v2006_v44 = vpack.c.bf16 %v2000_v6, %v1996_v42  ;;  %vm2046_vm15 = vcmp.eq.s32.totalorder %v2044_v47, 1  ;;  %vm2045_vm0 = vcmp.eq.s32.totalorder %v2041_v49, 1 }
 0x453   :  { %v2005_v18 = vpack.c.bf16 %v1959_v29, %v1955_v21  ;;  %v2007_v33 = vpack.c.bf16 %v2002_v20, %v1998_v57  ;;  %vm2048_vm1 = vmpackc.low %vm2046_vm15, %vm2046_vm15 }
 0x454   :  { %v2008_v7 = vmul.bf16 1056980736, %v2004_v38  ;;  %vm2047_vm2 = vmpackc.low %vm2045_vm0, %vm2045_vm0  ;;  %v2050_v20 = vsel %vm2048_vm1, 65537, %v5699_v37 }
 0x455   :  { %v2012_v30 = vmul.bf16 1056980736, %v2005_v18  ;;  %v2017_v8 = vmul.bf16 1056980736, %v2007_v33  ;;  %v2049_v38 = vsel %vm2047_vm2, 65537, %v5699_v37 }
 0x456   :  { %4209 = vtanh.bf16 %v2008_v7  ;;  %v3793_v18 = vcombine.low %v2049_v38, %v2050_v20 }
 0x457   :  { %4211 = vtanh.bf16 %v2012_v30 }
 0x458   :  { %4213 = vtanh.bf16 %v2006_v44  ;;  %vm2054_vm3 = vcmp.ne.s16.totalorder %v3793_v18, 0 }
 0x459   :  { %4215 = vtanh.bf16 %v2017_v8 }
 0x461   :  { %v4210_v45 = vpop.eup %4209 }
 0x462   :  { %v4212_v28 = vpop.eup %4211  ;;  %v2010_v58 = vmul.bf16 1056980736, %v4210_v45 }
 0x463   :  { %v2014_v63 = vmul.bf16 1056980736, %v4212_v28  ;;  %v4214_v3 = vpop.eup %4213 }
 0x464   :  { %v2011_v60 = vadd.bf16 1056980736, %v2010_v58  ;;  %v4216_v29 = vpop.eup %4215 }
 0x465   :  { %v2015_v27 = vadd.bf16 1056980736, %v2014_v63  ;;  %v2019_v44 = vmul.bf16 1056980736, %v4216_v29 }
 0x466   :  { %v2025_v11 = vmul.bf16 %v4214_v3, %v2011_v60 }
 0x467   :  { %v2021_v32 = vunpack.c.l.bf16 %v2015_v27  ;;  %v2022_v46 = vunpack.c.h.bf16 %v2015_v27  ;;  %v2020_v33 = vadd.bf16 1056980736, %v2019_v44 }
 0x468   :  { %v2026_v43 = vunpack.c.l.bf16 %v2025_v11  ;;  %v2027_v42 = vunpack.c.h.bf16 %v2025_v11 }
 0x469   :  { %v2023_v21 = vmul.f32 %v2021_v32, %v5174_v10  ;;  %v2024_v57 = vmul.f32 %v2022_v46, %v5177_v17 }
 0x46b   :  { %v2028_v35 = vadd.f32 %v2026_v43, %v2023_v21  ;;  %v2029_v0 = vadd.f32 %v2027_v42, %v2024_v57 }
 0x46d   :  { %v2030_v6 = vpack.c.bf16 %v2029_v0, %v2028_v35  ;;  %v5231_v5 = vsel %vm2045_vm0, %v2028_v35, %v5174_v10  ;;  %v5234_v19 = vsel %vm2046_vm15, %v2029_v0, %v5177_v17  ;;  %v2397_v35 = vpop.permute.xlu1 %2396  ;;  %v2394_v0 = vpop.permute.xlu0 %2393 }
 0x46e   :  { %vm2399_vm4 = vcmp.eq.s32.totalorder %v2397_v35, 1  ;;  %vm2398_vm5 = vcmp.eq.s32.totalorder %v2394_v0, 1 }
 0x46f   :  { %4217 = vtanh.bf16 %v2030_v6  ;;  %vm2401_vm6 = vmpackc.low %vm2399_vm4, %vm2399_vm4 }
 0x470   :  { %vm2400_vm7 = vmpackc.low %vm2398_vm5, %vm2398_vm5 }
 0x47a   :  { %v4218_v7 = vpop.eup %4217 }
 0x47b   :  { %v2032_v30 = vmul.bf16 %v4218_v7, %v2020_v33  ;;  %v2403_v33 = vsel %vm2401_vm6, 65537, %v5699_v37  ;;  %v2402_v7 = vsel %vm2400_vm7, 65537, %v5699_v37 }
 0x47d   :  { %v5239_v10 = vsel %vm2054_vm3, %v2032_v30, %v5182_v34 }
 0x47e   :  { %2304 = vmatmul.mubr.bf16.vlgmr.msra.gmra.mrb[48].mxu0 %v5239_v10  ;;  %2347 = vmatmul.mubr.bf16.vlgmr.msra.gmra.mrb[48].mxu1 %v5239_v10 }
 0x47f   :  { %2625 = vmatpush1.bf16.msra.mxu0 %v4921_v31  ;;  %2668 = vmatpush1.bf16.msra.mxu1 %v4926_v9  ;;  %v5711_v31 = vld [vmem:[#allocation15_spill] sm:$0xff] }
 0x480   :  { %2626 = vmatprep.subr.bf16.mxu0 %v4935_v14  ;;  %2669 = vmatprep.subr.bf16.mxu1 %v4940_v61  ;;  %v2103_v9 = vunpack.c.l.bf16 %v5711_v31  ;;  %v5712_v14 = vld [vmem:[#allocation16_spill] sm:$0xff] }
 0x481   :  { %2656 = vmatprep.mubr.bf16.mxu0 %v5699_v37  ;;  %2699 = vmatprep.mubr.bf16.mxu1 %v5699_v37  ;;  %v2105_v61 = vunpack.c.l.bf16 %v5712_v14 }
 0x483   :  { %2627 = vmatpush1.bf16.msra.mxu0 %v4945_v41  ;;  %2670 = vmatpush1.bf16.msra.mxu1 %v4950_v62 }
 0x484   :  { %2628 = vmatprep.subr.bf16.mxu0 %v4959_v15  ;;  %2671 = vmatprep.subr.bf16.mxu1 %v4964_v16  ;;  %v5713_v15 = vld [vmem:[#allocation17_spill] sm:$0xff] }
 0x485   :  { %v2104_v16 = vunpack.c.l.bf16 %v5713_v15 }
 0x487   :  { %2629 = vmatpush1.bf16.msra.mxu0 %v4969_v39  ;;  %2672 = vmatpush1.bf16.msra.mxu1 %v4974_v22  ;;  %v5714_v39 = vld [vmem:[#allocation18_spill] sm:$0xff] }
 0x488   :  { %2630 = vmatprep.subr.bf16.mxu0 %v4983_v40  ;;  %2673 = vmatprep.subr.bf16.mxu1 %v4988_v23  ;;  %v2106_v22 = vunpack.c.l.bf16 %v5714_v39 }
 0x48b   :  { %2631 = vmatpush1.bf16.msra.mxu0 %v4993_v24  ;;  %2674 = vmatpush1.bf16.msra.mxu1 %v4998_v25 }
 0x48c   :  { %2632 = vmatprep.subr.bf16.mxu0 %v5007_v26  ;;  %2675 = vmatprep.subr.bf16.mxu1 %v5012_v36 }
 0x48f   :  { %2633 = vmatpush1.bf16.msra.mxu0 %v5017_v48  ;;  %2676 = vmatpush1.bf16.msra.mxu1 %v5022_v50  ;;  %v2108_v48 = vunpack.c.h.bf16 %v5713_v15  ;;  %v2110_v50 = vunpack.c.h.bf16 %v5714_v39  ;;  %v5327_v15 = vld [vmem:[%s5632_s4 + $0x24] ss:$16 sps:$4 sm:$0xff]   ;;  %v5337_v39 = vld [vmem:[%s5632_s4 + $0x20] ss:$16 sps:$4 sm:$0xff]  }
 0x490   :  { %2634 = vmatprep.subr.bf16.mxu0 %v5031_v51  ;;  %2677 = vmatprep.subr.bf16.mxu1 %v5036_v52 }
 0x493   :  { %2635 = vmatpush1.bf16.msra.mxu0 %v5041_v53  ;;  %2678 = vmatpush1.bf16.msra.mxu1 %v5046_v54 }
 0x494   :  { %2636 = vmatprep.subr.bf16.mxu0 %v5055_v55  ;;  %2679 = vmatprep.subr.bf16.mxu1 %v5060_v56 }
 0x497   :  { %2637 = vmatpush1.bf16.msra.mxu0 %v5065_v2  ;;  %2680 = vmatpush1.bf16.msra.mxu1 %v5070_v1 }
 0x498   :  { %2638 = vmatprep.subr.bf16.mxu0 %v5079_v4  ;;  %2681 = vmatprep.subr.bf16.mxu1 %v5084_v13  ;;  %v2107_v13 = vunpack.c.h.bf16 %v5711_v31  ;;  %v3828_v31 = vcombine.low %v2402_v7, %v2403_v33 }
 0x49a   :  { %vm2407_vm8 = vcmp.ne.s16.totalorder %v3828_v31, 0 }
 0x49b   :  { %2639 = vmatpush1.bf16.msra.mxu0 %v5089_v12  ;;  %2682 = vmatpush1.bf16.msra.mxu1 %v5700_v59  ;;  %v2109_v12 = vunpack.c.h.bf16 %v5712_v14 }
 0x551   :  { %v2305_v41 = vpop.f32.mrb[48].mxu0  ;;  %v2348_v62 = vpop.f32.mrb[48].mxu1 }
 0x552   :  { %v2306_v40 = vadd.f32 %v2305_v41, %v2103_v9  ;;  %v2349_v1 = vadd.f32 %v2348_v62, %v2105_v61  ;;  %v2307_v23 = vpop.f32.mrb[49].mxu0  ;;  %v2350_v4 = vpop.f32.mrb[49].mxu1  ;;  %v5308_v41 = vld [vmem:[%s5632_s4 + $0xc] ss:$16 sps:$4 sm:$0xff]   ;;  %v5318_v62 = vld [vmem:[%s5632_s4 + $0x8] ss:$16 sps:$4 sm:$0xff]  }
 0x553   :  { %v2308_v24 = vadd.f32 %v2307_v23, %v2104_v16  ;;  %v2351_v25 = vadd.f32 %v2350_v4, %v2106_v22  ;;  %v2309_v26 = vpop.f32.mrb[50].mxu0  ;;  %v2352_v36 = vpop.f32.mrb[50].mxu1  ;;  %3020 = vmatprep.subr.bf16.mxu1 %v5308_v41  ;;  %v5332_v16 = vld [vmem:[%s5632_s4 + $0x2c] ss:$16 sps:$4 sm:$0xff]   ;;  %v5342_v22 = vld [vmem:[%s5632_s4 + $0x28] ss:$16 sps:$4 sm:$0xff]  }
 0x554   :  { %v2310_v51 = vadd.f32 %v2309_v26, %v2107_v13  ;;  %v2353_v52 = vadd.f32 %v2352_v36, %v2109_v12  ;;  %v2311_v53 = vpop.f32.mrb[51].mxu0  ;;  %v2354_v54 = vpop.f32.mrb[51].mxu1  ;;  %v5361_v23 = vld [vmem:[%s5632_s4 + $0x40] ss:$16 sps:$4 sm:$0xff]   ;;  %v5366_v4 = vld [vmem:[%s5632_s4 + $0x48] ss:$16 sps:$4 sm:$0xff]  }
 0x555   :  { %v2312_v55 = vadd.f32 %v2311_v53, %v2108_v48  ;;  %v2355_v56 = vadd.f32 %v2354_v54, %v2110_v50  ;;  %v5375_v13 = vld [vmem:[%s5632_s4 + $0x64] ss:$16 sps:$4 sm:$0xff]   ;;  %v5380_v12 = vld [vmem:[%s5632_s4 + $0x6c] ss:$16 sps:$4 sm:$0xff]   ;;  %v5409_v48 = vld [vmem:[%s5632_s4 + $0x80] ss:$16 sps:$4 sm:$0xff]  }
 0x556   :  { %v2357_v2 = vpack.c.bf16 %v2310_v51, %v2306_v40  ;;  %v2359_v59 = vpack.c.bf16 %v2353_v52, %v2349_v1  ;;  %v5351_v40 = vld [vmem:[%s5632_s4 + $0x44] ss:$16 sps:$4 sm:$0xff]   ;;  %v5356_v1 = vld [vmem:[%s5632_s4 + $0x4c] ss:$16 sps:$4 sm:$0xff]   ;;  %v5414_v50 = vld [vmem:[%s5632_s4 + $0x88] ss:$16 sps:$4 sm:$0xff]  }
 0x557   :  { %v2358_v17 = vpack.c.bf16 %v2312_v55, %v2308_v24  ;;  %v2360_v34 = vpack.c.bf16 %v2355_v56, %v2351_v25  ;;  %v5385_v24 = vld [vmem:[%s5632_s4 + $0x60] ss:$16 sps:$4 sm:$0xff]   ;;  %v5390_v25 = vld [vmem:[%s5632_s4 + $0x68] ss:$16 sps:$4 sm:$0xff]   ;;  %v5399_v26 = vld [vmem:[%s5632_s4 + $0x84] ss:$16 sps:$4 sm:$0xff]  }
 0x558   :  { %v2361_v45 = vmul.bf16 1056980736, %v2357_v2  ;;  %v5404_v36 = vld [vmem:[%s5632_s4 + $0x8c] ss:$16 sps:$4 sm:$0xff]   ;;  %v5423_v51 = vld [vmem:[%s5632_s4 + $0xa4] ss:$16 sps:$4 sm:$0xff]  }
 0x559   :  { %v2365_v28 = vmul.bf16 1056980736, %v2358_v17  ;;  %v2370_v3 = vmul.bf16 1056980736, %v2360_v34  ;;  %v5428_v52 = vld [vmem:[%s5632_s4 + $0xac] ss:$16 sps:$4 sm:$0xff]  }
 0x55a   :  { %4219 = vtanh.bf16 %v2361_v45  ;;  %v5433_v53 = vld [vmem:[%s5632_s4 + $0xa0] ss:$16 sps:$4 sm:$0xff]   ;;  %v5438_v54 = vld [vmem:[%s5632_s4 + $0xa8] ss:$16 sps:$4 sm:$0xff]   ;;  %v5447_v55 = vld [vmem:[%s5632_s4 + $0xc4] ss:$16 sps:$4 sm:$0xff]  }
 0x55b   :  { %4221 = vtanh.bf16 %v2365_v28  ;;  %v5452_v56 = vld [vmem:[%s5632_s4 + $0xcc] ss:$16 sps:$4 sm:$0xff]   ;;  %v5457_v2 = vld [vmem:[%s5632_s4 + $0xc0] ss:$16 sps:$4 sm:$0xff]   ;;  %v5471_v17 = vld [vmem:[%s5632_s4 + $0xe4] ss:$16 sps:$4 sm:$0xff]  }
 0x55c   :  { %4223 = vtanh.bf16 %v2359_v59  ;;  %v5462_v59 = vld [vmem:[%s5632_s4 + $0xc8] ss:$16 sps:$4 sm:$0xff]   ;;  %v5476_v34 = vld [vmem:[%s5632_s4 + $0xec] ss:$16 sps:$4 sm:$0xff]   ;;  %v5481_v45 = vld [vmem:[%s5632_s4 + $0xe0] ss:$16 sps:$4 sm:$0xff]  }
 0x55d   :  { %4225 = vtanh.bf16 %v2370_v3  ;;  %v5486_v28 = vld [vmem:[%s5632_s4 + $0xe8] ss:$16 sps:$4 sm:$0xff]  }
 0x565   :  { %v4220_v58 = vpop.eup %4219 }
 0x566   :  { %v4222_v63 = vpop.eup %4221  ;;  %v2363_v8 = vmul.bf16 1056980736, %v4220_v58  ;;  %v5715_v58 = vld [vmem:[#allocation19_spill] sm:$0xff] }
 0x567   :  { %v2367_v60 = vmul.bf16 1056980736, %v4222_v63  ;;  %v4224_v11 = vpop.eup %4223  ;;  %v2456_v63 = vunpack.c.l.bf16 %v5715_v58 }
 0x568   :  { %v2364_v27 = vadd.bf16 1056980736, %v2363_v8  ;;  %v4226_v18 = vpop.eup %4225  ;;  %v5716_v8 = vld [vmem:[#allocation20_spill] sm:$0xff] }
 0x569   :  { %v2368_v32 = vadd.bf16 1056980736, %v2367_v60  ;;  %v2372_v30 = vmul.bf16 1056980736, %v4226_v18  ;;  %v2458_v60 = vunpack.c.l.bf16 %v5716_v8  ;;  %v2462_v35 = vunpack.c.h.bf16 %v5716_v8 }
 0x56a   :  { %v2378_v46 = vmul.bf16 %v4224_v11, %v2364_v27  ;;  %v5717_v11 = vld [vmem:[#allocation21_spill] sm:$0xff] }
 0x56b   :  { %v2374_v43 = vunpack.c.l.bf16 %v2368_v32  ;;  %v2375_v42 = vunpack.c.h.bf16 %v2368_v32  ;;  %v2373_v9 = vadd.bf16 1056980736, %v2372_v30  ;;  %v2457_v32 = vunpack.c.l.bf16 %v5717_v11 }
 0x56c   :  { %v2379_v21 = vunpack.c.l.bf16 %v2378_v46  ;;  %v2380_v57 = vunpack.c.h.bf16 %v2378_v46  ;;  %v5718_v46 = vld [vmem:[#allocation22_spill] sm:$0xff]  ;;  %v2461_v18 = vunpack.c.h.bf16 %v5717_v11 }
 0x56d   :  { %v2376_v47 = vmul.f32 %v2374_v43, %v5231_v5  ;;  %v2377_v49 = vmul.f32 %v2375_v42, %v5234_v19  ;;  %v2459_v43 = vunpack.c.l.bf16 %v5718_v46  ;;  %v2463_v33 = vunpack.c.h.bf16 %v5718_v46 }
 0x56f   :  { %v2381_v6 = vadd.f32 %v2379_v21, %v2376_v47  ;;  %v2382_v29 = vadd.f32 %v2380_v57, %v2377_v49  ;;  %v2460_v49 = vunpack.c.h.bf16 %v5715_v58 }
 0x571   :  { %v2383_v20 = vpack.c.bf16 %v2382_v29, %v2381_v6  ;;  %v5286_v38 = vsel %vm2398_vm5, %v2381_v6, %v5231_v5  ;;  %v5289_v44 = vsel %vm2399_vm4, %v2382_v29, %v5234_v19  ;;  %v5303_v19 = vld [vmem:[%s5632_s4 + $0x4] ss:$16 sps:$4 sm:$0xff]  }
 0x572   :  { %2977 = vmatprep.subr.bf16.mxu0 %v5303_v19 }
 0x573   :  { %4227 = vtanh.bf16 %v2383_v20 }
 0x57e   :  { %v4228_v14 = vpop.eup %4227 }
 0x57f   :  { %v2385_v61 = vmul.bf16 %v4228_v14, %v2373_v9 }
 0x581   :  { %v5294_v5 = vsel %vm2407_vm8, %v2385_v61, %v5239_v10  ;;  %v5313_v10 = vld [vmem:[%s5632_s4] ss:$16 sps:$4 sm:$0xff]  }
 0x582   :  { %2657 = vmatmul.mubr.bf16.vlgmr.msra.gmra.mrb[52].mxu0 %v5294_v5  ;;  %2700 = vmatmul.mubr.bf16.vlgmr.msra.gmra.mrb[52].mxu1 %v5294_v5 }
 0x583   :  { %3009 = vmatprep.mubr.bf16.mxu0 %v5699_v37  ;;  %3052 = vmatprep.mubr.bf16.mxu1 %v5699_v37 }
 0x584   :  { %2978 = vmatpush1.bf16.msra.mxu0 %v5313_v10  ;;  %3021 = vmatpush1.bf16.msra.mxu1 %v5318_v62 }
 0x585   :  { %2979 = vmatprep.subr.bf16.mxu0 %v5327_v15  ;;  %3022 = vmatprep.subr.bf16.mxu1 %v5332_v16 }
 0x588   :  { %2980 = vmatpush1.bf16.msra.mxu0 %v5337_v39  ;;  %3023 = vmatpush1.bf16.msra.mxu1 %v5342_v22 }
 0x589   :  { %2981 = vmatprep.subr.bf16.mxu0 %v5351_v40  ;;  %3024 = vmatprep.subr.bf16.mxu1 %v5356_v1 }
 0x58c   :  { %2982 = vmatpush1.bf16.msra.mxu0 %v5361_v23  ;;  %3025 = vmatpush1.bf16.msra.mxu1 %v5366_v4 }
 0x58d   :  { %2983 = vmatprep.subr.bf16.mxu0 %v5375_v13  ;;  %3026 = vmatprep.subr.bf16.mxu1 %v5380_v12 }
 0x590   :  { %2984 = vmatpush1.bf16.msra.mxu0 %v5385_v24  ;;  %3027 = vmatpush1.bf16.msra.mxu1 %v5390_v25 }
 0x591   :  { %2985 = vmatprep.subr.bf16.mxu0 %v5399_v26  ;;  %3028 = vmatprep.subr.bf16.mxu1 %v5404_v36 }
 0x594   :  { %2986 = vmatpush1.bf16.msra.mxu0 %v5409_v48  ;;  %3029 = vmatpush1.bf16.msra.mxu1 %v5414_v50 }
 0x595   :  { %2987 = vmatprep.subr.bf16.mxu0 %v5423_v51  ;;  %3030 = vmatprep.subr.bf16.mxu1 %v5428_v52 }
 0x598   :  { %2988 = vmatpush1.bf16.msra.mxu0 %v5433_v53  ;;  %3031 = vmatpush1.bf16.msra.mxu1 %v5438_v54 }
 0x599   :  { %2989 = vmatprep.subr.bf16.mxu0 %v5447_v55  ;;  %3032 = vmatprep.subr.bf16.mxu1 %v5452_v56 }
 0x59c   :  { %2990 = vmatpush1.bf16.msra.mxu0 %v5457_v2  ;;  %3033 = vmatpush1.bf16.msra.mxu1 %v5462_v59 }
 0x59d   :  { %2991 = vmatprep.subr.bf16.mxu0 %v5471_v17  ;;  %3034 = vmatprep.subr.bf16.mxu1 %v5476_v34 }
 0x5a0   :  { %2992 = vmatpush1.bf16.msra.mxu0 %v5481_v45  ;;  %3035 = vmatpush1.bf16.msra.mxu1 %v5486_v28 }
 0x5a1   :  { %3330 = vmatprep.subr.bf16.mxu0 %v5303_v19  ;;  %3373 = vmatprep.subr.bf16.mxu1 %v5308_v41 }
 0x655   :  { %v2658_v3 = vpop.f32.mrb[52].mxu0  ;;  %v2701_v27 = vpop.f32.mrb[52].mxu1 }
 0x656   :  { %v2659_v42 = vadd.f32 %v2658_v3, %v2456_v63  ;;  %v2702_v21 = vadd.f32 %v2701_v27, %v2458_v60  ;;  %v2660_v57 = vpop.f32.mrb[53].mxu0  ;;  %v2703_v47 = vpop.f32.mrb[53].mxu1 }
 0x657   :  { %v2661_v0 = vadd.f32 %v2660_v57, %v2457_v32  ;;  %v2704_v6 = vadd.f32 %v2703_v47, %v2459_v43  ;;  %v2662_v29 = vpop.f32.mrb[54].mxu0  ;;  %v2705_v20 = vpop.f32.mrb[54].mxu1 }
 0x658   :  { %v2663_v7 = vadd.f32 %v2662_v29, %v2460_v49  ;;  %v2706_v30 = vadd.f32 %v2705_v20, %v2462_v35  ;;  %v2664_v31 = vpop.f32.mrb[55].mxu0  ;;  %v2707_v9 = vpop.f32.mrb[55].mxu1 }
 0x659   :  { %v2665_v14 = vadd.f32 %v2664_v31, %v2461_v18  ;;  %v2708_v61 = vadd.f32 %v2707_v9, %v2463_v33  ;;  %v2750_v20 = vpop.permute.xlu1 %2749  ;;  %v2747_v18 = vpop.permute.xlu0 %2746 }
 0x65a   :  { %v2710_v19 = vpack.c.bf16 %v2663_v7, %v2659_v42  ;;  %v2712_v41 = vpack.c.bf16 %v2706_v30, %v2702_v21  ;;  %vm2752_vm9 = vcmp.eq.s32.totalorder %v2750_v20, 1  ;;  %vm2751_vm10 = vcmp.eq.s32.totalorder %v2747_v18, 1 }
 0x65b   :  { %v2711_v63 = vpack.c.bf16 %v2665_v14, %v2661_v0  ;;  %v2713_v58 = vpack.c.bf16 %v2708_v61, %v2704_v6  ;;  %vm2754_vm11 = vmpackc.low %vm2752_vm9, %vm2752_vm9 }
 0x65c   :  { %v2714_v60 = vmul.bf16 1056980736, %v2710_v19  ;;  %vm2753_vm12 = vmpackc.low %vm2751_vm10, %vm2751_vm10  ;;  %v2756_v61 = vsel %vm2754_vm11, 65537, %v5699_v37 }
 0x65d   :  { %v2718_v8 = vmul.bf16 1056980736, %v2711_v63  ;;  %v2723_v46 = vmul.bf16 1056980736, %v2713_v58  ;;  %v2755_v19 = vsel %vm2753_vm12, 65537, %v5699_v37 }
 0x65e   :  { %4229 = vtanh.bf16 %v2714_v60  ;;  %v3863_v63 = vcombine.low %v2755_v19, %v2756_v61 }
 0x65f   :  { %4231 = vtanh.bf16 %v2718_v8 }
 0x660   :  { %4233 = vtanh.bf16 %v2712_v41  ;;  %vm2760_vm13 = vcmp.ne.s16.totalorder %v3863_v63, 0 }
 0x661   :  { %4235 = vtanh.bf16 %v2723_v46 }
 0x669   :  { %v4230_v3 = vpop.eup %4229 }
 0x66a   :  { %v4232_v27 = vpop.eup %4231  ;;  %v2716_v11 = vmul.bf16 1056980736, %v4230_v3 }
 0x66b   :  { %v2720_v32 = vmul.bf16 1056980736, %v4232_v27  ;;  %v4234_v57 = vpop.eup %4233 }
 0x66c   :  { %v2717_v43 = vadd.bf16 1056980736, %v2716_v11  ;;  %v4236_v14 = vpop.eup %4235 }
 0x66d   :  { %v2721_v47 = vadd.bf16 1056980736, %v2720_v32  ;;  %v2725_v41 = vmul.bf16 1056980736, %v4236_v14 }
 0x66e   :  { %v2731_v49 = vmul.bf16 %v4234_v57, %v2717_v43 }
 0x66f   :  { %v2727_v35 = vunpack.c.l.bf16 %v2721_v47  ;;  %v2728_v29 = vunpack.c.h.bf16 %v2721_v47  ;;  %v2726_v58 = vadd.bf16 1056980736, %v2725_v41 }
 0x670   :  { %v2732_v42 = vunpack.c.l.bf16 %v2731_v49  ;;  %v2733_v21 = vunpack.c.h.bf16 %v2731_v49 }
 0x671   :  { %v2729_v0 = vmul.f32 %v2727_v35, %v5286_v38  ;;  %v2730_v6 = vmul.f32 %v2728_v29, %v5289_v44 }
 0x673   :  { %v2734_v33 = vadd.f32 %v2732_v42, %v2729_v0  ;;  %v2735_v7 = vadd.f32 %v2733_v21, %v2730_v6 }
 0x675   :  { %v2736_v30 = vpack.c.bf16 %v2735_v7, %v2734_v33  ;;  %v5505_v31 = vsel %vm2751_vm10, %v2734_v33, %v5286_v38  ;;  %v5508_v9 = vsel %vm2752_vm9, %v2735_v7, %v5289_v44  ;;  %v5719_v44 = vld [vmem:[#allocation23_spill] sm:$0xff]  ;;  %v3103_v33 = vpop.permute.xlu1 %3102  ;;  %v3100_v7 = vpop.permute.xlu0 %3099 }
 0x676   :  { %vm3105_vm14 = vcmp.eq.s32.totalorder %v3103_v33, 1  ;;  %vm3104_vm15 = vcmp.eq.s32.totalorder %v3100_v7, 1 }
 0x677   :  { %4237 = vtanh.bf16 %v2736_v30  ;;  %vm3107_vm0 = vmpackc.low %vm3105_vm14, %vm3105_vm14 }
 0x678   :  { %vm3106_vm1 = vmpackc.low %vm3104_vm15, %vm3104_vm15 }
 0x679   :  { %v3456_v33 = vpop.permute.xlu1 %3455  ;;  %v3453_v7 = vpop.permute.xlu0 %3452 }
 0x67a   :  { %vm3458_vm3 = vcmp.eq.s32.totalorder %v3456_v33, 1  ;;  %vm3457_vm4 = vcmp.eq.s32.totalorder %v3453_v7, 1 }
 0x67b   :  { %vm3460_vm5 = vmpackc.low %vm3458_vm3, %vm3458_vm3 }
 0x67c   :  { %vm3459_vm6 = vmpackc.low %vm3457_vm4, %vm3457_vm4 }
 0x682   :  { %v4238_v60 = vpop.eup %4237 }
 0x683   :  { %v2738_v8 = vmul.bf16 %v4238_v60, %v2726_v58  ;;  %v3109_v58 = vsel %vm3107_vm0, 65537, %v5699_v37  ;;  %v3108_v60 = vsel %vm3106_vm1, 65537, %v5699_v37 }
 0x685   :  { %v5513_v38 = vsel %vm2760_vm13, %v2738_v8, %v5294_v5  ;;  %v2809_v5 = vunpack.c.l.bf16 %v5719_v44 }
 0x686   :  { %3010 = vmatmul.mubr.bf16.vlgmr.msra.gmra.mrb[56].mxu0 %v5513_v38  ;;  %3053 = vmatmul.mubr.bf16.vlgmr.msra.gmra.mrb[56].mxu1 %v5513_v38 }
 0x687   :  { %3331 = vmatpush1.bf16.msra.mxu0 %v5313_v10  ;;  %3374 = vmatpush1.bf16.msra.mxu1 %v5318_v62  ;;  %v5720_v10 = vld [vmem:[#allocation24_spill] sm:$0xff] }
 0x688   :  { %3332 = vmatprep.subr.bf16.mxu0 %v5327_v15  ;;  %3375 = vmatprep.subr.bf16.mxu1 %v5332_v16  ;;  %v2811_v62 = vunpack.c.l.bf16 %v5720_v10 }
 0x689   :  { %3362 = vmatprep.mubr.bf16.mxu0 %v5699_v37  ;;  %3405 = vmatprep.mubr.bf16.mxu1 %v5699_v37 }
 0x68b   :  { %3333 = vmatpush1.bf16.msra.mxu0 %v5337_v39  ;;  %3376 = vmatpush1.bf16.msra.mxu1 %v5342_v22  ;;  %v5721_v39 = vld [vmem:[#allocation25_spill] sm:$0xff] }
 0x68c   :  { %3334 = vmatprep.subr.bf16.mxu0 %v5351_v40  ;;  %3377 = vmatprep.subr.bf16.mxu1 %v5356_v1  ;;  %v2810_v22 = vunpack.c.l.bf16 %v5721_v39  ;;  %v5722_v40 = vld [vmem:[#allocation26_spill] sm:$0xff] }
 0x68d   :  { %v2812_v1 = vunpack.c.l.bf16 %v5722_v40 }
 0x68f   :  { %3335 = vmatpush1.bf16.msra.mxu0 %v5361_v23  ;;  %3378 = vmatpush1.bf16.msra.mxu1 %v5366_v4 }
 0x690   :  { %3336 = vmatprep.subr.bf16.mxu0 %v5375_v13  ;;  %3379 = vmatprep.subr.bf16.mxu1 %v5380_v12 }
 0x693   :  { %3337 = vmatpush1.bf16.msra.mxu0 %v5385_v24  ;;  %3380 = vmatpush1.bf16.msra.mxu1 %v5390_v25  ;;  %v2813_v24 = vunpack.c.h.bf16 %v5719_v44  ;;  %v2815_v25 = vunpack.c.h.bf16 %v5720_v10  ;;  %v3898_v44 = vcombine.low %v3108_v60, %v3109_v58 }
 0x694   :  { %3338 = vmatprep.subr.bf16.mxu0 %v5399_v26  ;;  %3381 = vmatprep.subr.bf16.mxu1 %v5404_v36 }
 0x695   :  { %vm3113_vm2 = vcmp.ne.s16.totalorder %v3898_v44, 0 }
 0x697   :  { %3339 = vmatpush1.bf16.msra.mxu0 %v5409_v48  ;;  %3382 = vmatpush1.bf16.msra.mxu1 %v5414_v50 }
 0x698   :  { %3340 = vmatprep.subr.bf16.mxu0 %v5423_v51  ;;  %3383 = vmatprep.subr.bf16.mxu1 %v5428_v52  ;;  %v2814_v51 = vunpack.c.h.bf16 %v5721_v39  ;;  %v2816_v52 = vunpack.c.h.bf16 %v5722_v40 }
 0x69b   :  { %3341 = vmatpush1.bf16.msra.mxu0 %v5433_v53  ;;  %3384 = vmatpush1.bf16.msra.mxu1 %v5438_v54 }
 0x69c   :  { %3342 = vmatprep.subr.bf16.mxu0 %v5447_v55  ;;  %3385 = vmatprep.subr.bf16.mxu1 %v5452_v56 }
 0x69f   :  { %3343 = vmatpush1.bf16.msra.mxu0 %v5457_v2  ;;  %3386 = vmatpush1.bf16.msra.mxu1 %v5462_v59 }
 0x6a0   :  { %3344 = vmatprep.subr.bf16.mxu0 %v5471_v17  ;;  %3387 = vmatprep.subr.bf16.mxu1 %v5476_v34 }
 0x6a3   :  { %3345 = vmatpush1.bf16.msra.mxu0 %v5481_v45  ;;  %3388 = vmatpush1.bf16.msra.mxu1 %v5486_v28 }
 0x759   :  { %v3011_v15 = vpop.f32.mrb[56].mxu0  ;;  %v3054_v16 = vpop.f32.mrb[56].mxu1 }
 0x75a   :  { %v3012_v23 = vadd.f32 %v3011_v15, %v2809_v5  ;;  %v3055_v4 = vadd.f32 %v3054_v16, %v2811_v62  ;;  %v3013_v13 = vpop.f32.mrb[57].mxu0  ;;  %v3056_v12 = vpop.f32.mrb[57].mxu1  ;;  %v5724_v16 = vld [vmem:[#allocation28_spill] sm:$0xff] }
 0x75b   :  { %v3014_v26 = vadd.f32 %v3013_v13, %v2810_v22  ;;  %v3057_v36 = vadd.f32 %v3056_v12, %v2812_v1  ;;  %v3015_v48 = vpop.f32.mrb[58].mxu0  ;;  %v3058_v50 = vpop.f32.mrb[58].mxu1  ;;  %v3164_v39 = vunpack.c.l.bf16 %v5724_v16  ;;  %v5725_v1 = vld [vmem:[#allocation29_spill] sm:$0xff] }
 0x75c   :  { %v3016_v53 = vadd.f32 %v3015_v48, %v2813_v24  ;;  %v3059_v54 = vadd.f32 %v3058_v50, %v2815_v25  ;;  %v3017_v55 = vpop.f32.mrb[59].mxu0  ;;  %v3060_v56 = vpop.f32.mrb[59].mxu1 }
 0x75d   :  { %v3018_v2 = vadd.f32 %v3017_v55, %v2814_v51  ;;  %v3061_v59 = vadd.f32 %v3060_v56, %v2816_v52 }
 0x75e   :  { %v3063_v17 = vpack.c.bf16 %v3016_v53, %v3012_v23  ;;  %v3065_v34 = vpack.c.bf16 %v3059_v54, %v3055_v4  ;;  %v3163_v23 = vunpack.c.l.bf16 %v5725_v1  ;;  %v5726_v4 = vld [vmem:[#allocation30_spill] sm:$0xff]  ;;  %v3167_v53 = vunpack.c.h.bf16 %v5725_v1 }
 0x75f   :  { %v3064_v45 = vpack.c.bf16 %v3018_v2, %v3014_v26  ;;  %v3066_v28 = vpack.c.bf16 %v3061_v59, %v3057_v36  ;;  %v3165_v13 = vunpack.c.l.bf16 %v5726_v4  ;;  %v3168_v36 = vunpack.c.h.bf16 %v5724_v16 }
 0x760   :  { %v3067_v3 = vmul.bf16 1056980736, %v3063_v17  ;;  %v3169_v54 = vunpack.c.h.bf16 %v5726_v4 }
 0x761   :  { %v3071_v27 = vmul.bf16 1056980736, %v3064_v45  ;;  %v3076_v57 = vmul.bf16 1056980736, %v3066_v28 }
 0x762   :  { %4239 = vtanh.bf16 %v3067_v3 }
 0x763   :  { %4241 = vtanh.bf16 %v3071_v27 }
 0x764   :  { %4243 = vtanh.bf16 %v3065_v34 }
 0x765   :  { %4245 = vtanh.bf16 %v3076_v57 }
 0x76d   :  { %v4240_v11 = vpop.eup %4239 }
 0x76e   :  { %v4242_v32 = vpop.eup %4241  ;;  %v3069_v46 = vmul.bf16 1056980736, %v4240_v11 }
 0x76f   :  { %v3073_v43 = vmul.bf16 1056980736, %v4242_v32  ;;  %v4244_v49 = vpop.eup %4243 }
 0x770   :  { %v3070_v47 = vadd.bf16 1056980736, %v3069_v46  ;;  %v4246_v63 = vpop.eup %4245 }
 0x771   :  { %v3074_v35 = vadd.bf16 1056980736, %v3073_v43  ;;  %v3078_v8 = vmul.bf16 1056980736, %v4246_v63 }
 0x772   :  { %v3084_v29 = vmul.bf16 %v4244_v49, %v3070_v47 }
 0x773   :  { %v3080_v42 = vunpack.c.l.bf16 %v3074_v35  ;;  %v3081_v21 = vunpack.c.h.bf16 %v3074_v35  ;;  %v3079_v5 = vadd.bf16 1056980736, %v3078_v8 }
 0x774   :  { %v3085_v0 = vunpack.c.l.bf16 %v3084_v29  ;;  %v3086_v6 = vunpack.c.h.bf16 %v3084_v29 }
 0x775   :  { %v3082_v20 = vmul.f32 %v3080_v42, %v5505_v31  ;;  %v3083_v18 = vmul.f32 %v3081_v21, %v5508_v9 }
 0x777   :  { %v3087_v30 = vadd.f32 %v3085_v0, %v3082_v20  ;;  %v3088_v14 = vadd.f32 %v3086_v6, %v3083_v18 }
 0x779   :  { %v3089_v61 = vpack.c.bf16 %v3088_v14, %v3087_v30  ;;  %v5560_v19 = vsel %vm3104_vm15, %v3087_v30, %v5505_v31  ;;  %v5563_v41 = vsel %vm3105_vm14, %v3088_v14, %v5508_v9  ;;  %v5723_v9 = vld [vmem:[#allocation27_spill] sm:$0xff] }
 0x77a   :  { %v3162_v15 = vunpack.c.l.bf16 %v5723_v9 }
 0x77b   :  { %4247 = vtanh.bf16 %v3089_v61 }
 0x786   :  { %v4248_v10 = vpop.eup %4247 }
 0x787   :  { %v3091_v62 = vmul.bf16 %v4248_v10, %v3079_v5  ;;  %v3462_v5 = vsel %vm3460_vm5, 65537, %v5699_v37  ;;  %v3461_v10 = vsel %vm3459_vm6, 65537, %v5699_v37 }
 0x789   :  { %v5568_v31 = vsel %vm3113_vm2, %v3091_v62, %v5513_v38  ;;  %v3166_v38 = vunpack.c.h.bf16 %v5723_v9  ;;  %v3933_v9 = vcombine.low %v3461_v10, %v3462_v5 }
 0x78a   :  { %3363 = vmatmul.mubr.bf16.vlgmr.msra.gmra.mrb[60].mxu0 %v5568_v31  ;;  %3406 = vmatmul.mubr.bf16.vlgmr.msra.gmra.mrb[60].mxu1 %v5568_v31 }
 0x78b   :  { %vm3466_vm7 = vcmp.ne.s16.totalorder %v3933_v9, 0 }
 0x85d   :  { %v3364_v22 = vpop.f32.mrb[60].mxu0  ;;  %v3407_v40 = vpop.f32.mrb[60].mxu1 }
 0x85e   :  { %v3365_v12 = vadd.f32 %v3364_v22, %v3162_v15  ;;  %v3408_v24 = vadd.f32 %v3407_v40, %v3164_v39  ;;  %v3366_v25 = vpop.f32.mrb[61].mxu0  ;;  %v3409_v26 = vpop.f32.mrb[61].mxu1 }
 0x85f   :  { %v3367_v48 = vadd.f32 %v3366_v25, %v3163_v23  ;;  %v3410_v50 = vadd.f32 %v3409_v26, %v3165_v13  ;;  %v3368_v51 = vpop.f32.mrb[62].mxu0  ;;  %v3411_v52 = vpop.f32.mrb[62].mxu1 }
 0x860   :  { %v3369_v55 = vadd.f32 %v3368_v51, %v3166_v38  ;;  %v3412_v56 = vadd.f32 %v3411_v52, %v3168_v36  ;;  %v3370_v2 = vpop.f32.mrb[63].mxu0  ;;  %v3413_v59 = vpop.f32.mrb[63].mxu1 }
 0x861   :  { %v3371_v17 = vadd.f32 %v3370_v2, %v3167_v53  ;;  %v3414_v34 = vadd.f32 %v3413_v59, %v3169_v54 }
 0x862   :  { %v3416_v45 = vpack.c.bf16 %v3369_v55, %v3365_v12  ;;  %v3418_v28 = vpack.c.bf16 %v3412_v56, %v3408_v24 }
 0x863   :  { %v3417_v3 = vpack.c.bf16 %v3371_v17, %v3367_v48  ;;  %v3419_v27 = vpack.c.bf16 %v3414_v34, %v3410_v50 }
 0x864   :  { %v3420_v11 = vmul.bf16 1056980736, %v3416_v45 }
 0x865   :  { %v3424_v32 = vmul.bf16 1056980736, %v3417_v3  ;;  %v3429_v49 = vmul.bf16 1056980736, %v3419_v27 }
 0x866   :  { %4249 = vtanh.bf16 %v3420_v11 }
 0x867   :  { %4251 = vtanh.bf16 %v3424_v32 }
 0x868   :  { %4253 = vtanh.bf16 %v3418_v28 }
 0x869   :  { %4255 = vtanh.bf16 %v3429_v49 }
 0x871   :  { %v4250_v46 = vpop.eup %4249 }
 0x872   :  { %v4252_v43 = vpop.eup %4251  ;;  %v3422_v57 = vmul.bf16 1056980736, %v4250_v46 }
 0x873   :  { %v3426_v47 = vmul.bf16 1056980736, %v4252_v43  ;;  %v4254_v29 = vpop.eup %4253 }
 0x874   :  { %v3423_v35 = vadd.bf16 1056980736, %v3422_v57  ;;  %v4256_v44 = vpop.eup %4255 }
 0x875   :  { %v3427_v42 = vadd.bf16 1056980736, %v3426_v47  ;;  %v3431_v62 = vmul.bf16 1056980736, %v4256_v44 }
 0x876   :  { %v3437_v21 = vmul.bf16 %v4254_v29, %v3423_v35 }
 0x877   :  { %v3433_v0 = vunpack.c.l.bf16 %v3427_v42  ;;  %v3434_v6 = vunpack.c.h.bf16 %v3427_v42  ;;  %v3432_v15 = vadd.bf16 1056980736, %v3431_v62 }
 0x878   :  { %v3438_v20 = vunpack.c.l.bf16 %v3437_v21  ;;  %v3439_v18 = vunpack.c.h.bf16 %v3437_v21 }
 0x879   :  { %v3435_v30 = vmul.f32 %v3433_v0, %v5560_v19  ;;  %v3436_v14 = vmul.f32 %v3434_v6, %v5563_v41 }
 0x87b   :  { %v3440_v61 = vadd.f32 %v3438_v20, %v3435_v30  ;;  %v3441_v63 = vadd.f32 %v3439_v18, %v3436_v14 }
 0x87d   :  { %v3442_v58 = vpack.c.bf16 %v3441_v63, %v3440_v61  ;;  %v3469_v60 = vsel %vm3457_vm4, %v3440_v61, %v5560_v19  ;;  %v3470_v8 = vsel %vm3458_vm3, %v3441_v63, %v5563_v41 }
 0x87e   :  { %3471 = vst [vmem:[#allocation4] sm:$0xff] %v3469_v60  ;;  %3472 = vst [vmem:[#allocation4 + $0x8] sm:$0xff] %v3470_v8 }
 0x87f   :  { %4257 = vtanh.bf16 %v3442_v58 }
 0x88a   :  { %v4258_v16 = vpop.eup %4257 }
 0x88b   :  { %v3444_v39 = vmul.bf16 %v4258_v16, %v3432_v15 }
 0x88d   :  { %v3467_v19 = vsel %vm3466_vm7, %v3444_v39, %v5568_v31 }
 0x88e   :  { %3468 = vst [vmem:[#allocation3] sm:$0xff] %v3467_v19 }
 0x88f PF:  { %v5727_v41 = vmov 0.0   ;;  %v4259_v22 = vld [vmem:[%s5634_s6] sm:$0xff]   ;;  %vm4270_vm8 = vmmov 0   ;;  %v4260_v37 = vld [vmem:[%s5634_s6 + $0x8] sm:$0xff]   ;;  %v4261_v31 = vld [vmem:[%s5634_s6 + $0x10] sm:$0xff]  }
 0x890   :  { %3953 = vmatprep.subr.bf16.mxu0 %v5727_v41  ;;  %3969 = vmatprep.mubr.msk.bf16.mxu0 %vm4270_vm8, %v5727_v41  ;;  %v4262_v40 = vld [vmem:[%s5634_s6 + $0x18] sm:$0xff]   ;;  %v4263_v1 = vld [vmem:[%s5634_s6 + $0x20] sm:$0xff]   ;;  %v4264_v23 = vld [vmem:[%s5634_s6 + $0x28] sm:$0xff]  }
 0x891   :  { %3954 = vmatpush3.bf16.msra.mxu0 %v4259_v22  ;;  %v4265_v4 = vld [vmem:[%s5634_s6 + $0x30] sm:$0xff]   ;;  %v4266_v13 = vld [vmem:[%s5634_s6 + $0x38] sm:$0xff]   ;;  %v3934_v24 = vld [vmem:[%s5635_s7] ss:$0 sm:$0xff] }
 0x892   :  { %3955 = vmatprep.subr.bf16.mxu0 %v5727_v41 }
 0x895   :  { %3956 = vmatpush3.bf16.msra.mxu0 %v4260_v37  ;;  %v3476_v12 = vld [vmem:[#allocation3] sm:$0xff] }
 0x896   :  { %3957 = vmatprep.subr.bf16.mxu0 %v5727_v41 }
 0x899   :  { %3958 = vmatpush3.bf16.msra.mxu0 %v4261_v31 }
 0x89a   :  { %3959 = vmatprep.subr.bf16.mxu0 %v5727_v41 }
 0x89d   :  { %3960 = vmatpush3.bf16.msra.mxu0 %v4262_v40 }
 0x89e   :  { %3961 = vmatprep.subr.bf16.mxu0 %v5727_v41 }
 0x8a1   :  { %3962 = vmatpush3.bf16.msra.mxu0 %v4263_v1 }
 0x8a2   :  { %3963 = vmatprep.subr.bf16.mxu0 %v5727_v41 }
 0x8a5   :  { %3964 = vmatpush3.bf16.msra.mxu0 %v4264_v23 }
 0x8a6   :  { %3965 = vmatprep.subr.bf16.mxu0 %v5727_v41 }
 0x8a9   :  { %3966 = vmatpush3.bf16.msra.mxu0 %v4265_v4 }
 0x8aa   :  { %3967 = vmatprep.subr.bf16.mxu0 %v5727_v41 }
 0x8ad   :  { %3968 = vmatpush3.bf16.msra.mxu0 %v4266_v13 }
 0x8b0   :  { %3970 = vmatmul.mubr.bf16.vlgmr.msra.gmra.mrb[0].mxu0 %v3476_v12 }
 0x983   :  { %v3582_v25 = vpop.f32.mrb[0].mxu0 }
 0x984   :  { %v3583_v26 = vadd.f32 %v3934_v24, %v3582_v25  ;;  %v3971_v38 = vpop.f32.mrb[1].mxu0 }
 0x985   :  { %v3585_v36 = vpop.f32.mrb[2].mxu0 }
 0x986   :  { %3589 = vst [vmem:[%s5636_s8] sm:$0xff] %v3583_v26  ;;  %v3586_v48 = vadd.f32 %v3934_v24, %v3585_v36  ;;  %v3972_v50 = vpop.f32.mrb[3].mxu0 }
 0x988   :  { %3590 = vst [vmem:[%s5636_s8 + $0x8] sm:$0xff] %v3586_v48 }

</bundles_post_ra>
